<compile_context>
chip_gen: v6e
topology: v6e:2x2x1
jax: 0.10.0
libtpu: 0.0.40
codegen_flags: <defaults>
</compile_context>

<pallas_src>
import functools
import math

import numpy as np

import jax
import jax.numpy as jnp
from jax.experimental import pallas as pl
from jax.experimental.pallas import tpu as pltpu


_SQRT_2_OVER_PI = 0.7978845608028654
_GELU_C1 = _SQRT_2_OVER_PI * 0.044715


# ----------------------------------------------------------------------------
# Static helpers (host-side, one time)
# ----------------------------------------------------------------------------
def _tap_offsets(D, H, W):
    """All 27 (k, flat-spatial-offset) pairs, k = kd*9 + kh*3 + kw."""
    taps = []
    k = 0
    for dz in (-1, 0, 1):
        for dy in (-1, 0, 1):
            for dx in (-1, 0, 1):
                taps.append((k, dz * H * W + dy * W + dx))
                k += 1
    return tuple(taps)


def _halo_masks(D, H, W):
    """(27, 1, S) float32 validity masks for the 27 shifted taps (zero padding)."""
    z, y, x = np.meshgrid(np.arange(D), np.arange(H), np.arange(W), indexing="ij")
    z, y, x = z.ravel(), y.ravel(), x.ravel()
    m = np.zeros((27, 1, D * H * W), np.float32)
    k = 0
    for dz in (-1, 0, 1):
        for dy in (-1, 0, 1):
            for dx in (-1, 0, 1):
                ok = ((z + dz >= 0) & (z + dz < D)
                      & (y + dy >= 0) & (y + dy < H)
                      & (x + dx >= 0) & (x + dx < W))
                m[k, 0] = ok
                k += 1
    return m


def prepare_params(p, *, dim, hidden_dim, d, h, w):
    """One-time parameter preprocessing (hoisted out of the jitted forward)."""
    C, S = dim, d * h * w

    # --- MLP branch: lane-packed block-diagonal weights, GELU 0.5 folded in ---
    g = 128 // math.gcd(dim, 128)           # tokens packed per row (g*dim % 128 == 0)
    assert (g * dim) * (g * hidden_dim) * 4 <= (16 << 20), (
        "packed MLP weights too large; TODO(synk): K-tiled matmul path")
    eye = jnp.eye(g, dtype=p["w1"].dtype)
    w1p = jnp.kron(eye, p["w1"].T)                     # (g*dim,  g*hid)
    w2p = jnp.kron(eye, (0.5 * p["w2"]).T)             # (g*hid,  g*dim), 0.5 of GELU folded
    b1p = jnp.tile(p["b1"], g).reshape(1, g * hidden_dim)
    b2p = jnp.tile(p["b2"], g).reshape(1, g * dim)

    # --- Conv branch: fold depthwise 3x3x3 into the 1x1x1 conv (MXU matmuls) ---
    def fold(wdw, bdw, wpw, bpw):
        wdw = wdw.reshape(C, 27)                       # (C, 27), k = kd*9+kh*3+kw
        wpw = wpw.reshape(C, C)                        # (out, in)
        # A[:, k*C + c] = Wpw[:, c] * wdw[c, k]
        a = (wpw[:, None, :] * wdw.T[None, :, :]).reshape(C, 27 * C)
        bc = (wpw @ bdw + bpw).reshape(C, 1)
        return a, bc

    a1, bc1 = fold(p["wdw1"], p["bdw1"], p["wpw1"], p["bpw1"])
    a2, bc2 = fold(p["wdw2"], p["bdw2"], p["wpw2"], p["bpw2"])

    # Halo masks pre-replicated across channels so the in-kernel mask multiply
    # needs no sublane broadcast.
    masks = jnp.asarray(np.broadcast_to(_halo_masks(d, h, w), (27, C, S)).copy())

    return dict(w1p=w1p, b1p=b1p, w2p=w2p, b2p=b2p,
                a1=a1, bc1=bc1, a2=a2, bc2=bc2, masks=masks)


# ----------------------------------------------------------------------------
# Fused kernel: MLP + in-VMEM relayout + dsconv x2 + buggy-view residual
# ----------------------------------------------------------------------------
def _fused_kernel(xn_ref, xp_ref, w1_ref, b1_ref, w2_ref, b2_ref,
                  mask_ref, a1_ref, bc1_ref, a2_ref, bc2_ref,
                  o_ref, pad_ref, t_ref, vp_ref, *, taps, C, S, chunks):
    # ---------------- MLP branch (token-major, lane-packed, g tokens/row) -----
    xr = xp_ref[...].astype(jnp.float32)                                 # (rows, 128)
    hdn = jnp.dot(xr, w1_ref[...], preferred_element_type=jnp.float32) + b1_ref[...]
    h2 = hdn * hdn
    inner = hdn * (_SQRT_2_OVER_PI + _GELU_C1 * h2)   # sqrt(2/pi)*(h + 0.044715 h^3)
    act = hdn * (1.0 + jnp.tanh(inner))               # 0.5 is folded into w2p
    y = jnp.dot(act, w2_ref[...], preferred_element_type=jnp.float32) + b2_ref[...]

    # ------ in-VMEM NDHWC -> NCDHW relayout: pad to 128 lanes + XLU transpose --
    pad_ref[...] = jnp.zeros_like(pad_ref)
    pad_ref[:, 0:C] = xn_ref[...].astype(jnp.float32)
    x_cf = jnp.transpose(pad_ref[...], (1, 0))[0:C, :]                   # (C, S)

    # ------ depthwise-separable 3-D conv, depthwise folded into the 1x1 (MXU) --
    def dsconv(v, a_ref, bc_ref):
        for k, off in taps:
            tap = v if off == 0 else pltpu.roll(v, shift=(-off) % S, axis=1)
            if k == 13:                               # centre tap: mask is all-ones
                t_ref[k * C:(k + 1) * C, :] = tap
            else:
                t_ref[k * C:(k + 1) * C, :] = mask_ref[k] * tap
        return (jnp.dot(a_ref[...], t_ref[...], preferred_element_type=jnp.float32)
                + bc_ref[...])

    v = dsconv(x_cf, a1_ref, bc1_ref)                 # dsconv block 1
    v = dsconv(v, a2_ref, bc2_ref)                    # dsconv block 2

    # ------ buggy-view residual: conv (C,S) re-chunked into output flat order --
    for ch in range(C):
        for j in range(chunks):
            r = ch * chunks + j
            vp_ref[r:r + 1, :] = v[ch:ch + 1, j * 128:(j + 1) * 128]
    o_ref[...] = (y + vp_ref[...]).astype(o_ref.dtype)


def le_feedforward(x, pp, *, d, h, w):
    """Fused forward of LeFeedForward (eval mode)."""
    B, N, dim = x.shape
    C, S = dim, d * h * w
    assert N == S, "sequence length must equal d*h*w"
    assert S % 128 == 0 and (N * dim) % 128 == 0, (
        "TODO(synk): spatially-tiled variant for non-128-aligned shapes")
    rows = (N * dim) // 128
    chunks = S // 128

    xp = x.reshape(B, rows, 128)          # pure flat-order view of x; free

    kernel = functools.partial(_fused_kernel, taps=_tap_offsets(d, h, w),
                               C=C, S=S, chunks=chunks)
    out = pl.pallas_call(
        kernel,
        out_shape=jax.ShapeDtypeStruct((B, rows, 128), x.dtype),
        grid=(B,),
        in_specs=[
            pl.BlockSpec((None, N, dim), lambda b: (b, 0, 0)),      # x, token-major
            pl.BlockSpec((None, rows, 128), lambda b: (b, 0, 0)),   # x, lane-packed view
            pl.BlockSpec(pp["w1p"].shape, lambda b: (0, 0)),
            pl.BlockSpec(pp["b1p"].shape, lambda b: (0, 0)),
            pl.BlockSpec(pp["w2p"].shape, lambda b: (0, 0)),
            pl.BlockSpec(pp["b2p"].shape, lambda b: (0, 0)),
            pl.BlockSpec(pp["masks"].shape, lambda b: (0, 0, 0)),
            pl.BlockSpec(pp["a1"].shape, lambda b: (0, 0)),
            pl.BlockSpec(pp["bc1"].shape, lambda b: (0, 0)),
            pl.BlockSpec(pp["a2"].shape, lambda b: (0, 0)),
            pl.BlockSpec(pp["bc2"].shape, lambda b: (0, 0)),
        ],
        out_specs=pl.BlockSpec((None, rows, 128), lambda b: (b, 0, 0)),
        scratch_shapes=[
            pltpu.VMEM((N, 128), jnp.float32),        # pad + transpose staging
            pltpu.VMEM((27 * C, S), jnp.float32),     # stacked masked taps
            pltpu.VMEM((rows, 128), jnp.float32),     # conv result in output flat order
        ],
        compiler_params=pltpu.CompilerParams(dimension_semantics=("parallel",)),
    )(x, xp, pp["w1p"], pp["b1p"], pp["w2p"], pp["b2p"], pp["masks"],
      pp["a1"], pp["bc1"], pp["a2"], pp["bc2"])

    # Token-major flat order -> (B, N, dim) is a free reshape.
    return out.reshape(B, N, dim)


# ----------------------------------------------------------------------------
# Pure-JAX reference (independent, lax.conv based) for correctness check
# ----------------------------------------------------------------------------
def reference_forward(x, p, *, d, h, w):
    B, N, dim = x.shape
    hid = jax.nn.gelu(x @ p["w1"].T + p["b1"], approximate=False)
    y = hid @ p["w2"].T + p["b2"]

    rx = x.reshape(B, d, h, w, dim).transpose(0, 4, 1, 2, 3)        # NCDHW

    def dsconv(z, wdw, bdw, wpw, bpw):
        z = jax.lax.conv_general_dilated(
            z, wdw, window_strides=(1, 1, 1), padding=((1, 1), (1, 1), (1, 1)),
            dimension_numbers=("NCDHW", "OIDHW", "NCDHW"), feature_group_count=dim)
        z = z + bdw[None, :, None, None, None]
        z = jax.lax.conv_general_dilated(
            z, wpw, window_strides=(1, 1, 1), padding=((0, 0), (0, 0), (0, 0)),
            dimension_numbers=("NCDHW", "OIDHW", "NCDHW"))
        z = z + bpw[None, :, None, None, None]
        return z

    rx = dsconv(rx, p["wdw1"], p["bdw1"], p["wpw1"], p["bpw1"])
    rx = dsconv(rx, p["wdw2"], p["bdw2"], p["wpw2"], p["bpw2"])
    rx = rx.reshape(B, N, dim)                                       # the buggy view
    return rx + y


# ----------------------------------------------------------------------------
if __name__ == "__main__":
    B, dim, hidden_dim = 2, 8, 32
    d = h = w = 8                       # N = S = 512
    N = d * h * w

    key = jax.random.PRNGKey(0)
    ks = jax.random.split(key, 13)

    def init(k, shape, scale=0.1):
        return scale * jax.random.normal(k, shape, jnp.float32)

    params = {
        "w1": init(ks[0], (hidden_dim, dim)),      "b1": init(ks[1], (hidden_dim,)),
        "w2": init(ks[2], (dim, hidden_dim)),      "b2": init(ks[3], (dim,)),
        "wdw1": init(ks[4], (dim, 1, 3, 3, 3)),    "bdw1": init(ks[5], (dim,)),
        "wpw1": init(ks[6], (dim, dim, 1, 1, 1)),  "bpw1": init(ks[7], (dim,)),
        "wdw2": init(ks[8], (dim, 1, 3, 3, 3)),    "bdw2": init(ks[9], (dim,)),
        "wpw2": init(ks[10], (dim, dim, 1, 1, 1)), "bpw2": init(ks[11], (dim,)),
    }
    x = jax.random.normal(ks[12], (B, N, dim), jnp.float32)

    # one-time parameter preprocessing (outside the jitted forward)
    pp = prepare_params(params, dim=dim, hidden_dim=hidden_dim, d=d, h=h, w=w)

    fwd = jax.jit(functools.partial(le_feedforward, d=d, h=h, w=w))
    out = jax.block_until_ready(fwd(x, pp))

    ref = reference_forward(x, params, d=d, h=h, w=w)
    assert out.shape == (B, N, dim)
    if not bool(jnp.allclose(out, ref, rtol=1e-2, atol=1e-2)):
        raise AssertionError(
            f"mismatch vs reference, max abs diff = {float(jnp.max(jnp.abs(out - ref)))}")

    print("KERNEL_OK")
</pallas_src>

<mosaic_0001>
module attributes {stable_mosaic.version = 11 : i64} {
  func.func @_fused_kernel(%arg0: i32, %arg1: memref<1x512x8xf32, #tpu.memory_space<vmem>>, %arg2: memref<1x32x128xf32, #tpu.memory_space<vmem>>, %arg3: memref<128x512xf32, #tpu.memory_space<vmem>>, %arg4: memref<1x512xf32, #tpu.memory_space<vmem>>, %arg5: memref<512x128xf32, #tpu.memory_space<vmem>>, %arg6: memref<1x128xf32, #tpu.memory_space<vmem>>, %arg7: memref<27x8x512xf32, #tpu.memory_space<vmem>>, %arg8: memref<8x216xf32, #tpu.memory_space<vmem>>, %arg9: memref<8x1xf32, #tpu.memory_space<vmem>>, %arg10: memref<8x216xf32, #tpu.memory_space<vmem>>, %arg11: memref<8x1xf32, #tpu.memory_space<vmem>>, %arg12: memref<1x32x128xf32, #tpu.memory_space<vmem>>, %arg13: memref<512x128xf32, #tpu.memory_space<vmem>>, %arg14: memref<216x512xf32, #tpu.memory_space<vmem>>, %arg15: memref<32x128xf32, #tpu.memory_space<vmem>>) attributes {dimension_semantics = [#tpu.dimension_semantics<parallel>], iteration_bounds = array<i64: 2>, scalar_prefetch = 0 : i64, scratch_operands = 3 : i64, tpu.core_type = #tpu.core_type<tc>, window_params = [{transform_indices = @transform_0, window_bounds = array<i64: 1, 512, 8>}, {transform_indices = @transform_1, window_bounds = array<i64: 1, 32, 128>}, {pipeline_mode = #tpu.pipeline_mode<synchronous>, transform_indices = @transform_2, window_bounds = array<i64: 128, 512>}, {pipeline_mode = #tpu.pipeline_mode<synchronous>, transform_indices = @transform_3, window_bounds = array<i64: 1, 512>}, {pipeline_mode = #tpu.pipeline_mode<synchronous>, transform_indices = @transform_4, window_bounds = array<i64: 512, 128>}, {pipeline_mode = #tpu.pipeline_mode<synchronous>, transform_indices = @transform_5, window_bounds = array<i64: 1, 128>}, {pipeline_mode = #tpu.pipeline_mode<synchronous>, transform_indices = @transform_6, window_bounds = array<i64: 27, 8, 512>}, {pipeline_mode = #tpu.pipeline_mode<synchronous>, transform_indices = @transform_7, window_bounds = array<i64: 8, 216>}, {pipeline_mode = #tpu.pipeline_mode<synchronous>, transform_indices = @transform_8, window_bounds = array<i64: 8, 1>}, {pipeline_mode = #tpu.pipeline_mode<synchronous>, transform_indices = @transform_9, window_bounds = array<i64: 8, 216>}, {pipeline_mode = #tpu.pipeline_mode<synchronous>, transform_indices = @transform_10, window_bounds = array<i64: 8, 1>}, {transform_indices = @transform_11, window_bounds = array<i64: 1, 32, 128>}]} {
    %c0 = arith.constant 0 : index
    %c0_0 = arith.constant 0 : index
    %c0_1 = arith.constant 0 : index
    %0 = vector.load %arg2[%c0, %c0_0, %c0_1] : memref<1x32x128xf32, #tpu.memory_space<vmem>>, vector<1x32x128xf32>
    %1 = vector.shape_cast %0 : vector<1x32x128xf32> to vector<32x128xf32>
    %c0_2 = arith.constant 0 : index
    %c0_3 = arith.constant 0 : index
    %2 = vector.load %arg3[%c0_2, %c0_3] : memref<128x512xf32, #tpu.memory_space<vmem>>, vector<128x512xf32>
    %cst = arith.constant dense<0.000000e+00> : vector<32x512xf32>
    %3 = tpu.matmul %1, %2, %cst {dimension_numbers = #tpu.dot_dimension_numbers<[1], [0], [0], [1], [0, 0, 1, 1], [], []>} : vector<32x128xf32>, vector<128x512xf32>, vector<32x512xf32> -> vector<32x512xf32>
    %c0_4 = arith.constant 0 : index
    %c0_5 = arith.constant 0 : index
    %4 = vector.load %arg4[%c0_4, %c0_5] : memref<1x512xf32, #tpu.memory_space<vmem>>, vector<1x512xf32>
    %5 = vector.broadcast %4 : vector<1x512xf32> to vector<32x512xf32>
    %6 = arith.addf %3, %5 : vector<32x512xf32>
    %7 = arith.mulf %6, %6 : vector<32x512xf32>
    %cst_6 = arith.constant 0.0356774069 : f32
    %8 = vector.broadcast %cst_6 : f32 to vector<32x512xf32>
    %9 = arith.mulf %8, %7 : vector<32x512xf32>
    %cst_7 = arith.constant 0.797884583 : f32
    %10 = vector.broadcast %cst_7 : f32 to vector<32x512xf32>
    %11 = arith.addf %10, %9 : vector<32x512xf32>
    %12 = arith.mulf %6, %11 : vector<32x512xf32>
    %13 = math.tanh %12 : vector<32x512xf32>
    %cst_8 = arith.constant 1.000000e+00 : f32
    %14 = vector.broadcast %cst_8 : f32 to vector<32x512xf32>
    %15 = arith.addf %14, %13 : vector<32x512xf32>
    %16 = arith.mulf %6, %15 : vector<32x512xf32>
    %c0_9 = arith.constant 0 : index
    %c0_10 = arith.constant 0 : index
    %17 = vector.load %arg5[%c0_9, %c0_10] : memref<512x128xf32, #tpu.memory_space<vmem>>, vector<512x128xf32>
    %cst_11 = arith.constant dense<0.000000e+00> : vector<32x128xf32>
    %18 = tpu.matmul %16, %17, %cst_11 {dimension_numbers = #tpu.dot_dimension_numbers<[1], [0], [0], [1], [0, 0, 1, 1], [], []>} : vector<32x512xf32>, vector<512x128xf32>, vector<32x128xf32> -> vector<32x128xf32>
    %c0_12 = arith.constant 0 : index
    %c0_13 = arith.constant 0 : index
    %19 = vector.load %arg6[%c0_12, %c0_13] : memref<1x128xf32, #tpu.memory_space<vmem>>, vector<1x128xf32>
    %20 = vector.broadcast %19 : vector<1x128xf32> to vector<32x128xf32>
    %21 = arith.addf %18, %20 : vector<32x128xf32>
    %cst_14 = arith.constant 0.000000e+00 : f32
    %22 = vector.broadcast %cst_14 : f32 to vector<512x128xf32>
    %c0_15 = arith.constant 0 : index
    %c0_16 = arith.constant 0 : index
    %23 = vector.load %arg13[%c0_15, %c0_16] : memref<512x128xf32, #tpu.memory_space<vmem>>, vector<512x128xf32>
    tpu.vector_store %arg13[%c0_15, %c0_16], %22 {strides = array<i32>} : memref<512x128xf32, #tpu.memory_space<vmem>>, vector<512x128xf32>,
    %c0_17 = arith.constant 0 : index
    %c0_18 = arith.constant 0 : index
    %c0_19 = arith.constant 0 : index
    %24 = vector.load %arg1[%c0_17, %c0_18, %c0_19] : memref<1x512x8xf32, #tpu.memory_space<vmem>>, vector<1x512x8xf32>
    %25 = vector.shape_cast %24 : vector<1x512x8xf32> to vector<512x8xf32>
    %c0_20 = arith.constant 0 : index
    %c0_21 = arith.constant 0 : index
    %26 = vector.load %arg13[%c0_20, %c0_21] : memref<512x128xf32, #tpu.memory_space<vmem>>, vector<512x8xf32>
    tpu.vector_store %arg13[%c0_20, %c0_21], %25 {strides = array<i32>} : memref<512x128xf32, #tpu.memory_space<vmem>>, vector<512x8xf32>,
    %c0_22 = arith.constant 0 : index
    %c0_23 = arith.constant 0 : index
    %27 = vector.load %arg13[%c0_22, %c0_23] : memref<512x128xf32, #tpu.memory_space<vmem>>, vector<512x128xf32>
    %28 = tpu.transpose %27, [1, 0] : vector<512x128xf32> -> vector<128x512xf32>
    %29 = vector.extract_strided_slice %28 {offsets = [0, 0], sizes = [8, 512], strides = [1, 1]} : vector<128x512xf32> to vector<8x512xf32>
    %c73_i32 = arith.constant 73 : i32
    %30 = tpu.dynamic_rotate %29 by %c73_i32 dim 1 : vector<8x512xf32>, i32 -> vector<8x512xf32>
    %c0_24 = arith.constant 0 : index
    %c0_25 = arith.constant 0 : index
    %c0_26 = arith.constant 0 : index
    %31 = vector.load %arg7[%c0_24, %c0_25, %c0_26] : memref<27x8x512xf32, #tpu.memory_space<vmem>>, vector<1x8x512xf32>
    %32 = vector.shape_cast %31 : vector<1x8x512xf32> to vector<8x512xf32>
    %33 = arith.mulf %32, %30 : vector<8x512xf32>
    %c0_27 = arith.constant 0 : index
    %c0_28 = arith.constant 0 : index
    %34 = vector.load %arg14[%c0_27, %c0_28] : memref<216x512xf32, #tpu.memory_space<vmem>>, vector<8x512xf32>
    tpu.vector_store %arg14[%c0_27, %c0_28], %33 {strides = array<i32>} : memref<216x512xf32, #tpu.memory_space<vmem>>, vector<8x512xf32>,
    %c72_i32 = arith.constant 72 : i32
    %35 = tpu.dynamic_rotate %29 by %c72_i32 dim 1 : vector<8x512xf32>, i32 -> vector<8x512xf32>
    %c1 = arith.constant 1 : index
    %c0_29 = arith.constant 0 : index
    %c0_30 = arith.constant 0 : index
    %36 = vector.load %arg7[%c1, %c0_29, %c0_30] : memref<27x8x512xf32, #tpu.memory_space<vmem>>, vector<1x8x512xf32>
    %37 = vector.shape_cast %36 : vector<1x8x512xf32> to vector<8x512xf32>
    %38 = arith.mulf %37, %35 : vector<8x512xf32>
    %c8 = arith.constant 8 : index
    %c0_31 = arith.constant 0 : index
    %39 = vector.load %arg14[%c8, %c0_31] : memref<216x512xf32, #tpu.memory_space<vmem>>, vector<8x512xf32>
    tpu.vector_store %arg14[%c8, %c0_31], %38 {strides = array<i32>} : memref<216x512xf32, #tpu.memory_space<vmem>>, vector<8x512xf32>,
    %c71_i32 = arith.constant 71 : i32
    %40 = tpu.dynamic_rotate %29 by %c71_i32 dim 1 : vector<8x512xf32>, i32 -> vector<8x512xf32>
    %c2 = arith.constant 2 : index
    %c0_32 = arith.constant 0 : index
    %c0_33 = arith.constant 0 : index
    %41 = vector.load %arg7[%c2, %c0_32, %c0_33] : memref<27x8x512xf32, #tpu.memory_space<vmem>>, vector<1x8x512xf32>
    %42 = vector.shape_cast %41 : vector<1x8x512xf32> to vector<8x512xf32>
    %43 = arith.mulf %42, %40 : vector<8x512xf32>
    %c16 = arith.constant 16 : index
    %c0_34 = arith.constant 0 : index
    %44 = vector.load %arg14[%c16, %c0_34] : memref<216x512xf32, #tpu.memory_space<vmem>>, vector<8x512xf32>
    tpu.vector_store %arg14[%c16, %c0_34], %43 {strides = array<i32>} : memref<216x512xf32, #tpu.memory_space<vmem>>, vector<8x512xf32>,
    %c65_i32 = arith.constant 65 : i32
    %45 = tpu.dynamic_rotate %29 by %c65_i32 dim 1 : vector<8x512xf32>, i32 -> vector<8x512xf32>
    %c3 = arith.constant 3 : index
    %c0_35 = arith.constant 0 : index
    %c0_36 = arith.constant 0 : index
    %46 = vector.load %arg7[%c3, %c0_35, %c0_36] : memref<27x8x512xf32, #tpu.memory_space<vmem>>, vector<1x8x512xf32>
    %47 = vector.shape_cast %46 : vector<1x8x512xf32> to vector<8x512xf32>
    %48 = arith.mulf %47, %45 : vector<8x512xf32>
    %c24 = arith.constant 24 : index
    %c0_37 = arith.constant 0 : index
    %49 = vector.load %arg14[%c24, %c0_37] : memref<216x512xf32, #tpu.memory_space<vmem>>, vector<8x512xf32>
    tpu.vector_store %arg14[%c24, %c0_37], %48 {strides = array<i32>} : memref<216x512xf32, #tpu.memory_space<vmem>>, vector<8x512xf32>,
    %c64_i32 = arith.constant 64 : i32
    %50 = tpu.dynamic_rotate %29 by %c64_i32 dim 1 : vector<8x512xf32>, i32 -> vector<8x512xf32>
    %c4 = arith.constant 4 : index
    %c0_38 = arith.constant 0 : index
    %c0_39 = arith.constant 0 : index
    %51 = vector.load %arg7[%c4, %c0_38, %c0_39] : memref<27x8x512xf32, #tpu.memory_space<vmem>>, vector<1x8x512xf32>
    %52 = vector.shape_cast %51 : vector<1x8x512xf32> to vector<8x512xf32>
    %53 = arith.mulf %52, %50 : vector<8x512xf32>
    %c32 = arith.constant 32 : index
    %c0_40 = arith.constant 0 : index
    %54 = vector.load %arg14[%c32, %c0_40] : memref<216x512xf32, #tpu.memory_space<vmem>>, vector<8x512xf32>
    tpu.vector_store %arg14[%c32, %c0_40], %53 {strides = array<i32>} : memref<216x512xf32, #tpu.memory_space<vmem>>, vector<8x512xf32>,
    %c63_i32 = arith.constant 63 : i32
    %55 = tpu.dynamic_rotate %29 by %c63_i32 dim 1 : vector<8x512xf32>, i32 -> vector<8x512xf32>
    %c5 = arith.constant 5 : index
    %c0_41 = arith.constant 0 : index
    %c0_42 = arith.constant 0 : index
    %56 = vector.load %arg7[%c5, %c0_41, %c0_42] : memref<27x8x512xf32, #tpu.memory_space<vmem>>, vector<1x8x512xf32>
    %57 = vector.shape_cast %56 : vector<1x8x512xf32> to vector<8x512xf32>
    %58 = arith.mulf %57, %55 : vector<8x512xf32>
    %c40 = arith.constant 40 : index
    %c0_43 = arith.constant 0 : index
    %59 = vector.load %arg14[%c40, %c0_43] : memref<216x512xf32, #tpu.memory_space<vmem>>, vector<8x512xf32>
    tpu.vector_store %arg14[%c40, %c0_43], %58 {strides = array<i32>} : memref<216x512xf32, #tpu.memory_space<vmem>>, vector<8x512xf32>,
    %c57_i32 = arith.constant 57 : i32
    %60 = tpu.dynamic_rotate %29 by %c57_i32 dim 1 : vector<8x512xf32>, i32 -> vector<8x512xf32>
    %c6 = arith.constant 6 : index
    %c0_44 = arith.constant 0 : index
    %c0_45 = arith.constant 0 : index
    %61 = vector.load %arg7[%c6, %c0_44, %c0_45] : memref<27x8x512xf32, #tpu.memory_space<vmem>>, vector<1x8x512xf32>
    %62 = vector.shape_cast %61 : vector<1x8x512xf32> to vector<8x512xf32>
    %63 = arith.mulf %62, %60 : vector<8x512xf32>
    %c48 = arith.constant 48 : index
    %c0_46 = arith.constant 0 : index
    %64 = vector.load %arg14[%c48, %c0_46] : memref<216x512xf32, #tpu.memory_space<vmem>>, vector<8x512xf32>
    tpu.vector_store %arg14[%c48, %c0_46], %63 {strides = array<i32>} : memref<216x512xf32, #tpu.memory_space<vmem>>, vector<8x512xf32>,
    %c56_i32 = arith.constant 56 : i32
    %65 = tpu.dynamic_rotate %29 by %c56_i32 dim 1 : vector<8x512xf32>, i32 -> vector<8x512xf32>
    %c7 = arith.constant 7 : index
    %c0_47 = arith.constant 0 : index
    %c0_48 = arith.constant 0 : index
    %66 = vector.load %arg7[%c7, %c0_47, %c0_48] : memref<27x8x512xf32, #tpu.memory_space<vmem>>, vector<1x8x512xf32>
    %67 = vector.shape_cast %66 : vector<1x8x512xf32> to vector<8x512xf32>
    %68 = arith.mulf %67, %65 : vector<8x512xf32>
    %c56 = arith.constant 56 : index
    %c0_49 = arith.constant 0 : index
    %69 = vector.load %arg14[%c56, %c0_49] : memref<216x512xf32, #tpu.memory_space<vmem>>, vector<8x512xf32>
    tpu.vector_store %arg14[%c56, %c0_49], %68 {strides = array<i32>} : memref<216x512xf32, #tpu.memory_space<vmem>>, vector<8x512xf32>,
    %c55_i32 = arith.constant 55 : i32
    %70 = tpu.dynamic_rotate %29 by %c55_i32 dim 1 : vector<8x512xf32>, i32 -> vector<8x512xf32>
    %c8_50 = arith.constant 8 : index
    %c0_51 = arith.constant 0 : index
    %c0_52 = arith.constant 0 : index
    %71 = vector.load %arg7[%c8_50, %c0_51, %c0_52] : memref<27x8x512xf32, #tpu.memory_space<vmem>>, vector<1x8x512xf32>
    %72 = vector.shape_cast %71 : vector<1x8x512xf32> to vector<8x512xf32>
    %73 = arith.mulf %72, %70 : vector<8x512xf32>
    %c64 = arith.constant 64 : index
    %c0_53 = arith.constant 0 : index
    %74 = vector.load %arg14[%c64, %c0_53] : memref<216x512xf32, #tpu.memory_space<vmem>>, vector<8x512xf32>
    tpu.vector_store %arg14[%c64, %c0_53], %73 {strides = array<i32>} : memref<216x512xf32, #tpu.memory_space<vmem>>, vector<8x512xf32>,
    %c9_i32 = arith.constant 9 : i32
    %75 = tpu.dynamic_rotate %29 by %c9_i32 dim 1 : vector<8x512xf32>, i32 -> vector<8x512xf32>
    %c9 = arith.constant 9 : index
    %c0_54 = arith.constant 0 : index
    %c0_55 = arith.constant 0 : index
    %76 = vector.load %arg7[%c9, %c0_54, %c0_55] : memref<27x8x512xf32, #tpu.memory_space<vmem>>, vector<1x8x512xf32>
    %77 = vector.shape_cast %76 : vector<1x8x512xf32> to vector<8x512xf32>
    %78 = arith.mulf %77, %75 : vector<8x512xf32>
    %c72 = arith.constant 72 : index
    %c0_56 = arith.constant 0 : index
    %79 = vector.load %arg14[%c72, %c0_56] : memref<216x512xf32, #tpu.memory_space<vmem>>, vector<8x512xf32>
    tpu.vector_store %arg14[%c72, %c0_56], %78 {strides = array<i32>} : memref<216x512xf32, #tpu.memory_space<vmem>>, vector<8x512xf32>,
    %c8_i32 = arith.constant 8 : i32
    %80 = tpu.dynamic_rotate %29 by %c8_i32 dim 1 : vector<8x512xf32>, i32 -> vector<8x512xf32>
    %c10 = arith.constant 10 : index
    %c0_57 = arith.constant 0 : index
    %c0_58 = arith.constant 0 : index
    %81 = vector.load %arg7[%c10, %c0_57, %c0_58] : memref<27x8x512xf32, #tpu.memory_space<vmem>>, vector<1x8x512xf32>
    %82 = vector.shape_cast %81 : vector<1x8x512xf32> to vector<8x512xf32>
    %83 = arith.mulf %82, %80 : vector<8x512xf32>
    %c80 = arith.constant 80 : index
    %c0_59 = arith.constant 0 : index
    %84 = vector.load %arg14[%c80, %c0_59] : memref<216x512xf32, #tpu.memory_space<vmem>>, vector<8x512xf32>
    tpu.vector_store %arg14[%c80, %c0_59], %83 {strides = array<i32>} : memref<216x512xf32, #tpu.memory_space<vmem>>, vector<8x512xf32>,
    %c7_i32 = arith.constant 7 : i32
    %85 = tpu.dynamic_rotate %29 by %c7_i32 dim 1 : vector<8x512xf32>, i32 -> vector<8x512xf32>
    %c11 = arith.constant 11 : index
    %c0_60 = arith.constant 0 : index
    %c0_61 = arith.constant 0 : index
    %86 = vector.load %arg7[%c11, %c0_60, %c0_61] : memref<27x8x512xf32, #tpu.memory_space<vmem>>, vector<1x8x512xf32>
    %87 = vector.shape_cast %86 : vector<1x8x512xf32> to vector<8x512xf32>
    %88 = arith.mulf %87, %85 : vector<8x512xf32>
    %c88 = arith.constant 88 : index
    %c0_62 = arith.constant 0 : index
    %89 = vector.load %arg14[%c88, %c0_62] : memref<216x512xf32, #tpu.memory_space<vmem>>, vector<8x512xf32>
    tpu.vector_store %arg14[%c88, %c0_62], %88 {strides = array<i32>} : memref<216x512xf32, #tpu.memory_space<vmem>>, vector<8x512xf32>,
    %c1_i32 = arith.constant 1 : i32
    %90 = tpu.dynamic_rotate %29 by %c1_i32 dim 1 : vector<8x512xf32>, i32 -> vector<8x512xf32>
    %c12 = arith.constant 12 : index
    %c0_63 = arith.constant 0 : index
    %c0_64 = arith.constant 0 : index
    %91 = vector.load %arg7[%c12, %c0_63, %c0_64] : memref<27x8x512xf32, #tpu.memory_space<vmem>>, vector<1x8x512xf32>
    %92 = vector.shape_cast %91 : vector<1x8x512xf32> to vector<8x512xf32>
    %93 = arith.mulf %92, %90 : vector<8x512xf32>
    %c96 = arith.constant 96 : index
    %c0_65 = arith.constant 0 : index
    %94 = vector.load %arg14[%c96, %c0_65] : memref<216x512xf32, #tpu.memory_space<vmem>>, vector<8x512xf32>
    tpu.vector_store %arg14[%c96, %c0_65], %93 {strides = array<i32>} : memref<216x512xf32, #tpu.memory_space<vmem>>, vector<8x512xf32>,
    %c104 = arith.constant 104 : index
    %c0_66 = arith.constant 0 : index
    %95 = vector.load %arg14[%c104, %c0_66] : memref<216x512xf32, #tpu.memory_space<vmem>>, vector<8x512xf32>
    tpu.vector_store %arg14[%c104, %c0_66], %29 {strides = array<i32>} : memref<216x512xf32, #tpu.memory_space<vmem>>, vector<8x512xf32>,
    %c511_i32 = arith.constant 511 : i32
    %96 = tpu.dynamic_rotate %29 by %c511_i32 dim 1 : vector<8x512xf32>, i32 -> vector<8x512xf32>
    %c14 = arith.constant 14 : index
    %c0_67 = arith.constant 0 : index
    %c0_68 = arith.constant 0 : index
    %97 = vector.load %arg7[%c14, %c0_67, %c0_68] : memref<27x8x512xf32, #tpu.memory_space<vmem>>, vector<1x8x512xf32>
    %98 = vector.shape_cast %97 : vector<1x8x512xf32> to vector<8x512xf32>
    %99 = arith.mulf %98, %96 : vector<8x512xf32>
    %c112 = arith.constant 112 : index
    %c0_69 = arith.constant 0 : index
    %100 = vector.load %arg14[%c112, %c0_69] : memref<216x512xf32, #tpu.memory_space<vmem>>, vector<8x512xf32>
    tpu.vector_store %arg14[%c112, %c0_69], %99 {strides = array<i32>} : memref<216x512xf32, #tpu.memory_space<vmem>>, vector<8x512xf32>,
    %c505_i32 = arith.constant 505 : i32
    %101 = tpu.dynamic_rotate %29 by %c505_i32 dim 1 : vector<8x512xf32>, i32 -> vector<8x512xf32>
    %c15 = arith.constant 15 : index
    %c0_70 = arith.constant 0 : index
    %c0_71 = arith.constant 0 : index
    %102 = vector.load %arg7[%c15, %c0_70, %c0_71] : memref<27x8x512xf32, #tpu.memory_space<vmem>>, vector<1x8x512xf32>
    %103 = vector.shape_cast %102 : vector<1x8x512xf32> to vector<8x512xf32>
    %104 = arith.mulf %103, %101 : vector<8x512xf32>
    %c120 = arith.constant 120 : index
    %c0_72 = arith.constant 0 : index
    %105 = vector.load %arg14[%c120, %c0_72] : memref<216x512xf32, #tpu.memory_space<vmem>>, vector<8x512xf32>
    tpu.vector_store %arg14[%c120, %c0_72], %104 {strides = array<i32>} : memref<216x512xf32, #tpu.memory_space<vmem>>, vector<8x512xf32>,
    %c504_i32 = arith.constant 504 : i32
    %106 = tpu.dynamic_rotate %29 by %c504_i32 dim 1 : vector<8x512xf32>, i32 -> vector<8x512xf32>
    %c16_73 = arith.constant 16 : index
    %c0_74 = arith.constant 0 : index
    %c0_75 = arith.constant 0 : index
    %107 = vector.load %arg7[%c16_73, %c0_74, %c0_75] : memref<27x8x512xf32, #tpu.memory_space<vmem>>, vector<1x8x512xf32>
    %108 = vector.shape_cast %107 : vector<1x8x512xf32> to vector<8x512xf32>
    %109 = arith.mulf %108, %106 : vector<8x512xf32>
    %c128 = arith.constant 128 : index
    %c0_76 = arith.constant 0 : index
    %110 = vector.load %arg14[%c128, %c0_76] : memref<216x512xf32, #tpu.memory_space<vmem>>, vector<8x512xf32>
    tpu.vector_store %arg14[%c128, %c0_76], %109 {strides = array<i32>} : memref<216x512xf32, #tpu.memory_space<vmem>>, vector<8x512xf32>,
    %c503_i32 = arith.constant 503 : i32
    %111 = tpu.dynamic_rotate %29 by %c503_i32 dim 1 : vector<8x512xf32>, i32 -> vector<8x512xf32>
    %c17 = arith.constant 17 : index
    %c0_77 = arith.constant 0 : index
    %c0_78 = arith.constant 0 : index
    %112 = vector.load %arg7[%c17, %c0_77, %c0_78] : memref<27x8x512xf32, #tpu.memory_space<vmem>>, vector<1x8x512xf32>
    %113 = vector.shape_cast %112 : vector<1x8x512xf32> to vector<8x512xf32>
    %114 = arith.mulf %113, %111 : vector<8x512xf32>
    %c136 = arith.constant 136 : index
    %c0_79 = arith.constant 0 : index
    %115 = vector.load %arg14[%c136, %c0_79] : memref<216x512xf32, #tpu.memory_space<vmem>>, vector<8x512xf32>
    tpu.vector_store %arg14[%c136, %c0_79], %114 {strides = array<i32>} : memref<216x512xf32, #tpu.memory_space<vmem>>, vector<8x512xf32>,
    %c457_i32 = arith.constant 457 : i32
    %116 = tpu.dynamic_rotate %29 by %c457_i32 dim 1 : vector<8x512xf32>, i32 -> vector<8x512xf32>
    %c18 = arith.constant 18 : index
    %c0_80 = arith.constant 0 : index
    %c0_81 = arith.constant 0 : index
    %117 = vector.load %arg7[%c18, %c0_80, %c0_81] : memref<27x8x512xf32, #tpu.memory_space<vmem>>, vector<1x8x512xf32>
    %118 = vector.shape_cast %117 : vector<1x8x512xf32> to vector<8x512xf32>
    %119 = arith.mulf %118, %116 : vector<8x512xf32>
    %c144 = arith.constant 144 : index
    %c0_82 = arith.constant 0 : index
    %120 = vector.load %arg14[%c144, %c0_82] : memref<216x512xf32, #tpu.memory_space<vmem>>, vector<8x512xf32>
    tpu.vector_store %arg14[%c144, %c0_82], %119 {strides = array<i32>} : memref<216x512xf32, #tpu.memory_space<vmem>>, vector<8x512xf32>,
    %c456_i32 = arith.constant 456 : i32
    %121 = tpu.dynamic_rotate %29 by %c456_i32 dim 1 : vector<8x512xf32>, i32 -> vector<8x512xf32>
    %c19 = arith.constant 19 : index
    %c0_83 = arith.constant 0 : index
    %c0_84 = arith.constant 0 : index
    %122 = vector.load %arg7[%c19, %c0_83, %c0_84] : memref<27x8x512xf32, #tpu.memory_space<vmem>>, vector<1x8x512xf32>
    %123 = vector.shape_cast %122 : vector<1x8x512xf32> to vector<8x512xf32>
    %124 = arith.mulf %123, %121 : vector<8x512xf32>
    %c152 = arith.constant 152 : index
    %c0_85 = arith.constant 0 : index
    %125 = vector.load %arg14[%c152, %c0_85] : memref<216x512xf32, #tpu.memory_space<vmem>>, vector<8x512xf32>
    tpu.vector_store %arg14[%c152, %c0_85], %124 {strides = array<i32>} : memref<216x512xf32, #tpu.memory_space<vmem>>, vector<8x512xf32>,
    %c455_i32 = arith.constant 455 : i32
    %126 = tpu.dynamic_rotate %29 by %c455_i32 dim 1 : vector<8x512xf32>, i32 -> vector<8x512xf32>
    %c20 = arith.constant 20 : index
    %c0_86 = arith.constant 0 : index
    %c0_87 = arith.constant 0 : index
    %127 = vector.load %arg7[%c20, %c0_86, %c0_87] : memref<27x8x512xf32, #tpu.memory_space<vmem>>, vector<1x8x512xf32>
    %128 = vector.shape_cast %127 : vector<1x8x512xf32> to vector<8x512xf32>
    %129 = arith.mulf %128, %126 : vector<8x512xf32>
    %c160 = arith.constant 160 : index
    %c0_88 = arith.constant 0 : index
    %130 = vector.load %arg14[%c160, %c0_88] : memref<216x512xf32, #tpu.memory_space<vmem>>, vector<8x512xf32>
    tpu.vector_store %arg14[%c160, %c0_88], %129 {strides = array<i32>} : memref<216x512xf32, #tpu.memory_space<vmem>>, vector<8x512xf32>,
    %c449_i32 = arith.constant 449 : i32
    %131 = tpu.dynamic_rotate %29 by %c449_i32 dim 1 : vector<8x512xf32>, i32 -> vector<8x512xf32>
    %c21 = arith.constant 21 : index
    %c0_89 = arith.constant 0 : index
    %c0_90 = arith.constant 0 : index
    %132 = vector.load %arg7[%c21, %c0_89, %c0_90] : memref<27x8x512xf32, #tpu.memory_space<vmem>>, vector<1x8x512xf32>
    %133 = vector.shape_cast %132 : vector<1x8x512xf32> to vector<8x512xf32>
    %134 = arith.mulf %133, %131 : vector<8x512xf32>
    %c168 = arith.constant 168 : index
    %c0_91 = arith.constant 0 : index
    %135 = vector.load %arg14[%c168, %c0_91] : memref<216x512xf32, #tpu.memory_space<vmem>>, vector<8x512xf32>
    tpu.vector_store %arg14[%c168, %c0_91], %134 {strides = array<i32>} : memref<216x512xf32, #tpu.memory_space<vmem>>, vector<8x512xf32>,
    %c448_i32 = arith.constant 448 : i32
    %136 = tpu.dynamic_rotate %29 by %c448_i32 dim 1 : vector<8x512xf32>, i32 -> vector<8x512xf32>
    %c22 = arith.constant 22 : index
    %c0_92 = arith.constant 0 : index
    %c0_93 = arith.constant 0 : index
    %137 = vector.load %arg7[%c22, %c0_92, %c0_93] : memref<27x8x512xf32, #tpu.memory_space<vmem>>, vector<1x8x512xf32>
    %138 = vector.shape_cast %137 : vector<1x8x512xf32> to vector<8x512xf32>
    %139 = arith.mulf %138, %136 : vector<8x512xf32>
    %c176 = arith.constant 176 : index
    %c0_94 = arith.constant 0 : index
    %140 = vector.load %arg14[%c176, %c0_94] : memref<216x512xf32, #tpu.memory_space<vmem>>, vector<8x512xf32>
    tpu.vector_store %arg14[%c176, %c0_94], %139 {strides = array<i32>} : memref<216x512xf32, #tpu.memory_space<vmem>>, vector<8x512xf32>,
    %c447_i32 = arith.constant 447 : i32
    %141 = tpu.dynamic_rotate %29 by %c447_i32 dim 1 : vector<8x512xf32>, i32 -> vector<8x512xf32>
    %c23 = arith.constant 23 : index
    %c0_95 = arith.constant 0 : index
    %c0_96 = arith.constant 0 : index
    %142 = vector.load %arg7[%c23, %c0_95, %c0_96] : memref<27x8x512xf32, #tpu.memory_space<vmem>>, vector<1x8x512xf32>
    %143 = vector.shape_cast %142 : vector<1x8x512xf32> to vector<8x512xf32>
    %144 = arith.mulf %143, %141 : vector<8x512xf32>
    %c184 = arith.constant 184 : index
    %c0_97 = arith.constant 0 : index
    %145 = vector.load %arg14[%c184, %c0_97] : memref<216x512xf32, #tpu.memory_space<vmem>>, vector<8x512xf32>
    tpu.vector_store %arg14[%c184, %c0_97], %144 {strides = array<i32>} : memref<216x512xf32, #tpu.memory_space<vmem>>, vector<8x512xf32>,
    %c441_i32 = arith.constant 441 : i32
    %146 = tpu.dynamic_rotate %29 by %c441_i32 dim 1 : vector<8x512xf32>, i32 -> vector<8x512xf32>
    %c24_98 = arith.constant 24 : index
    %c0_99 = arith.constant 0 : index
    %c0_100 = arith.constant 0 : index
    %147 = vector.load %arg7[%c24_98, %c0_99, %c0_100] : memref<27x8x512xf32, #tpu.memory_space<vmem>>, vector<1x8x512xf32>
    %148 = vector.shape_cast %147 : vector<1x8x512xf32> to vector<8x512xf32>
    %149 = arith.mulf %148, %146 : vector<8x512xf32>
    %c192 = arith.constant 192 : index
    %c0_101 = arith.constant 0 : index
    %150 = vector.load %arg14[%c192, %c0_101] : memref<216x512xf32, #tpu.memory_space<vmem>>, vector<8x512xf32>
    tpu.vector_store %arg14[%c192, %c0_101], %149 {strides = array<i32>} : memref<216x512xf32, #tpu.memory_space<vmem>>, vector<8x512xf32>,
    %c440_i32 = arith.constant 440 : i32
    %151 = tpu.dynamic_rotate %29 by %c440_i32 dim 1 : vector<8x512xf32>, i32 -> vector<8x512xf32>
    %c25 = arith.constant 25 : index
    %c0_102 = arith.constant 0 : index
    %c0_103 = arith.constant 0 : index
    %152 = vector.load %arg7[%c25, %c0_102, %c0_103] : memref<27x8x512xf32, #tpu.memory_space<vmem>>, vector<1x8x512xf32>
    %153 = vector.shape_cast %152 : vector<1x8x512xf32> to vector<8x512xf32>
    %154 = arith.mulf %153, %151 : vector<8x512xf32>
    %c200 = arith.constant 200 : index
    %c0_104 = arith.constant 0 : index
    %155 = vector.load %arg14[%c200, %c0_104] : memref<216x512xf32, #tpu.memory_space<vmem>>, vector<8x512xf32>
    tpu.vector_store %arg14[%c200, %c0_104], %154 {strides = array<i32>} : memref<216x512xf32, #tpu.memory_space<vmem>>, vector<8x512xf32>,
    %c439_i32 = arith.constant 439 : i32
    %156 = tpu.dynamic_rotate %29 by %c439_i32 dim 1 : vector<8x512xf32>, i32 -> vector<8x512xf32>
    %c26 = arith.constant 26 : index
    %c0_105 = arith.constant 0 : index
    %c0_106 = arith.constant 0 : index
    %157 = vector.load %arg7[%c26, %c0_105, %c0_106] : memref<27x8x512xf32, #tpu.memory_space<vmem>>, vector<1x8x512xf32>
    %158 = vector.shape_cast %157 : vector<1x8x512xf32> to vector<8x512xf32>
    %159 = arith.mulf %158, %156 : vector<8x512xf32>
    %c208 = arith.constant 208 : index
    %c0_107 = arith.constant 0 : index
    %160 = vector.load %arg14[%c208, %c0_107] : memref<216x512xf32, #tpu.memory_space<vmem>>, vector<8x512xf32>
    tpu.vector_store %arg14[%c208, %c0_107], %159 {strides = array<i32>} : memref<216x512xf32, #tpu.memory_space<vmem>>, vector<8x512xf32>,
    %c0_108 = arith.constant 0 : index
    %c0_109 = arith.constant 0 : index
    %161 = vector.load %arg8[%c0_108, %c0_109] : memref<8x216xf32, #tpu.memory_space<vmem>>, vector<8x216xf32>
    %c0_110 = arith.constant 0 : index
    %c0_111 = arith.constant 0 : index
    %162 = vector.load %arg14[%c0_110, %c0_111] : memref<216x512xf32, #tpu.memory_space<vmem>>, vector<216x512xf32>
    %cst_112 = arith.constant dense<0.000000e+00> : vector<8x512xf32>
    %163 = tpu.matmul %161, %162, %cst_112 {dimension_numbers = #tpu.dot_dimension_numbers<[1], [0], [0], [1], [0, 0, 1, 1], [], []>} : vector<8x216xf32>, vector<216x512xf32>, vector<8x512xf32> -> vector<8x512xf32>
    %c0_113 = arith.constant 0 : index
    %c0_114 = arith.constant 0 : index
    %164 = vector.load %arg9[%c0_113, %c0_114] : memref<8x1xf32, #tpu.memory_space<vmem>>, vector<8x1xf32>
    %165 = vector.broadcast %164 : vector<8x1xf32> to vector<8x512xf32>
    %166 = arith.addf %163, %165 : vector<8x512xf32>
    %c73_i32_115 = arith.constant 73 : i32
    %167 = tpu.dynamic_rotate %166 by %c73_i32_115 dim 1 : vector<8x512xf32>, i32 -> vector<8x512xf32>
    %c0_116 = arith.constant 0 : index
    %c0_117 = arith.constant 0 : index
    %c0_118 = arith.constant 0 : index
    %168 = vector.load %arg7[%c0_116, %c0_117, %c0_118] : memref<27x8x512xf32, #tpu.memory_space<vmem>>, vector<1x8x512xf32>
    %169 = vector.shape_cast %168 : vector<1x8x512xf32> to vector<8x512xf32>
    %170 = arith.mulf %169, %167 : vector<8x512xf32>
    %c0_119 = arith.constant 0 : index
    %c0_120 = arith.constant 0 : index
    %171 = vector.load %arg14[%c0_119, %c0_120] : memref<216x512xf32, #tpu.memory_space<vmem>>, vector<8x512xf32>
    tpu.vector_store %arg14[%c0_119, %c0_120], %170 {strides = array<i32>} : memref<216x512xf32, #tpu.memory_space<vmem>>, vector<8x512xf32>,
    %c72_i32_121 = arith.constant 72 : i32
    %172 = tpu.dynamic_rotate %166 by %c72_i32_121 dim 1 : vector<8x512xf32>, i32 -> vector<8x512xf32>
    %c1_122 = arith.constant 1 : index
    %c0_123 = arith.constant 0 : index
    %c0_124 = arith.constant 0 : index
    %173 = vector.load %arg7[%c1_122, %c0_123, %c0_124] : memref<27x8x512xf32, #tpu.memory_space<vmem>>, vector<1x8x512xf32>
    %174 = vector.shape_cast %173 : vector<1x8x512xf32> to vector<8x512xf32>
    %175 = arith.mulf %174, %172 : vector<8x512xf32>
    %c8_125 = arith.constant 8 : index
    %c0_126 = arith.constant 0 : index
    %176 = vector.load %arg14[%c8_125, %c0_126] : memref<216x512xf32, #tpu.memory_space<vmem>>, vector<8x512xf32>
    tpu.vector_store %arg14[%c8_125, %c0_126], %175 {strides = array<i32>} : memref<216x512xf32, #tpu.memory_space<vmem>>, vector<8x512xf32>,
    %c71_i32_127 = arith.constant 71 : i32
    %177 = tpu.dynamic_rotate %166 by %c71_i32_127 dim 1 : vector<8x512xf32>, i32 -> vector<8x512xf32>
    %c2_128 = arith.constant 2 : index
    %c0_129 = arith.constant 0 : index
    %c0_130 = arith.constant 0 : index
    %178 = vector.load %arg7[%c2_128, %c0_129, %c0_130] : memref<27x8x512xf32, #tpu.memory_space<vmem>>, vector<1x8x512xf32>
    %179 = vector.shape_cast %178 : vector<1x8x512xf32> to vector<8x512xf32>
    %180 = arith.mulf %179, %177 : vector<8x512xf32>
    %c16_131 = arith.constant 16 : index
    %c0_132 = arith.constant 0 : index
    %181 = vector.load %arg14[%c16_131, %c0_132] : memref<216x512xf32, #tpu.memory_space<vmem>>, vector<8x512xf32>
    tpu.vector_store %arg14[%c16_131, %c0_132], %180 {strides = array<i32>} : memref<216x512xf32, #tpu.memory_space<vmem>>, vector<8x512xf32>,
    %c65_i32_133 = arith.constant 65 : i32
    %182 = tpu.dynamic_rotate %166 by %c65_i32_133 dim 1 : vector<8x512xf32>, i32 -> vector<8x512xf32>
    %c3_134 = arith.constant 3 : index
    %c0_135 = arith.constant 0 : index
    %c0_136 = arith.constant 0 : index
    %183 = vector.load %arg7[%c3_134, %c0_135, %c0_136] : memref<27x8x512xf32, #tpu.memory_space<vmem>>, vector<1x8x512xf32>
    %184 = vector.shape_cast %183 : vector<1x8x512xf32> to vector<8x512xf32>
    %185 = arith.mulf %184, %182 : vector<8x512xf32>
    %c24_137 = arith.constant 24 : index
    %c0_138 = arith.constant 0 : index
    %186 = vector.load %arg14[%c24_137, %c0_138] : memref<216x512xf32, #tpu.memory_space<vmem>>, vector<8x512xf32>
    tpu.vector_store %arg14[%c24_137, %c0_138], %185 {strides = array<i32>} : memref<216x512xf32, #tpu.memory_space<vmem>>, vector<8x512xf32>,
    %c64_i32_139 = arith.constant 64 : i32
    %187 = tpu.dynamic_rotate %166 by %c64_i32_139 dim 1 : vector<8x512xf32>, i32 -> vector<8x512xf32>
    %c4_140 = arith.constant 4 : index
    %c0_141 = arith.constant 0 : index
    %c0_142 = arith.constant 0 : index
    %188 = vector.load %arg7[%c4_140, %c0_141, %c0_142] : memref<27x8x512xf32, #tpu.memory_space<vmem>>, vector<1x8x512xf32>
    %189 = vector.shape_cast %188 : vector<1x8x512xf32> to vector<8x512xf32>
    %190 = arith.mulf %189, %187 : vector<8x512xf32>
    %c32_143 = arith.constant 32 : index
    %c0_144 = arith.constant 0 : index
    %191 = vector.load %arg14[%c32_143, %c0_144] : memref<216x512xf32, #tpu.memory_space<vmem>>, vector<8x512xf32>
    tpu.vector_store %arg14[%c32_143, %c0_144], %190 {strides = array<i32>} : memref<216x512xf32, #tpu.memory_space<vmem>>, vector<8x512xf32>,
    %c63_i32_145 = arith.constant 63 : i32
    %192 = tpu.dynamic_rotate %166 by %c63_i32_145 dim 1 : vector<8x512xf32>, i32 -> vector<8x512xf32>
    %c5_146 = arith.constant 5 : index
    %c0_147 = arith.constant 0 : index
    %c0_148 = arith.constant 0 : index
    %193 = vector.load %arg7[%c5_146, %c0_147, %c0_148] : memref<27x8x512xf32, #tpu.memory_space<vmem>>, vector<1x8x512xf32>
    %194 = vector.shape_cast %193 : vector<1x8x512xf32> to vector<8x512xf32>
    %195 = arith.mulf %194, %192 : vector<8x512xf32>
    %c40_149 = arith.constant 40 : index
    %c0_150 = arith.constant 0 : index
    %196 = vector.load %arg14[%c40_149, %c0_150] : memref<216x512xf32, #tpu.memory_space<vmem>>, vector<8x512xf32>
    tpu.vector_store %arg14[%c40_149, %c0_150], %195 {strides = array<i32>} : memref<216x512xf32, #tpu.memory_space<vmem>>, vector<8x512xf32>,
    %c57_i32_151 = arith.constant 57 : i32
    %197 = tpu.dynamic_rotate %166 by %c57_i32_151 dim 1 : vector<8x512xf32>, i32 -> vector<8x512xf32>
    %c6_152 = arith.constant 6 : index
    %c0_153 = arith.constant 0 : index
    %c0_154 = arith.constant 0 : index
    %198 = vector.load %arg7[%c6_152, %c0_153, %c0_154] : memref<27x8x512xf32, #tpu.memory_space<vmem>>, vector<1x8x512xf32>
    %199 = vector.shape_cast %198 : vector<1x8x512xf32> to vector<8x512xf32>
    %200 = arith.mulf %199, %197 : vector<8x512xf32>
    %c48_155 = arith.constant 48 : index
    %c0_156 = arith.constant 0 : index
    %201 = vector.load %arg14[%c48_155, %c0_156] : memref<216x512xf32, #tpu.memory_space<vmem>>, vector<8x512xf32>
    tpu.vector_store %arg14[%c48_155, %c0_156], %200 {strides = array<i32>} : memref<216x512xf32, #tpu.memory_space<vmem>>, vector<8x512xf32>,
    %c56_i32_157 = arith.constant 56 : i32
    %202 = tpu.dynamic_rotate %166 by %c56_i32_157 dim 1 : vector<8x512xf32>, i32 -> vector<8x512xf32>
    %c7_158 = arith.constant 7 : index
    %c0_159 = arith.constant 0 : index
    %c0_160 = arith.constant 0 : index
    %203 = vector.load %arg7[%c7_158, %c0_159, %c0_160] : memref<27x8x512xf32, #tpu.memory_space<vmem>>, vector<1x8x512xf32>
    %204 = vector.shape_cast %203 : vector<1x8x512xf32> to vector<8x512xf32>
    %205 = arith.mulf %204, %202 : vector<8x512xf32>
    %c56_161 = arith.constant 56 : index
    %c0_162 = arith.constant 0 : index
    %206 = vector.load %arg14[%c56_161, %c0_162] : memref<216x512xf32, #tpu.memory_space<vmem>>, vector<8x512xf32>
    tpu.vector_store %arg14[%c56_161, %c0_162], %205 {strides = array<i32>} : memref<216x512xf32, #tpu.memory_space<vmem>>, vector<8x512xf32>,
    %c55_i32_163 = arith.constant 55 : i32
    %207 = tpu.dynamic_rotate %166 by %c55_i32_163 dim 1 : vector<8x512xf32>, i32 -> vector<8x512xf32>
    %c8_164 = arith.constant 8 : index
    %c0_165 = arith.constant 0 : index
    %c0_166 = arith.constant 0 : index
    %208 = vector.load %arg7[%c8_164, %c0_165, %c0_166] : memref<27x8x512xf32, #tpu.memory_space<vmem>>, vector<1x8x512xf32>
    %209 = vector.shape_cast %208 : vector<1x8x512xf32> to vector<8x512xf32>
    %210 = arith.mulf %209, %207 : vector<8x512xf32>
    %c64_167 = arith.constant 64 : index
    %c0_168 = arith.constant 0 : index
    %211 = vector.load %arg14[%c64_167, %c0_168] : memref<216x512xf32, #tpu.memory_space<vmem>>, vector<8x512xf32>
    tpu.vector_store %arg14[%c64_167, %c0_168], %210 {strides = array<i32>} : memref<216x512xf32, #tpu.memory_space<vmem>>, vector<8x512xf32>,
    %c9_i32_169 = arith.constant 9 : i32
    %212 = tpu.dynamic_rotate %166 by %c9_i32_169 dim 1 : vector<8x512xf32>, i32 -> vector<8x512xf32>
    %c9_170 = arith.constant 9 : index
    %c0_171 = arith.constant 0 : index
    %c0_172 = arith.constant 0 : index
    %213 = vector.load %arg7[%c9_170, %c0_171, %c0_172] : memref<27x8x512xf32, #tpu.memory_space<vmem>>, vector<1x8x512xf32>
    %214 = vector.shape_cast %213 : vector<1x8x512xf32> to vector<8x512xf32>
    %215 = arith.mulf %214, %212 : vector<8x512xf32>
    %c72_173 = arith.constant 72 : index
    %c0_174 = arith.constant 0 : index
    %216 = vector.load %arg14[%c72_173, %c0_174] : memref<216x512xf32, #tpu.memory_space<vmem>>, vector<8x512xf32>
    tpu.vector_store %arg14[%c72_173, %c0_174], %215 {strides = array<i32>} : memref<216x512xf32, #tpu.memory_space<vmem>>, vector<8x512xf32>,
    %c8_i32_175 = arith.constant 8 : i32
    %217 = tpu.dynamic_rotate %166 by %c8_i32_175 dim 1 : vector<8x512xf32>, i32 -> vector<8x512xf32>
    %c10_176 = arith.constant 10 : index
    %c0_177 = arith.constant 0 : index
    %c0_178 = arith.constant 0 : index
    %218 = vector.load %arg7[%c10_176, %c0_177, %c0_178] : memref<27x8x512xf32, #tpu.memory_space<vmem>>, vector<1x8x512xf32>
    %219 = vector.shape_cast %218 : vector<1x8x512xf32> to vector<8x512xf32>
    %220 = arith.mulf %219, %217 : vector<8x512xf32>
    %c80_179 = arith.constant 80 : index
    %c0_180 = arith.constant 0 : index
    %221 = vector.load %arg14[%c80_179, %c0_180] : memref<216x512xf32, #tpu.memory_space<vmem>>, vector<8x512xf32>
    tpu.vector_store %arg14[%c80_179, %c0_180], %220 {strides = array<i32>} : memref<216x512xf32, #tpu.memory_space<vmem>>, vector<8x512xf32>,
    %c7_i32_181 = arith.constant 7 : i32
    %222 = tpu.dynamic_rotate %166 by %c7_i32_181 dim 1 : vector<8x512xf32>, i32 -> vector<8x512xf32>
    %c11_182 = arith.constant 11 : index
    %c0_183 = arith.constant 0 : index
    %c0_184 = arith.constant 0 : index
    %223 = vector.load %arg7[%c11_182, %c0_183, %c0_184] : memref<27x8x512xf32, #tpu.memory_space<vmem>>, vector<1x8x512xf32>
    %224 = vector.shape_cast %223 : vector<1x8x512xf32> to vector<8x512xf32>
    %225 = arith.mulf %224, %222 : vector<8x512xf32>
    %c88_185 = arith.constant 88 : index
    %c0_186 = arith.constant 0 : index
    %226 = vector.load %arg14[%c88_185, %c0_186] : memref<216x512xf32, #tpu.memory_space<vmem>>, vector<8x512xf32>
    tpu.vector_store %arg14[%c88_185, %c0_186], %225 {strides = array<i32>} : memref<216x512xf32, #tpu.memory_space<vmem>>, vector<8x512xf32>,
    %c1_i32_187 = arith.constant 1 : i32
    %227 = tpu.dynamic_rotate %166 by %c1_i32_187 dim 1 : vector<8x512xf32>, i32 -> vector<8x512xf32>
    %c12_188 = arith.constant 12 : index
    %c0_189 = arith.constant 0 : index
    %c0_190 = arith.constant 0 : index
    %228 = vector.load %arg7[%c12_188, %c0_189, %c0_190] : memref<27x8x512xf32, #tpu.memory_space<vmem>>, vector<1x8x512xf32>
    %229 = vector.shape_cast %228 : vector<1x8x512xf32> to vector<8x512xf32>
    %230 = arith.mulf %229, %227 : vector<8x512xf32>
    %c96_191 = arith.constant 96 : index
    %c0_192 = arith.constant 0 : index
    %231 = vector.load %arg14[%c96_191, %c0_192] : memref<216x512xf32, #tpu.memory_space<vmem>>, vector<8x512xf32>
    tpu.vector_store %arg14[%c96_191, %c0_192], %230 {strides = array<i32>} : memref<216x512xf32, #tpu.memory_space<vmem>>, vector<8x512xf32>,
    %c104_193 = arith.constant 104 : index
    %c0_194 = arith.constant 0 : index
    %232 = vector.load %arg14[%c104_193, %c0_194] : memref<216x512xf32, #tpu.memory_space<vmem>>, vector<8x512xf32>
    tpu.vector_store %arg14[%c104_193, %c0_194], %166 {strides = array<i32>} : memref<216x512xf32, #tpu.memory_space<vmem>>, vector<8x512xf32>,
    %c511_i32_195 = arith.constant 511 : i32
    %233 = tpu.dynamic_rotate %166 by %c511_i32_195 dim 1 : vector<8x512xf32>, i32 -> vector<8x512xf32>
    %c14_196 = arith.constant 14 : index
    %c0_197 = arith.constant 0 : index
    %c0_198 = arith.constant 0 : index
    %234 = vector.load %arg7[%c14_196, %c0_197, %c0_198] : memref<27x8x512xf32, #tpu.memory_space<vmem>>, vector<1x8x512xf32>
    %235 = vector.shape_cast %234 : vector<1x8x512xf32> to vector<8x512xf32>
    %236 = arith.mulf %235, %233 : vector<8x512xf32>
    %c112_199 = arith.constant 112 : index
    %c0_200 = arith.constant 0 : index
    %237 = vector.load %arg14[%c112_199, %c0_200] : memref<216x512xf32, #tpu.memory_space<vmem>>, vector<8x512xf32>
    tpu.vector_store %arg14[%c112_199, %c0_200], %236 {strides = array<i32>} : memref<216x512xf32, #tpu.memory_space<vmem>>, vector<8x512xf32>,
    %c505_i32_201 = arith.constant 505 : i32
    %238 = tpu.dynamic_rotate %166 by %c505_i32_201 dim 1 : vector<8x512xf32>, i32 -> vector<8x512xf32>
    %c15_202 = arith.constant 15 : index
    %c0_203 = arith.constant 0 : index
    %c0_204 = arith.constant 0 : index
    %239 = vector.load %arg7[%c15_202, %c0_203, %c0_204] : memref<27x8x512xf32, #tpu.memory_space<vmem>>, vector<1x8x512xf32>
    %240 = vector.shape_cast %239 : vector<1x8x512xf32> to vector<8x512xf32>
    %241 = arith.mulf %240, %238 : vector<8x512xf32>
    %c120_205 = arith.constant 120 : index
    %c0_206 = arith.constant 0 : index
    %242 = vector.load %arg14[%c120_205, %c0_206] : memref<216x512xf32, #tpu.memory_space<vmem>>, vector<8x512xf32>
    tpu.vector_store %arg14[%c120_205, %c0_206], %241 {strides = array<i32>} : memref<216x512xf32, #tpu.memory_space<vmem>>, vector<8x512xf32>,
    %c504_i32_207 = arith.constant 504 : i32
    %243 = tpu.dynamic_rotate %166 by %c504_i32_207 dim 1 : vector<8x512xf32>, i32 -> vector<8x512xf32>
    %c16_208 = arith.constant 16 : index
    %c0_209 = arith.constant 0 : index
    %c0_210 = arith.constant 0 : index
    %244 = vector.load %arg7[%c16_208, %c0_209, %c0_210] : memref<27x8x512xf32, #tpu.memory_space<vmem>>, vector<1x8x512xf32>
    %245 = vector.shape_cast %244 : vector<1x8x512xf32> to vector<8x512xf32>
    %246 = arith.mulf %245, %243 : vector<8x512xf32>
    %c128_211 = arith.constant 128 : index
    %c0_212 = arith.constant 0 : index
    %247 = vector.load %arg14[%c128_211, %c0_212] : memref<216x512xf32, #tpu.memory_space<vmem>>, vector<8x512xf32>
    tpu.vector_store %arg14[%c128_211, %c0_212], %246 {strides = array<i32>} : memref<216x512xf32, #tpu.memory_space<vmem>>, vector<8x512xf32>,
    %c503_i32_213 = arith.constant 503 : i32
    %248 = tpu.dynamic_rotate %166 by %c503_i32_213 dim 1 : vector<8x512xf32>, i32 -> vector<8x512xf32>
    %c17_214 = arith.constant 17 : index
    %c0_215 = arith.constant 0 : index
    %c0_216 = arith.constant 0 : index
    %249 = vector.load %arg7[%c17_214, %c0_215, %c0_216] : memref<27x8x512xf32, #tpu.memory_space<vmem>>, vector<1x8x512xf32>
    %250 = vector.shape_cast %249 : vector<1x8x512xf32> to vector<8x512xf32>
    %251 = arith.mulf %250, %248 : vector<8x512xf32>
    %c136_217 = arith.constant 136 : index
    %c0_218 = arith.constant 0 : index
    %252 = vector.load %arg14[%c136_217, %c0_218] : memref<216x512xf32, #tpu.memory_space<vmem>>, vector<8x512xf32>
    tpu.vector_store %arg14[%c136_217, %c0_218], %251 {strides = array<i32>} : memref<216x512xf32, #tpu.memory_space<vmem>>, vector<8x512xf32>,
    %c457_i32_219 = arith.constant 457 : i32
    %253 = tpu.dynamic_rotate %166 by %c457_i32_219 dim 1 : vector<8x512xf32>, i32 -> vector<8x512xf32>
    %c18_220 = arith.constant 18 : index
    %c0_221 = arith.constant 0 : index
    %c0_222 = arith.constant 0 : index
    %254 = vector.load %arg7[%c18_220, %c0_221, %c0_222] : memref<27x8x512xf32, #tpu.memory_space<vmem>>, vector<1x8x512xf32>
    %255 = vector.shape_cast %254 : vector<1x8x512xf32> to vector<8x512xf32>
    %256 = arith.mulf %255, %253 : vector<8x512xf32>
    %c144_223 = arith.constant 144 : index
    %c0_224 = arith.constant 0 : index
    %257 = vector.load %arg14[%c144_223, %c0_224] : memref<216x512xf32, #tpu.memory_space<vmem>>, vector<8x512xf32>
    tpu.vector_store %arg14[%c144_223, %c0_224], %256 {strides = array<i32>} : memref<216x512xf32, #tpu.memory_space<vmem>>, vector<8x512xf32>,
    %c456_i32_225 = arith.constant 456 : i32
    %258 = tpu.dynamic_rotate %166 by %c456_i32_225 dim 1 : vector<8x512xf32>, i32 -> vector<8x512xf32>
    %c19_226 = arith.constant 19 : index
    %c0_227 = arith.constant 0 : index
    %c0_228 = arith.constant 0 : index
    %259 = vector.load %arg7[%c19_226, %c0_227, %c0_228] : memref<27x8x512xf32, #tpu.memory_space<vmem>>, vector<1x8x512xf32>
    %260 = vector.shape_cast %259 : vector<1x8x512xf32> to vector<8x512xf32>
    %261 = arith.mulf %260, %258 : vector<8x512xf32>
    %c152_229 = arith.constant 152 : index
    %c0_230 = arith.constant 0 : index
    %262 = vector.load %arg14[%c152_229, %c0_230] : memref<216x512xf32, #tpu.memory_space<vmem>>, vector<8x512xf32>
    tpu.vector_store %arg14[%c152_229, %c0_230], %261 {strides = array<i32>} : memref<216x512xf32, #tpu.memory_space<vmem>>, vector<8x512xf32>,
    %c455_i32_231 = arith.constant 455 : i32
    %263 = tpu.dynamic_rotate %166 by %c455_i32_231 dim 1 : vector<8x512xf32>, i32 -> vector<8x512xf32>
    %c20_232 = arith.constant 20 : index
    %c0_233 = arith.constant 0 : index
    %c0_234 = arith.constant 0 : index
    %264 = vector.load %arg7[%c20_232, %c0_233, %c0_234] : memref<27x8x512xf32, #tpu.memory_space<vmem>>, vector<1x8x512xf32>
    %265 = vector.shape_cast %264 : vector<1x8x512xf32> to vector<8x512xf32>
    %266 = arith.mulf %265, %263 : vector<8x512xf32>
    %c160_235 = arith.constant 160 : index
    %c0_236 = arith.constant 0 : index
    %267 = vector.load %arg14[%c160_235, %c0_236] : memref<216x512xf32, #tpu.memory_space<vmem>>, vector<8x512xf32>
    tpu.vector_store %arg14[%c160_235, %c0_236], %266 {strides = array<i32>} : memref<216x512xf32, #tpu.memory_space<vmem>>, vector<8x512xf32>,
    %c449_i32_237 = arith.constant 449 : i32
    %268 = tpu.dynamic_rotate %166 by %c449_i32_237 dim 1 : vector<8x512xf32>, i32 -> vector<8x512xf32>
    %c21_238 = arith.constant 21 : index
    %c0_239 = arith.constant 0 : index
    %c0_240 = arith.constant 0 : index
    %269 = vector.load %arg7[%c21_238, %c0_239, %c0_240] : memref<27x8x512xf32, #tpu.memory_space<vmem>>, vector<1x8x512xf32>
    %270 = vector.shape_cast %269 : vector<1x8x512xf32> to vector<8x512xf32>
    %271 = arith.mulf %270, %268 : vector<8x512xf32>
    %c168_241 = arith.constant 168 : index
    %c0_242 = arith.constant 0 : index
    %272 = vector.load %arg14[%c168_241, %c0_242] : memref<216x512xf32, #tpu.memory_space<vmem>>, vector<8x512xf32>
    tpu.vector_store %arg14[%c168_241, %c0_242], %271 {strides = array<i32>} : memref<216x512xf32, #tpu.memory_space<vmem>>, vector<8x512xf32>,
    %c448_i32_243 = arith.constant 448 : i32
    %273 = tpu.dynamic_rotate %166 by %c448_i32_243 dim 1 : vector<8x512xf32>, i32 -> vector<8x512xf32>
    %c22_244 = arith.constant 22 : index
    %c0_245 = arith.constant 0 : index
    %c0_246 = arith.constant 0 : index
    %274 = vector.load %arg7[%c22_244, %c0_245, %c0_246] : memref<27x8x512xf32, #tpu.memory_space<vmem>>, vector<1x8x512xf32>
    %275 = vector.shape_cast %274 : vector<1x8x512xf32> to vector<8x512xf32>
    %276 = arith.mulf %275, %273 : vector<8x512xf32>
    %c176_247 = arith.constant 176 : index
    %c0_248 = arith.constant 0 : index
    %277 = vector.load %arg14[%c176_247, %c0_248] : memref<216x512xf32, #tpu.memory_space<vmem>>, vector<8x512xf32>
    tpu.vector_store %arg14[%c176_247, %c0_248], %276 {strides = array<i32>} : memref<216x512xf32, #tpu.memory_space<vmem>>, vector<8x512xf32>,
    %c447_i32_249 = arith.constant 447 : i32
    %278 = tpu.dynamic_rotate %166 by %c447_i32_249 dim 1 : vector<8x512xf32>, i32 -> vector<8x512xf32>
    %c23_250 = arith.constant 23 : index
    %c0_251 = arith.constant 0 : index
    %c0_252 = arith.constant 0 : index
    %279 = vector.load %arg7[%c23_250, %c0_251, %c0_252] : memref<27x8x512xf32, #tpu.memory_space<vmem>>, vector<1x8x512xf32>
    %280 = vector.shape_cast %279 : vector<1x8x512xf32> to vector<8x512xf32>
    %281 = arith.mulf %280, %278 : vector<8x512xf32>
    %c184_253 = arith.constant 184 : index
    %c0_254 = arith.constant 0 : index
    %282 = vector.load %arg14[%c184_253, %c0_254] : memref<216x512xf32, #tpu.memory_space<vmem>>, vector<8x512xf32>
    tpu.vector_store %arg14[%c184_253, %c0_254], %281 {strides = array<i32>} : memref<216x512xf32, #tpu.memory_space<vmem>>, vector<8x512xf32>,
    %c441_i32_255 = arith.constant 441 : i32
    %283 = tpu.dynamic_rotate %166 by %c441_i32_255 dim 1 : vector<8x512xf32>, i32 -> vector<8x512xf32>
    %c24_256 = arith.constant 24 : index
    %c0_257 = arith.constant 0 : index
    %c0_258 = arith.constant 0 : index
    %284 = vector.load %arg7[%c24_256, %c0_257, %c0_258] : memref<27x8x512xf32, #tpu.memory_space<vmem>>, vector<1x8x512xf32>
    %285 = vector.shape_cast %284 : vector<1x8x512xf32> to vector<8x512xf32>
    %286 = arith.mulf %285, %283 : vector<8x512xf32>
    %c192_259 = arith.constant 192 : index
    %c0_260 = arith.constant 0 : index
    %287 = vector.load %arg14[%c192_259, %c0_260] : memref<216x512xf32, #tpu.memory_space<vmem>>, vector<8x512xf32>
    tpu.vector_store %arg14[%c192_259, %c0_260], %286 {strides = array<i32>} : memref<216x512xf32, #tpu.memory_space<vmem>>, vector<8x512xf32>,
    %c440_i32_261 = arith.constant 440 : i32
    %288 = tpu.dynamic_rotate %166 by %c440_i32_261 dim 1 : vector<8x512xf32>, i32 -> vector<8x512xf32>
    %c25_262 = arith.constant 25 : index
    %c0_263 = arith.constant 0 : index
    %c0_264 = arith.constant 0 : index
    %289 = vector.load %arg7[%c25_262, %c0_263, %c0_264] : memref<27x8x512xf32, #tpu.memory_space<vmem>>, vector<1x8x512xf32>
    %290 = vector.shape_cast %289 : vector<1x8x512xf32> to vector<8x512xf32>
    %291 = arith.mulf %290, %288 : vector<8x512xf32>
    %c200_265 = arith.constant 200 : index
    %c0_266 = arith.constant 0 : index
    %292 = vector.load %arg14[%c200_265, %c0_266] : memref<216x512xf32, #tpu.memory_space<vmem>>, vector<8x512xf32>
    tpu.vector_store %arg14[%c200_265, %c0_266], %291 {strides = array<i32>} : memref<216x512xf32, #tpu.memory_space<vmem>>, vector<8x512xf32>,
    %c439_i32_267 = arith.constant 439 : i32
    %293 = tpu.dynamic_rotate %166 by %c439_i32_267 dim 1 : vector<8x512xf32>, i32 -> vector<8x512xf32>
    %c26_268 = arith.constant 26 : index
    %c0_269 = arith.constant 0 : index
    %c0_270 = arith.constant 0 : index
    %294 = vector.load %arg7[%c26_268, %c0_269, %c0_270] : memref<27x8x512xf32, #tpu.memory_space<vmem>>, vector<1x8x512xf32>
    %295 = vector.shape_cast %294 : vector<1x8x512xf32> to vector<8x512xf32>
    %296 = arith.mulf %295, %293 : vector<8x512xf32>
    %c208_271 = arith.constant 208 : index
    %c0_272 = arith.constant 0 : index
    %297 = vector.load %arg14[%c208_271, %c0_272] : memref<216x512xf32, #tpu.memory_space<vmem>>, vector<8x512xf32>
    tpu.vector_store %arg14[%c208_271, %c0_272], %296 {strides = array<i32>} : memref<216x512xf32, #tpu.memory_space<vmem>>, vector<8x512xf32>,
    %c0_273 = arith.constant 0 : index
    %c0_274 = arith.constant 0 : index
    %298 = vector.load %arg10[%c0_273, %c0_274] : memref<8x216xf32, #tpu.memory_space<vmem>>, vector<8x216xf32>
    %c0_275 = arith.constant 0 : index
    %c0_276 = arith.constant 0 : index
    %299 = vector.load %arg14[%c0_275, %c0_276] : memref<216x512xf32, #tpu.memory_space<vmem>>, vector<216x512xf32>
    %cst_277 = arith.constant dense<0.000000e+00> : vector<8x512xf32>
    %300 = tpu.matmul %298, %299, %cst_277 {dimension_numbers = #tpu.dot_dimension_numbers<[1], [0], [0], [1], [0, 0, 1, 1], [], []>} : vector<8x216xf32>, vector<216x512xf32>, vector<8x512xf32> -> vector<8x512xf32>
    %c0_278 = arith.constant 0 : index
    %c0_279 = arith.constant 0 : index
    %301 = vector.load %arg11[%c0_278, %c0_279] : memref<8x1xf32, #tpu.memory_space<vmem>>, vector<8x1xf32>
    %302 = vector.broadcast %301 : vector<8x1xf32> to vector<8x512xf32>
    %303 = arith.addf %300, %302 : vector<8x512xf32>
    %304 = vector.extract_strided_slice %303 {offsets = [0, 0], sizes = [1, 128], strides = [1, 1]} : vector<8x512xf32> to vector<1x128xf32>
    %c0_280 = arith.constant 0 : index
    %c0_281 = arith.constant 0 : index
    %305 = vector.load %arg15[%c0_280, %c0_281] : memref<32x128xf32, #tpu.memory_space<vmem>>, vector<1x128xf32>
    tpu.vector_store %arg15[%c0_280, %c0_281], %304 {strides = array<i32>} : memref<32x128xf32, #tpu.memory_space<vmem>>, vector<1x128xf32>,
    %306 = vector.extract_strided_slice %303 {offsets = [0, 128], sizes = [1, 128], strides = [1, 1]} : vector<8x512xf32> to vector<1x128xf32>
    %c1_282 = arith.constant 1 : index
    %c0_283 = arith.constant 0 : index
    %307 = vector.load %arg15[%c1_282, %c0_283] : memref<32x128xf32, #tpu.memory_space<vmem>>, vector<1x128xf32>
    tpu.vector_store %arg15[%c1_282, %c0_283], %306 {strides = array<i32>} : memref<32x128xf32, #tpu.memory_space<vmem>>, vector<1x128xf32>,
    %308 = vector.extract_strided_slice %303 {offsets = [0, 256], sizes = [1, 128], strides = [1, 1]} : vector<8x512xf32> to vector<1x128xf32>
    %c2_284 = arith.constant 2 : index
    %c0_285 = arith.constant 0 : index
    %309 = vector.load %arg15[%c2_284, %c0_285] : memref<32x128xf32, #tpu.memory_space<vmem>>, vector<1x128xf32>
    tpu.vector_store %arg15[%c2_284, %c0_285], %308 {strides = array<i32>} : memref<32x128xf32, #tpu.memory_space<vmem>>, vector<1x128xf32>,
    %310 = vector.extract_strided_slice %303 {offsets = [0, 384], sizes = [1, 128], strides = [1, 1]} : vector<8x512xf32> to vector<1x128xf32>
    %c3_286 = arith.constant 3 : index
    %c0_287 = arith.constant 0 : index
    %311 = vector.load %arg15[%c3_286, %c0_287] : memref<32x128xf32, #tpu.memory_space<vmem>>, vector<1x128xf32>
    tpu.vector_store %arg15[%c3_286, %c0_287], %310 {strides = array<i32>} : memref<32x128xf32, #tpu.memory_space<vmem>>, vector<1x128xf32>,
    %312 = vector.extract_strided_slice %303 {offsets = [1, 0], sizes = [1, 128], strides = [1, 1]} : vector<8x512xf32> to vector<1x128xf32>
    %c4_288 = arith.constant 4 : index
    %c0_289 = arith.constant 0 : index
    %313 = vector.load %arg15[%c4_288, %c0_289] : memref<32x128xf32, #tpu.memory_space<vmem>>, vector<1x128xf32>
    tpu.vector_store %arg15[%c4_288, %c0_289], %312 {strides = array<i32>} : memref<32x128xf32, #tpu.memory_space<vmem>>, vector<1x128xf32>,
    %314 = vector.extract_strided_slice %303 {offsets = [1, 128], sizes = [1, 128], strides = [1, 1]} : vector<8x512xf32> to vector<1x128xf32>
    %c5_290 = arith.constant 5 : index
    %c0_291 = arith.constant 0 : index
    %315 = vector.load %arg15[%c5_290, %c0_291] : memref<32x128xf32, #tpu.memory_space<vmem>>, vector<1x128xf32>
    tpu.vector_store %arg15[%c5_290, %c0_291], %314 {strides = array<i32>} : memref<32x128xf32, #tpu.memory_space<vmem>>, vector<1x128xf32>,
    %316 = vector.extract_strided_slice %303 {offsets = [1, 256], sizes = [1, 128], strides = [1, 1]} : vector<8x512xf32> to vector<1x128xf32>
    %c6_292 = arith.constant 6 : index
    %c0_293 = arith.constant 0 : index
    %317 = vector.load %arg15[%c6_292, %c0_293] : memref<32x128xf32, #tpu.memory_space<vmem>>, vector<1x128xf32>
    tpu.vector_store %arg15[%c6_292, %c0_293], %316 {strides = array<i32>} : memref<32x128xf32, #tpu.memory_space<vmem>>, vector<1x128xf32>,
    %318 = vector.extract_strided_slice %303 {offsets = [1, 384], sizes = [1, 128], strides = [1, 1]} : vector<8x512xf32> to vector<1x128xf32>
    %c7_294 = arith.constant 7 : index
    %c0_295 = arith.constant 0 : index
    %319 = vector.load %arg15[%c7_294, %c0_295] : memref<32x128xf32, #tpu.memory_space<vmem>>, vector<1x128xf32>
    tpu.vector_store %arg15[%c7_294, %c0_295], %318 {strides = array<i32>} : memref<32x128xf32, #tpu.memory_space<vmem>>, vector<1x128xf32>,
    %320 = vector.extract_strided_slice %303 {offsets = [2, 0], sizes = [1, 128], strides = [1, 1]} : vector<8x512xf32> to vector<1x128xf32>
    %c8_296 = arith.constant 8 : index
    %c0_297 = arith.constant 0 : index
    %321 = vector.load %arg15[%c8_296, %c0_297] : memref<32x128xf32, #tpu.memory_space<vmem>>, vector<1x128xf32>
    tpu.vector_store %arg15[%c8_296, %c0_297], %320 {strides = array<i32>} : memref<32x128xf32, #tpu.memory_space<vmem>>, vector<1x128xf32>,
    %322 = vector.extract_strided_slice %303 {offsets = [2, 128], sizes = [1, 128], strides = [1, 1]} : vector<8x512xf32> to vector<1x128xf32>
    %c9_298 = arith.constant 9 : index
    %c0_299 = arith.constant 0 : index
    %323 = vector.load %arg15[%c9_298, %c0_299] : memref<32x128xf32, #tpu.memory_space<vmem>>, vector<1x128xf32>
    tpu.vector_store %arg15[%c9_298, %c0_299], %322 {strides = array<i32>} : memref<32x128xf32, #tpu.memory_space<vmem>>, vector<1x128xf32>,
    %324 = vector.extract_strided_slice %303 {offsets = [2, 256], sizes = [1, 128], strides = [1, 1]} : vector<8x512xf32> to vector<1x128xf32>
    %c10_300 = arith.constant 10 : index
    %c0_301 = arith.constant 0 : index
    %325 = vector.load %arg15[%c10_300, %c0_301] : memref<32x128xf32, #tpu.memory_space<vmem>>, vector<1x128xf32>
    tpu.vector_store %arg15[%c10_300, %c0_301], %324 {strides = array<i32>} : memref<32x128xf32, #tpu.memory_space<vmem>>, vector<1x128xf32>,
    %326 = vector.extract_strided_slice %303 {offsets = [2, 384], sizes = [1, 128], strides = [1, 1]} : vector<8x512xf32> to vector<1x128xf32>
    %c11_302 = arith.constant 11 : index
    %c0_303 = arith.constant 0 : index
    %327 = vector.load %arg15[%c11_302, %c0_303] : memref<32x128xf32, #tpu.memory_space<vmem>>, vector<1x128xf32>
    tpu.vector_store %arg15[%c11_302, %c0_303], %326 {strides = array<i32>} : memref<32x128xf32, #tpu.memory_space<vmem>>, vector<1x128xf32>,
    %328 = vector.extract_strided_slice %303 {offsets = [3, 0], sizes = [1, 128], strides = [1, 1]} : vector<8x512xf32> to vector<1x128xf32>
    %c12_304 = arith.constant 12 : index
    %c0_305 = arith.constant 0 : index
    %329 = vector.load %arg15[%c12_304, %c0_305] : memref<32x128xf32, #tpu.memory_space<vmem>>, vector<1x128xf32>
    tpu.vector_store %arg15[%c12_304, %c0_305], %328 {strides = array<i32>} : memref<32x128xf32, #tpu.memory_space<vmem>>, vector<1x128xf32>,
    %330 = vector.extract_strided_slice %303 {offsets = [3, 128], sizes = [1, 128], strides = [1, 1]} : vector<8x512xf32> to vector<1x128xf32>
    %c13 = arith.constant 13 : index
    %c0_306 = arith.constant 0 : index
    %331 = vector.load %arg15[%c13, %c0_306] : memref<32x128xf32, #tpu.memory_space<vmem>>, vector<1x128xf32>
    tpu.vector_store %arg15[%c13, %c0_306], %330 {strides = array<i32>} : memref<32x128xf32, #tpu.memory_space<vmem>>, vector<1x128xf32>,
    %332 = vector.extract_strided_slice %303 {offsets = [3, 256], sizes = [1, 128], strides = [1, 1]} : vector<8x512xf32> to vector<1x128xf32>
    %c14_307 = arith.constant 14 : index
    %c0_308 = arith.constant 0 : index
    %333 = vector.load %arg15[%c14_307, %c0_308] : memref<32x128xf32, #tpu.memory_space<vmem>>, vector<1x128xf32>
    tpu.vector_store %arg15[%c14_307, %c0_308], %332 {strides = array<i32>} : memref<32x128xf32, #tpu.memory_space<vmem>>, vector<1x128xf32>,
    %334 = vector.extract_strided_slice %303 {offsets = [3, 384], sizes = [1, 128], strides = [1, 1]} : vector<8x512xf32> to vector<1x128xf32>
    %c15_309 = arith.constant 15 : index
    %c0_310 = arith.constant 0 : index
    %335 = vector.load %arg15[%c15_309, %c0_310] : memref<32x128xf32, #tpu.memory_space<vmem>>, vector<1x128xf32>
    tpu.vector_store %arg15[%c15_309, %c0_310], %334 {strides = array<i32>} : memref<32x128xf32, #tpu.memory_space<vmem>>, vector<1x128xf32>,
    %336 = vector.extract_strided_slice %303 {offsets = [4, 0], sizes = [1, 128], strides = [1, 1]} : vector<8x512xf32> to vector<1x128xf32>
    %c16_311 = arith.constant 16 : index
    %c0_312 = arith.constant 0 : index
    %337 = vector.load %arg15[%c16_311, %c0_312] : memref<32x128xf32, #tpu.memory_space<vmem>>, vector<1x128xf32>
    tpu.vector_store %arg15[%c16_311, %c0_312], %336 {strides = array<i32>} : memref<32x128xf32, #tpu.memory_space<vmem>>, vector<1x128xf32>,
    %338 = vector.extract_strided_slice %303 {offsets = [4, 128], sizes = [1, 128], strides = [1, 1]} : vector<8x512xf32> to vector<1x128xf32>
    %c17_313 = arith.constant 17 : index
    %c0_314 = arith.constant 0 : index
    %339 = vector.load %arg15[%c17_313, %c0_314] : memref<32x128xf32, #tpu.memory_space<vmem>>, vector<1x128xf32>
    tpu.vector_store %arg15[%c17_313, %c0_314], %338 {strides = array<i32>} : memref<32x128xf32, #tpu.memory_space<vmem>>, vector<1x128xf32>,
    %340 = vector.extract_strided_slice %303 {offsets = [4, 256], sizes = [1, 128], strides = [1, 1]} : vector<8x512xf32> to vector<1x128xf32>
    %c18_315 = arith.constant 18 : index
    %c0_316 = arith.constant 0 : index
    %341 = vector.load %arg15[%c18_315, %c0_316] : memref<32x128xf32, #tpu.memory_space<vmem>>, vector<1x128xf32>
    tpu.vector_store %arg15[%c18_315, %c0_316], %340 {strides = array<i32>} : memref<32x128xf32, #tpu.memory_space<vmem>>, vector<1x128xf32>,
    %342 = vector.extract_strided_slice %303 {offsets = [4, 384], sizes = [1, 128], strides = [1, 1]} : vector<8x512xf32> to vector<1x128xf32>
    %c19_317 = arith.constant 19 : index
    %c0_318 = arith.constant 0 : index
    %343 = vector.load %arg15[%c19_317, %c0_318] : memref<32x128xf32, #tpu.memory_space<vmem>>, vector<1x128xf32>
    tpu.vector_store %arg15[%c19_317, %c0_318], %342 {strides = array<i32>} : memref<32x128xf32, #tpu.memory_space<vmem>>, vector<1x128xf32>,
    %344 = vector.extract_strided_slice %303 {offsets = [5, 0], sizes = [1, 128], strides = [1, 1]} : vector<8x512xf32> to vector<1x128xf32>
    %c20_319 = arith.constant 20 : index
    %c0_320 = arith.constant 0 : index
    %345 = vector.load %arg15[%c20_319, %c0_320] : memref<32x128xf32, #tpu.memory_space<vmem>>, vector<1x128xf32>
    tpu.vector_store %arg15[%c20_319, %c0_320], %344 {strides = array<i32>} : memref<32x128xf32, #tpu.memory_space<vmem>>, vector<1x128xf32>,
    %346 = vector.extract_strided_slice %303 {offsets = [5, 128], sizes = [1, 128], strides = [1, 1]} : vector<8x512xf32> to vector<1x128xf32>
    %c21_321 = arith.constant 21 : index
    %c0_322 = arith.constant 0 : index
    %347 = vector.load %arg15[%c21_321, %c0_322] : memref<32x128xf32, #tpu.memory_space<vmem>>, vector<1x128xf32>
    tpu.vector_store %arg15[%c21_321, %c0_322], %346 {strides = array<i32>} : memref<32x128xf32, #tpu.memory_space<vmem>>, vector<1x128xf32>,
    %348 = vector.extract_strided_slice %303 {offsets = [5, 256], sizes = [1, 128], strides = [1, 1]} : vector<8x512xf32> to vector<1x128xf32>
    %c22_323 = arith.constant 22 : index
    %c0_324 = arith.constant 0 : index
    %349 = vector.load %arg15[%c22_323, %c0_324] : memref<32x128xf32, #tpu.memory_space<vmem>>, vector<1x128xf32>
    tpu.vector_store %arg15[%c22_323, %c0_324], %348 {strides = array<i32>} : memref<32x128xf32, #tpu.memory_space<vmem>>, vector<1x128xf32>,
    %350 = vector.extract_strided_slice %303 {offsets = [5, 384], sizes = [1, 128], strides = [1, 1]} : vector<8x512xf32> to vector<1x128xf32>
    %c23_325 = arith.constant 23 : index
    %c0_326 = arith.constant 0 : index
    %351 = vector.load %arg15[%c23_325, %c0_326] : memref<32x128xf32, #tpu.memory_space<vmem>>, vector<1x128xf32>
    tpu.vector_store %arg15[%c23_325, %c0_326], %350 {strides = array<i32>} : memref<32x128xf32, #tpu.memory_space<vmem>>, vector<1x128xf32>,
    %352 = vector.extract_strided_slice %303 {offsets = [6, 0], sizes = [1, 128], strides = [1, 1]} : vector<8x512xf32> to vector<1x128xf32>
    %c24_327 = arith.constant 24 : index
    %c0_328 = arith.constant 0 : index
    %353 = vector.load %arg15[%c24_327, %c0_328] : memref<32x128xf32, #tpu.memory_space<vmem>>, vector<1x128xf32>
    tpu.vector_store %arg15[%c24_327, %c0_328], %352 {strides = array<i32>} : memref<32x128xf32, #tpu.memory_space<vmem>>, vector<1x128xf32>,
    %354 = vector.extract_strided_slice %303 {offsets = [6, 128], sizes = [1, 128], strides = [1, 1]} : vector<8x512xf32> to vector<1x128xf32>
    %c25_329 = arith.constant 25 : index
    %c0_330 = arith.constant 0 : index
    %355 = vector.load %arg15[%c25_329, %c0_330] : memref<32x128xf32, #tpu.memory_space<vmem>>, vector<1x128xf32>
    tpu.vector_store %arg15[%c25_329, %c0_330], %354 {strides = array<i32>} : memref<32x128xf32, #tpu.memory_space<vmem>>, vector<1x128xf32>,
    %356 = vector.extract_strided_slice %303 {offsets = [6, 256], sizes = [1, 128], strides = [1, 1]} : vector<8x512xf32> to vector<1x128xf32>
    %c26_331 = arith.constant 26 : index
    %c0_332 = arith.constant 0 : index
    %357 = vector.load %arg15[%c26_331, %c0_332] : memref<32x128xf32, #tpu.memory_space<vmem>>, vector<1x128xf32>
    tpu.vector_store %arg15[%c26_331, %c0_332], %356 {strides = array<i32>} : memref<32x128xf32, #tpu.memory_space<vmem>>, vector<1x128xf32>,
    %358 = vector.extract_strided_slice %303 {offsets = [6, 384], sizes = [1, 128], strides = [1, 1]} : vector<8x512xf32> to vector<1x128xf32>
    %c27 = arith.constant 27 : index
    %c0_333 = arith.constant 0 : index
    %359 = vector.load %arg15[%c27, %c0_333] : memref<32x128xf32, #tpu.memory_space<vmem>>, vector<1x128xf32>
    tpu.vector_store %arg15[%c27, %c0_333], %358 {strides = array<i32>} : memref<32x128xf32, #tpu.memory_space<vmem>>, vector<1x128xf32>,
    %360 = vector.extract_strided_slice %303 {offsets = [7, 0], sizes = [1, 128], strides = [1, 1]} : vector<8x512xf32> to vector<1x128xf32>
    %c28 = arith.constant 28 : index
    %c0_334 = arith.constant 0 : index
    %361 = vector.load %arg15[%c28, %c0_334] : memref<32x128xf32, #tpu.memory_space<vmem>>, vector<1x128xf32>
    tpu.vector_store %arg15[%c28, %c0_334], %360 {strides = array<i32>} : memref<32x128xf32, #tpu.memory_space<vmem>>, vector<1x128xf32>,
    %362 = vector.extract_strided_slice %303 {offsets = [7, 128], sizes = [1, 128], strides = [1, 1]} : vector<8x512xf32> to vector<1x128xf32>
    %c29 = arith.constant 29 : index
    %c0_335 = arith.constant 0 : index
    %363 = vector.load %arg15[%c29, %c0_335] : memref<32x128xf32, #tpu.memory_space<vmem>>, vector<1x128xf32>
    tpu.vector_store %arg15[%c29, %c0_335], %362 {strides = array<i32>} : memref<32x128xf32, #tpu.memory_space<vmem>>, vector<1x128xf32>,
    %364 = vector.extract_strided_slice %303 {offsets = [7, 256], sizes = [1, 128], strides = [1, 1]} : vector<8x512xf32> to vector<1x128xf32>
    %c30 = arith.constant 30 : index
    %c0_336 = arith.constant 0 : index
    %365 = vector.load %arg15[%c30, %c0_336] : memref<32x128xf32, #tpu.memory_space<vmem>>, vector<1x128xf32>
    tpu.vector_store %arg15[%c30, %c0_336], %364 {strides = array<i32>} : memref<32x128xf32, #tpu.memory_space<vmem>>, vector<1x128xf32>,
    %366 = vector.extract_strided_slice %303 {offsets = [7, 384], sizes = [1, 128], strides = [1, 1]} : vector<8x512xf32> to vector<1x128xf32>
    %c31 = arith.constant 31 : index
    %c0_337 = arith.constant 0 : index
    %367 = vector.load %arg15[%c31, %c0_337] : memref<32x128xf32, #tpu.memory_space<vmem>>, vector<1x128xf32>
    tpu.vector_store %arg15[%c31, %c0_337], %366 {strides = array<i32>} : memref<32x128xf32, #tpu.memory_space<vmem>>, vector<1x128xf32>,
    %c0_338 = arith.constant 0 : index
    %c0_339 = arith.constant 0 : index
    %368 = vector.load %arg15[%c0_338, %c0_339] : memref<32x128xf32, #tpu.memory_space<vmem>>, vector<32x128xf32>
    %369 = arith.addf %21, %368 : vector<32x128xf32>
    %c0_340 = arith.constant 0 : index
    %c0_341 = arith.constant 0 : index
    %c0_342 = arith.constant 0 : index
    %370 = vector.load %arg12[%c0_340, %c0_341, %c0_342] : memref<1x32x128xf32, #tpu.memory_space<vmem>>, vector<1x32x128xf32>
    %371 = vector.shape_cast %370 : vector<1x32x128xf32> to vector<32x128xf32>
    %372 = vector.shape_cast %369 : vector<32x128xf32> to vector<1x32x128xf32>
    tpu.vector_store %arg12[%c0_340, %c0_341, %c0_342], %372 {strides = array<i32>} : memref<1x32x128xf32, #tpu.memory_space<vmem>>, vector<1x32x128xf32>,
    return
  }
  func.func @transform_0(%arg0: i32) -> (i32, i32, i32) {
    %c0_i32 = arith.constant 0 : i32
    %c0_i32_0 = arith.constant 0 : i32
    %c0_i32_1 = arith.constant 0 : i32
    return %arg0, %c0_i32, %c0_i32_0 : i32, i32, i32
  }
  func.func @transform_1(%arg0: i32) -> (i32, i32, i32) {
    %c0_i32 = arith.constant 0 : i32
    %c0_i32_0 = arith.constant 0 : i32
    %c0_i32_1 = arith.constant 0 : i32
    return %arg0, %c0_i32, %c0_i32_0 : i32, i32, i32
  }
  func.func @transform_2(%arg0: i32) -> (i32, i32) {
    %c0_i32 = arith.constant 0 : i32
    %c0_i32_0 = arith.constant 0 : i32
    %c0_i32_1 = arith.constant 0 : i32
    return %c0_i32, %c0_i32_0 : i32, i32
  }
  func.func @transform_3(%arg0: i32) -> (i32, i32) {
    %c0_i32 = arith.constant 0 : i32
    %c0_i32_0 = arith.constant 0 : i32
    %c0_i32_1 = arith.constant 0 : i32
    return %c0_i32, %c0_i32_0 : i32, i32
  }
  func.func @transform_4(%arg0: i32) -> (i32, i32) {
    %c0_i32 = arith.constant 0 : i32
    %c0_i32_0 = arith.constant 0 : i32
    %c0_i32_1 = arith.constant 0 : i32
    return %c0_i32, %c0_i32_0 : i32, i32
  }
  func.func @transform_5(%arg0: i32) -> (i32, i32) {
    %c0_i32 = arith.constant 0 : i32
    %c0_i32_0 = arith.constant 0 : i32
    %c0_i32_1 = arith.constant 0 : i32
    return %c0_i32, %c0_i32_0 : i32, i32
  }
  func.func @transform_6(%arg0: i32) -> (i32, i32, i32) {
    %c0_i32 = arith.constant 0 : i32
    %c0_i32_0 = arith.constant 0 : i32
    %c0_i32_1 = arith.constant 0 : i32
    %c0_i32_2 = arith.constant 0 : i32
    return %c0_i32, %c0_i32_0, %c0_i32_1 : i32, i32, i32
  }
  func.func @transform_7(%arg0: i32) -> (i32, i32) {
    %c0_i32 = arith.constant 0 : i32
    %c0_i32_0 = arith.constant 0 : i32
    %c0_i32_1 = arith.constant 0 : i32
    return %c0_i32, %c0_i32_0 : i32, i32
  }
  func.func @transform_8(%arg0: i32) -> (i32, i32) {
    %c0_i32 = arith.constant 0 : i32
    %c0_i32_0 = arith.constant 0 : i32
    %c0_i32_1 = arith.constant 0 : i32
    return %c0_i32, %c0_i32_0 : i32, i32
  }
  func.func @transform_9(%arg0: i32) -> (i32, i32) {
    %c0_i32 = arith.constant 0 : i32
    %c0_i32_0 = arith.constant 0 : i32
    %c0_i32_1 = arith.constant 0 : i32
    return %c0_i32, %c0_i32_0 : i32, i32
  }
  func.func @transform_10(%arg0: i32) -> (i32, i32) {
    %c0_i32 = arith.constant 0 : i32
    %c0_i32_0 = arith.constant 0 : i32
    %c0_i32_1 = arith.constant 0 : i32
    return %c0_i32, %c0_i32_0 : i32, i32
  }
  func.func @transform_11(%arg0: i32) -> (i32, i32, i32) {
    %c0_i32 = arith.constant 0 : i32
    %c0_i32_0 = arith.constant 0 : i32
    %c0_i32_1 = arith.constant 0 : i32
    return %arg0, %c0_i32, %c0_i32_0 : i32, i32, i32
  }
}

</mosaic_0001>

<bundles_post_ra>
// kernel: le_feedforward.1
= control target key start
LH: loop header
LB: loop body
LE: loop exit
PB: predicated region body
PF: predicated region fallthrough
CT: control target
= control target key end

     0   :  { %s3596_s17 = smov 0   ;;  %s5940_s0 = inlined_call_operand.vmem [shape: f32[2,512,8], index: 0, kind: input, shape index: {}]   ;;  %s5941_s1 = inlined_call_operand.vmem [shape: f32[2,32,128], index: 1, kind: input, shape index: {}]   ;;  %s5942_s2 = inlined_call_operand.vmem [shape: f32[128,512], index: 2, kind: input, shape index: {}]   ;;  %s5943_s3 = inlined_call_operand.vmem [shape: f32[1,512], index: 3, kind: input, shape index: {}]   ;;  %s5944_s4 = inlined_call_operand.vmem [shape: f32[512,128], index: 4, kind: input, shape index: {}]   ;;  %s5945_s5 = inlined_call_operand.vmem [shape: f32[1,128], index: 5, kind: input, shape index: {}]   ;;  %s5946_s6 = inlined_call_operand.vmem [shape: f32[27,8,512], index: 6, kind: input, shape index: {}]   ;;  %s5947_s7 = inlined_call_operand.vmem [shape: f32[8,216], index: 7, kind: input, shape index: {}]   ;;  %s5948_s8 = inlined_call_operand.vmem [shape: f32[8,1], index: 8, kind: input, shape index: {}]   ;;  %s5949_s9 = inlined_call_operand.vmem [shape: f32[8,216], index: 9, kind: input, shape index: {}]   ;;  %s5950_s10 = inlined_call_operand.vmem [shape: f32[8,1], index: 10, kind: input, shape index: {}]   ;;  %s5951_s11 = inlined_call_operand.vmem [shape: f32[2,32,128], index: 11, kind: output, shape index: {}]  }
   0x1 LB: > { %s3131_s18 = sadd.s32 4294967295, %s3515_s17   ;;  %p3135_p0 = scmp.ge.s32.totalorder %s3515_s17, 1  ;;  %s3515_s17 = sphi %s3596_s17, %s21_s17  }
   0x2   : > { %p347_p1 = scmp.lt.s32.totalorder %s3515_s17, 3 }
   0x4   : > { %p348_p2 = pnand %p3135_p0, %p347_p1 }
   0x5   : > { %p3606_p3 = scmp.lt.s32.totalorder (!%p348_p2), %s3131_s18, 1  ;;  %s3518_s21 = smov (!%p348_p2), 121  }
   0x6   : > { %351 = sbr.rel (%p348_p2) target bundleno = 1163 (0x48b), region = 64  ;;  %s3519_s19 = smov (!%p348_p2), 127  }
   0x7   : > { %s3520_s23 = smov (!%p348_p2), 1   ;;  %s3521_s24 = smov (!%p348_p2), 7  }
   0x8   : > { %s3522_s26 = smov (!%p348_p2), 8   ;;  %s3523_s27 = smov (!%p348_p2), 9  }
   0x9   : > { %s3524_s29 = smov (!%p348_p2), 55   ;;  %s5967_s30 = smov (!%p348_p2), 56  }
   0xa   : > { %s5965_s12 = smov (!%p348_p2), 57   ;;  %s5963_s13 = smov (!%p348_p2), 63  }
   0xb   : > { %v3613_v0 = vld [vmem:[%s5942_s2 + $0x1e8] sm:$0xff]  ;;  %v3618_v1 = vld [vmem:[%s5942_s2 + $0x1e0] sm:$0xff]  ;;  %v3517_v3 = vmov 0.0   ;;  %v474_v5 = vld [vmem:[%s5942_s2 + $0x1f8] sm:$0xff]  ;;  %s5996_s18 = smov (!%p3606_p3, %s3131_s18), 1  ;;  %vm1156_vm0 = vcmask 64512  }
   0xc   : > { %v3623_v2 = vld [vmem:[%s5942_s2 + $0x1c8] sm:$0xff]  ;;  %1044 = vst [vmem:[#allocation2 + $0x80] sm:$0xff] %v3517_v3  ;;  %1028 = vst [vmem:[#allocation2] sm:$0xff] %v3517_v3  ;;  %497 = vmatprep.subr.mxu0 %v3613_v0  ;;  %v467_v4 = vld [vmem:[%s5942_s2 + $0x1c0] sm:$0xff]  ;;  %561 = vmatprep.mubr.f32.mxu0 %v3517_v3  ;;  %s3349_s25 = sshll.u32 %s5996_s18, 9  ;;  %s5952_s28 = sshll.u32 %s5996_s18, 5 }
   0xd   : > { %1029 = vst [vmem:[#allocation2 + $0x8] sm:$0xff] %v3517_v3  ;;  %1030 = vst [vmem:[#allocation2 + $0x10] sm:$0xff] %v3517_v3  ;;  %498 = vmatpush1.msra.mxu0 %v3618_v1  ;;  %v464_v6 = vld [vmem:[%s5942_s2 + $0x1a8] sm:$0xff]  ;;  %586 = vmatprep.subr.mxu1 %v474_v5  ;;  %v463_v7 = vld [vmem:[%s5942_s2 + $0x1a0] sm:$0xff]  ;;  %s3736_s15 = scalar_lea.vmem %s5940_s0, %s3349_s25  ;;  %s3955_s25 = scalar_lea.vmem %s5941_s1, %s5952_s28  ;;  %vm2093_vm3 = vcmask 719872  }
   0xe   : > { %1031 = vst [vmem:[#allocation2 + $0x18] sm:$0xff] %v3517_v3  ;;  %1032 = vst [vmem:[#allocation2 + $0x20] sm:$0xff] %v3517_v3  ;;  %v473_v8 = vld [vmem:[%s5942_s2 + $0x1f0] sm:$0xff]  ;;  %499 = vmatprep.subr.mxu0 %v3623_v2  ;;  %v460_v9 = vld [vmem:[%s5942_s2 + $0x188] sm:$0xff]  ;;  %650 = vmatprep.mubr.f32.mxu1 %v3517_v3  ;;  %s5957_s14 = smov 64   ;;  %s5955_s16 = smov 65  }
   0xf   : > { %1033 = vst [vmem:[#allocation2 + $0x28] sm:$0xff] %v3517_v3  ;;  %1034 = vst [vmem:[#allocation2 + $0x30] sm:$0xff] %v3517_v3  ;;  %587 = vmatpush1.msra.mxu1 %v473_v8  ;;  %v470_v10 = vld [vmem:[%s5942_s2 + $0x1d8] sm:$0xff]  ;;  %v469_v11 = vld [vmem:[%s5942_s2 + $0x1d0] sm:$0xff]  ;;  %500 = vmatpush1.msra.mxu0 %v467_v4  ;;  %s5953_s20 = smov 71   ;;  %s5959_s22 = smov 72  }
  0x10   : > { %1035 = vst [vmem:[#allocation2 + $0x38] sm:$0xff] %v3517_v3  ;;  %1036 = vst [vmem:[#allocation2 + $0x40] sm:$0xff] %v3517_v3  ;;  %588 = vmatprep.subr.mxu1 %v470_v10  ;;  %v459_v12 = vld [vmem:[%s5942_s2 + $0x180] sm:$0xff]  ;;  %v456_v13 = vld [vmem:[%s5942_s2 + $0x168] sm:$0xff]  ;;  %501 = vmatprep.subr.mxu0 %v464_v6 }
  0x11   : > { %1037 = vst [vmem:[#allocation2 + $0x48] sm:$0xff] %v3517_v3  ;;  %1038 = vst [vmem:[#allocation2 + $0x50] sm:$0xff] %v3517_v3  ;;  %v466_v14 = vld [vmem:[%s5942_s2 + $0x1b8] sm:$0xff]  ;;  %589 = vmatpush1.msra.mxu1 %v469_v11  ;;  %v455_v15 = vld [vmem:[%s5942_s2 + $0x160] sm:$0xff]  ;;  %502 = vmatpush1.msra.mxu0 %v463_v7 }
  0x12   : > { %1039 = vst [vmem:[#allocation2 + $0x58] sm:$0xff] %v3517_v3  ;;  %1040 = vst [vmem:[#allocation2 + $0x60] sm:$0xff] %v3517_v3  ;;  %v465_v16 = vld [vmem:[%s5942_s2 + $0x1b0] sm:$0xff]  ;;  %v462_v17 = vld [vmem:[%s5942_s2 + $0x198] sm:$0xff]  ;;  %590 = vmatprep.subr.mxu1 %v466_v14  ;;  %503 = vmatprep.subr.mxu0 %v460_v9 }
  0x13   : > { %1041 = vst [vmem:[#allocation2 + $0x68] sm:$0xff] %v3517_v3  ;;  %1042 = vst [vmem:[#allocation2 + $0x70] sm:$0xff] %v3517_v3  ;;  %v1108_v18 = vld [vmem:[%s3736_s15 + $0x80] sm:$0xff]  ;;  %v1109_v20 = vld [vmem:[%s3736_s15 + $0x88] sm:$0xff]  ;;  %591 = vmatpush1.msra.mxu1 %v465_v16  ;;  %504 = vmatpush1.msra.mxu0 %v459_v12 }
  0x14   : > { %1043 = vst [vmem:[#allocation2 + $0x78] sm:$0xff] %v3517_v3  ;;  %1045 = vst [vmem:[#allocation2 + $0x88] sm:$0xff] %v3517_v3  ;;  %v1092_v19 = vld [vmem:[%s3736_s15] sm:$0xff]  ;;  %v452_v21 = vld [vmem:[%s5942_s2 + $0x148] sm:$0xff]  ;;  %592 = vmatprep.subr.mxu1 %v462_v17  ;;  %505 = vmatprep.subr.mxu0 %v456_v13 }
  0x15   : > { %1046 = vst [vmem:[#allocation2 + $0x90] sm:$0xff] %v3517_v3  ;;  %1047 = vst [vmem:[#allocation2 + $0x98] sm:$0xff] %v3517_v3  ;;  %v1093_v22 = vld [vmem:[%s3736_s15 + $0x8] sm:$0xff]  ;;  %v1110_v23 = vld [vmem:[%s3736_s15 + $0x90] sm:$0xff]  ;;  %506 = vmatpush1.msra.mxu0 %v455_v15 }
  0x16   : > { %1048 = vst [vmem:[#allocation2 + $0xa0] sm:$0xff] %v3517_v3  ;;  %1049 = vst [vmem:[#allocation2 + $0xa8] sm:$0xff] %v3517_v3  ;;  %v1094_v24 = vld [vmem:[%s3736_s15 + $0x10] sm:$0xff]  ;;  %v1111_v25 = vld [vmem:[%s3736_s15 + $0x98] sm:$0xff]  ;;  %507 = vmatprep.subr.mxu0 %v452_v21 }
  0x17   : > { %1050 = vst [vmem:[#allocation2 + $0xb0] sm:$0xff] %v3517_v3  ;;  %1051 = vst [vmem:[#allocation2 + $0xb8] sm:$0xff] %v3517_v3  ;;  %v1095_v26 = vld [vmem:[%s3736_s15 + $0x18] sm:$0xff]  ;;  %v1112_v27 = vld [vmem:[%s3736_s15 + $0xa0] sm:$0xff] }
  0x18   : > { %1052 = vst [vmem:[#allocation2 + $0xc0] sm:$0xff] %v3517_v3  ;;  %1053 = vst [vmem:[#allocation2 + $0xc8] sm:$0xff] %v3517_v3  ;;  %v1096_v28 = vld [vmem:[%s3736_s15 + $0x20] sm:$0xff]  ;;  %v1113_v29 = vld [vmem:[%s3736_s15 + $0xa8] sm:$0xff] }
  0x19   : > { %1054 = vst [vmem:[#allocation2 + $0xd0] sm:$0xff] %v3517_v3  ;;  %1055 = vst [vmem:[#allocation2 + $0xd8] sm:$0xff] %v3517_v3  ;;  %v1097_v30 = vld [vmem:[%s3736_s15 + $0x28] sm:$0xff]  ;;  %v1114_v31 = vld [vmem:[%s3736_s15 + $0xb0] sm:$0xff] }
  0x1a   : > { %1056 = vst [vmem:[#allocation2 + $0xe0] sm:$0xff] %v3517_v3  ;;  %1057 = vst [vmem:[#allocation2 + $0xe8] sm:$0xff] %v3517_v3  ;;  %v1098_v32 = vld [vmem:[%s3736_s15 + $0x30] sm:$0xff]  ;;  %v1115_v33 = vld [vmem:[%s3736_s15 + $0xb8] sm:$0xff] }
  0x1b   : > { %1058 = vst [vmem:[#allocation2 + $0xf0] sm:$0xff] %v3517_v3  ;;  %1059 = vst [vmem:[#allocation2 + $0xf8] sm:$0xff] %v3517_v3  ;;  %v1099_v34 = vld [vmem:[%s3736_s15 + $0x38] sm:$0xff]  ;;  %v1116_v35 = vld [vmem:[%s3736_s15 + $0xc0] sm:$0xff] }
  0x1c   : > { %1060 = vst [vmem:[#allocation2 + $0x100] sm:$0xff] %v3517_v3  ;;  %1061 = vst [vmem:[#allocation2 + $0x108] sm:$0xff] %v3517_v3  ;;  %v1100_v36 = vld [vmem:[%s3736_s15 + $0x40] sm:$0xff]  ;;  %v1117_v37 = vld [vmem:[%s3736_s15 + $0xc8] sm:$0xff] }
  0x1d   : > { %1062 = vst [vmem:[#allocation2 + $0x110] sm:$0xff] %v3517_v3  ;;  %1063 = vst [vmem:[#allocation2 + $0x118] sm:$0xff] %v3517_v3  ;;  %v1101_v38 = vld [vmem:[%s3736_s15 + $0x48] sm:$0xff]  ;;  %v1118_v39 = vld [vmem:[%s3736_s15 + $0xd0] sm:$0xff] }
  0x1e   : > { %1064 = vst [vmem:[#allocation2 + $0x120] sm:$0xff] %v3517_v3  ;;  %1065 = vst [vmem:[#allocation2 + $0x128] sm:$0xff] %v3517_v3  ;;  %v1102_v40 = vld [vmem:[%s3736_s15 + $0x50] sm:$0xff]  ;;  %v1119_v41 = vld [vmem:[%s3736_s15 + $0xd8] sm:$0xff] }
  0x1f   : > { %1066 = vst [vmem:[#allocation2 + $0x130] sm:$0xff] %v3517_v3  ;;  %1067 = vst [vmem:[#allocation2 + $0x138] sm:$0xff] %v3517_v3  ;;  %v1103_v42 = vld [vmem:[%s3736_s15 + $0x58] sm:$0xff]  ;;  %v1120_v51 = vld [vmem:[%s3736_s15 + $0xe0] sm:$0xff] }
  0x20   : > { %1068 = vst [vmem:[#allocation2 + $0x140] sm:$0xff] %v3517_v3  ;;  %1069 = vst [vmem:[#allocation2 + $0x148] sm:$0xff] %v3517_v3  ;;  %v1104_v52 = vld [vmem:[%s3736_s15 + $0x60] sm:$0xff]  ;;  %v1121_v53 = vld [vmem:[%s3736_s15 + $0xe8] sm:$0xff] }
  0x21   : > { %1070 = vst [vmem:[#allocation2 + $0x150] sm:$0xff] %v3517_v3  ;;  %1071 = vst [vmem:[#allocation2 + $0x158] sm:$0xff] %v3517_v3  ;;  %v1105_v54 = vld [vmem:[%s3736_s15 + $0x68] sm:$0xff]  ;;  %v1122_v55 = vld [vmem:[%s3736_s15 + $0xf0] sm:$0xff] }
  0x22   : > { %1072 = vst [vmem:[#allocation2 + $0x160] sm:$0xff] %v3517_v3  ;;  %1073 = vst [vmem:[#allocation2 + $0x168] sm:$0xff] %v3517_v3  ;;  %v1106_v56 = vld [vmem:[%s3736_s15 + $0x70] sm:$0xff]  ;;  %v1123_v57 = vld [vmem:[%s3736_s15 + $0xf8] sm:$0xff] }
  0x23   : > { %1074 = vst [vmem:[#allocation2 + $0x170] sm:$0xff] %v3517_v3  ;;  %1075 = vst [vmem:[#allocation2 + $0x178] sm:$0xff] %v3517_v3  ;;  %v1107_v58 = vld [vmem:[%s3736_s15 + $0x78] sm:$0xff]  ;;  %v451_v59 = vld [vmem:[%s5942_s2 + $0x140] sm:$0xff] }
  0x24   : > { %1076 = vst [vmem:[#allocation2 + $0x180] sm:$0xff] %v3517_v3  ;;  %1077 = vst [vmem:[#allocation2 + $0x188] sm:$0xff] %v3517_v3  ;;  %508 = vmatpush1.msra.mxu0 %v451_v59  ;;  %v461_v60 = vld [vmem:[%s5942_s2 + $0x190] sm:$0xff]  ;;  %v448_v61 = vld [vmem:[%s5942_s2 + $0x128] sm:$0xff] }
  0x25   : > { %1078 = vst [vmem:[#allocation2 + $0x190] sm:$0xff] %v3517_v3  ;;  %1079 = vst [vmem:[#allocation2 + $0x198] sm:$0xff] %v3517_v3  ;;  %v458_v62 = vld [vmem:[%s5942_s2 + $0x178] sm:$0xff]  ;;  %593 = vmatpush1.msra.mxu1 %v461_v60  ;;  %509 = vmatprep.subr.mxu0 %v448_v61  ;;  %v1140_v0 = vld [vmem:[%s3736_s15 + $0x180] sm:$0xff] }
  0x26   : > { %1080 = vst [vmem:[#allocation2 + $0x1a0] sm:$0xff] %v3517_v3  ;;  %1081 = vst [vmem:[#allocation2 + $0x1a8] sm:$0xff] %v3517_v3  ;;  %v1124_v1 = vld [vmem:[%s3736_s15 + $0x100] sm:$0xff]  ;;  %v457_v4 = vld [vmem:[%s5942_s2 + $0x170] sm:$0xff]  ;;  %594 = vmatprep.subr.mxu1 %v458_v62 }
  0x27   : > { %1082 = vst [vmem:[#allocation2 + $0x1b0] sm:$0xff] %v3517_v3  ;;  %1083 = vst [vmem:[#allocation2 + $0x1b8] sm:$0xff] %v3517_v3  ;;  %v447_v2 = vld [vmem:[%s5942_s2 + $0x120] sm:$0xff]  ;;  %v444_v5 = vld [vmem:[%s5942_s2 + $0x108] sm:$0xff]  ;;  %595 = vmatpush1.msra.mxu1 %v457_v4 }
  0x28   : > { %1084 = vst [vmem:[#allocation2 + $0x1c0] sm:$0xff] %v3517_v3  ;;  %1085 = vst [vmem:[#allocation2 + $0x1c8] sm:$0xff] %v3517_v3  ;;  %v454_v6 = vld [vmem:[%s5942_s2 + $0x158] sm:$0xff]  ;;  %510 = vmatpush1.msra.mxu0 %v447_v2  ;;  %v443_v8 = vld [vmem:[%s5942_s2 + $0x100] sm:$0xff] }
  0x29   : > { %1086 = vst [vmem:[#allocation2 + $0x1d0] sm:$0xff] %v3517_v3  ;;  %1087 = vst [vmem:[#allocation2 + $0x1d8] sm:$0xff] %v3517_v3  ;;  %v453_v9 = vld [vmem:[%s5942_s2 + $0x150] sm:$0xff]  ;;  %511 = vmatprep.subr.mxu0 %v444_v5  ;;  %v440_v10 = vld [vmem:[%s5942_s2 + $0xe8] sm:$0xff]  ;;  %596 = vmatprep.subr.mxu1 %v454_v6 }
  0x2a   : > { %1088 = vst [vmem:[#allocation2 + $0x1e0] sm:$0xff] %v3517_v3  ;;  %1089 = vst [vmem:[#allocation2 + $0x1e8] sm:$0xff] %v3517_v3  ;;  %v1141_v11 = vld [vmem:[%s3736_s15 + $0x188] sm:$0xff]  ;;  %512 = vmatpush1.msra.mxu0 %v443_v8  ;;  %v450_v13 = vld [vmem:[%s5942_s2 + $0x138] sm:$0xff]  ;;  %597 = vmatpush1.msra.mxu1 %v453_v9 }
  0x2b   : > { %1090 = vst [vmem:[#allocation2 + $0x1f0] sm:$0xff] %v3517_v3  ;;  %1091 = vst [vmem:[#allocation2 + $0x1f8] sm:$0xff] %v3517_v3  ;;  %v1125_v12 = vld [vmem:[%s3736_s15 + $0x108] sm:$0xff]  ;;  %513 = vmatprep.subr.mxu0 %v440_v10  ;;  %v439_v16 = vld [vmem:[%s5942_s2 + $0xe0] sm:$0xff]  ;;  %598 = vmatprep.subr.mxu1 %v450_v13 }
  0x2c   : > { %1173 = vst.msk [vmem:[#allocation2 + $0x80] sm:$0xff] %vm1156_vm0, %v1108_v18  ;;  %1157 = vst.msk [vmem:[#allocation2] sm:$0xff] %vm1156_vm0, %v1092_v19  ;;  %514 = vmatpush1.msra.mxu0 %v439_v16  ;;  %v449_v17 = vld [vmem:[%s5942_s2 + $0x130] sm:$0xff]  ;;  %v436_v18 = vld [vmem:[%s5942_s2 + $0xc8] sm:$0xff] }
  0x2d   : > { %1174 = vst.msk [vmem:[#allocation2 + $0x88] sm:$0xff] %vm1156_vm0, %v1109_v20  ;;  %1158 = vst.msk [vmem:[#allocation2 + $0x8] sm:$0xff] %vm1156_vm0, %v1093_v22  ;;  %v446_v19 = vld [vmem:[%s5942_s2 + $0x118] sm:$0xff]  ;;  %599 = vmatpush1.msra.mxu1 %v449_v17  ;;  %515 = vmatprep.subr.mxu0 %v436_v18  ;;  %v435_v22 = vld [vmem:[%s5942_s2 + $0xc0] sm:$0xff] }
  0x2e   : > { %1175 = vst.msk [vmem:[#allocation2 + $0x90] sm:$0xff] %vm1156_vm0, %v1110_v23  ;;  %1159 = vst.msk [vmem:[#allocation2 + $0x10] sm:$0xff] %vm1156_vm0, %v1094_v24  ;;  %v445_v23 = vld [vmem:[%s5942_s2 + $0x110] sm:$0xff]  ;;  %v432_v24 = vld [vmem:[%s5942_s2 + $0xa8] sm:$0xff]  ;;  %600 = vmatprep.subr.mxu1 %v446_v19  ;;  %516 = vmatpush1.msra.mxu0 %v435_v22 }
  0x2f   : > { %1176 = vst.msk [vmem:[#allocation2 + $0x98] sm:$0xff] %vm1156_vm0, %v1111_v25  ;;  %1160 = vst.msk [vmem:[#allocation2 + $0x18] sm:$0xff] %vm1156_vm0, %v1095_v26  ;;  %v442_v25 = vld [vmem:[%s5942_s2 + $0xf8] sm:$0xff]  ;;  %v1142_v26 = vld [vmem:[%s3736_s15 + $0x190] sm:$0xff]  ;;  %601 = vmatpush1.msra.mxu1 %v445_v23  ;;  %517 = vmatprep.subr.mxu0 %v432_v24 }
  0x30   : > { %1177 = vst.msk [vmem:[#allocation2 + $0xa0] sm:$0xff] %vm1156_vm0, %v1112_v27  ;;  %1161 = vst.msk [vmem:[#allocation2 + $0x20] sm:$0xff] %vm1156_vm0, %v1096_v28  ;;  %v1126_v27 = vld [vmem:[%s3736_s15 + $0x110] sm:$0xff]  ;;  %v431_v28 = vld [vmem:[%s5942_s2 + $0xa0] sm:$0xff]  ;;  %602 = vmatprep.subr.mxu1 %v442_v25 }
  0x31   : > { %1178 = vst.msk [vmem:[#allocation2 + $0xa8] sm:$0xff] %vm1156_vm0, %v1113_v29  ;;  %1162 = vst.msk [vmem:[#allocation2 + $0x28] sm:$0xff] %vm1156_vm0, %v1097_v30  ;;  %v441_v29 = vld [vmem:[%s5942_s2 + $0xf0] sm:$0xff]  ;;  %518 = vmatpush1.msra.mxu0 %v431_v28  ;;  %v428_v30 = vld [vmem:[%s5942_s2 + $0x88] sm:$0xff] }
  0x32   : > { %1179 = vst.msk [vmem:[#allocation2 + $0xb0] sm:$0xff] %vm1156_vm0, %v1114_v31  ;;  %1163 = vst.msk [vmem:[#allocation2 + $0x30] sm:$0xff] %vm1156_vm0, %v1098_v32  ;;  %v438_v31 = vld [vmem:[%s5942_s2 + $0xd8] sm:$0xff]  ;;  %v427_v32 = vld [vmem:[%s5942_s2 + $0x80] sm:$0xff]  ;;  %603 = vmatpush1.msra.mxu1 %v441_v29  ;;  %519 = vmatprep.subr.mxu0 %v428_v30 }
  0x33   : > { %1180 = vst.msk [vmem:[#allocation2 + $0xb8] sm:$0xff] %vm1156_vm0, %v1115_v33  ;;  %1164 = vst.msk [vmem:[#allocation2 + $0x38] sm:$0xff] %vm1156_vm0, %v1099_v34  ;;  %v1237_v43 = vld [vmem:[#allocation2 + $0x80] sm:$0xff]  ;;  %v437_v34 = vld [vmem:[%s5942_s2 + $0xd0] sm:$0xff]  ;;  %604 = vmatprep.subr.mxu1 %v438_v31  ;;  %520 = vmatpush1.msra.mxu0 %v427_v32 }
  0x34   : > { %1181 = vst.msk [vmem:[#allocation2 + $0xc0] sm:$0xff] %vm1156_vm0, %v1116_v35  ;;  %1165 = vst.msk [vmem:[#allocation2 + $0x40] sm:$0xff] %vm1156_vm0, %v1100_v36  ;;  %v1221_v44 = vld [vmem:[#allocation2] sm:$0xff]  ;;  %1317 = vxpose.xlu1.b32.start [1/16] (narrow) %v1237_v43, 8  ;;  %v1238_v45 = vld [vmem:[#allocation2 + $0x88] sm:$0xff]  ;;  %605 = vmatpush1.msra.mxu1 %v437_v34 }
  0x35   : > { %1182 = vst.msk [vmem:[#allocation2 + $0xc8] sm:$0xff] %vm1156_vm0, %v1117_v37  ;;  %1166 = vst.msk [vmem:[#allocation2 + $0x48] sm:$0xff] %vm1156_vm0, %v1101_v38  ;;  %1285 = vxpose.xlu0.b32.start [1/16] (narrow) %v1221_v44, 8  ;;  %v1222_v46 = vld [vmem:[#allocation2 + $0x8] sm:$0xff]  ;;  %v1239_v47 = vld [vmem:[#allocation2 + $0x90] sm:$0xff] }
  0x36   : > { %1183 = vst.msk [vmem:[#allocation2 + $0xd0] sm:$0xff] %vm1156_vm0, %v1118_v39  ;;  %1167 = vst.msk [vmem:[#allocation2 + $0x50] sm:$0xff] %vm1156_vm0, %v1102_v40  ;;  %v1223_v48 = vld [vmem:[#allocation2 + $0x10] sm:$0xff]  ;;  %v1240_v49 = vld [vmem:[#allocation2 + $0x98] sm:$0xff] }
  0x37   : > { %1184 = vst.msk [vmem:[#allocation2 + $0xd8] sm:$0xff] %vm1156_vm0, %v1119_v41  ;;  %1168 = vst.msk [vmem:[#allocation2 + $0x58] sm:$0xff] %vm1156_vm0, %v1103_v42  ;;  %v1224_v50 = vld [vmem:[#allocation2 + $0x18] sm:$0xff]  ;;  %v1241_v63 = vld [vmem:[#allocation2 + $0xa0] sm:$0xff] }
  0x38   : > { %1318 = vxpose.xlu1.b32.cont [2/16] (narrow) %v1238_v45, 8  ;;  %1185 = vst.msk [vmem:[#allocation2 + $0xe0] sm:$0xff] %vm1156_vm0, %v1120_v51  ;;  %1169 = vst.msk [vmem:[#allocation2 + $0x60] sm:$0xff] %vm1156_vm0, %v1104_v52  ;;  %v1225_v7 = vld [vmem:[#allocation2 + $0x20] sm:$0xff]  ;;  %v1242_v14 = vld [vmem:[#allocation2 + $0xa8] sm:$0xff] }
  0x39   : > { %1286 = vxpose.xlu0.b32.cont [2/16] (narrow) %v1222_v46, 8  ;;  %1186 = vst.msk [vmem:[#allocation2 + $0xe8] sm:$0xff] %vm1156_vm0, %v1121_v53  ;;  %1170 = vst.msk [vmem:[#allocation2 + $0x68] sm:$0xff] %vm1156_vm0, %v1105_v54  ;;  %v1226_v15 = vld [vmem:[#allocation2 + $0x28] sm:$0xff]  ;;  %v1243_v20 = vld [vmem:[#allocation2 + $0xb0] sm:$0xff] }
  0x3a   : > { %1187 = vst.msk [vmem:[#allocation2 + $0xf0] sm:$0xff] %vm1156_vm0, %v1122_v55  ;;  %1171 = vst.msk [vmem:[#allocation2 + $0x70] sm:$0xff] %vm1156_vm0, %v1106_v56  ;;  %v1227_v21 = vld [vmem:[#allocation2 + $0x30] sm:$0xff]  ;;  %v1244_v33 = vld [vmem:[#allocation2 + $0xb8] sm:$0xff] }
  0x3b   : > { %1188 = vst.msk [vmem:[#allocation2 + $0xf8] sm:$0xff] %vm1156_vm0, %v1123_v57  ;;  %1172 = vst.msk [vmem:[#allocation2 + $0x78] sm:$0xff] %vm1156_vm0, %v1107_v58  ;;  %v424_v35 = vld [vmem:[%s5942_s2 + $0x68] sm:$0xff]  ;;  %v1228_v36 = vld [vmem:[#allocation2 + $0x38] sm:$0xff] }
  0x3c   : > { %1319 = vxpose.xlu1.b32.cont [3/16] (narrow) %v1239_v47, 8  ;;  %1205 = vst.msk [vmem:[#allocation2 + $0x180] sm:$0xff] %vm1156_vm0, %v1140_v0  ;;  %1189 = vst.msk [vmem:[#allocation2 + $0x100] sm:$0xff] %vm1156_vm0, %v1124_v1  ;;  %v1143_v37 = vld [vmem:[%s3736_s15 + $0x198] sm:$0xff]  ;;  %v423_v40 = vld [vmem:[%s5942_s2 + $0x60] sm:$0xff]  ;;  %521 = vmatprep.subr.mxu0 %v424_v35 }
  0x3d   : > { %1287 = vxpose.xlu0.b32.cont [3/16] (narrow) %v1223_v48, 8  ;;  %1206 = vst.msk [vmem:[#allocation2 + $0x188] sm:$0xff] %vm1156_vm0, %v1141_v11  ;;  %1190 = vst.msk [vmem:[#allocation2 + $0x108] sm:$0xff] %vm1156_vm0, %v1125_v12  ;;  %v1127_v38 = vld [vmem:[%s3736_s15 + $0x118] sm:$0xff]  ;;  %v433_v41 = vld [vmem:[%s5942_s2 + $0xb0] sm:$0xff]  ;;  %522 = vmatpush1.msra.mxu0 %v423_v40 }
  0x3e   : > { %1207 = vst.msk [vmem:[#allocation2 + $0x190] sm:$0xff] %vm1156_vm0, %v1142_v26  ;;  %1191 = vst.msk [vmem:[#allocation2 + $0x110] sm:$0xff] %vm1156_vm0, %v1126_v27  ;;  %v434_v39 = vld [vmem:[%s5942_s2 + $0xb8] sm:$0xff]  ;;  %v420_v42 = vld [vmem:[%s5942_s2 + $0x48] sm:$0xff] }
  0x3f   : > { %1208 = vst.msk [vmem:[#allocation2 + $0x198] sm:$0xff] %vm1156_vm0, %v1143_v37  ;;  %1192 = vst.msk [vmem:[#allocation2 + $0x118] sm:$0xff] %vm1156_vm0, %v1127_v38  ;;  %v430_v43 = vld [vmem:[%s5942_s2 + $0x98] sm:$0xff]  ;;  %v419_v44 = vld [vmem:[%s5942_s2 + $0x40] sm:$0xff]  ;;  %606 = vmatprep.subr.mxu1 %v434_v39  ;;  %523 = vmatprep.subr.mxu0 %v420_v42 }
  0x40   : > { %1320 = vxpose.xlu1.b32.cont [4/16] (narrow) %v1240_v49, 8  ;;  %v1144_v45 = vld [vmem:[%s3736_s15 + $0x1a0] sm:$0xff]  ;;  %607 = vmatpush1.msra.mxu1 %v433_v41  ;;  %v429_v49 = vld [vmem:[%s5942_s2 + $0x90] sm:$0xff]  ;;  %v1246_v51 = vld [vmem:[#allocation2 + $0xc8] sm:$0xff] }
  0x41   : > { %1288 = vxpose.xlu0.b32.cont [4/16] (narrow) %v1224_v50, 8  ;;  %v1128_v46 = vld [vmem:[%s3736_s15 + $0x120] sm:$0xff]  ;;  %1209 = vst.msk [vmem:[#allocation2 + $0x1a0] sm:$0xff] %vm1156_vm0, %v1144_v45  ;;  %v416_v50 = vld [vmem:[%s5942_s2 + $0x28] sm:$0xff]  ;;  %608 = vmatprep.subr.mxu1 %v430_v43  ;;  %v426_v52 = vld [vmem:[%s5942_s2 + $0x78] sm:$0xff] }
  0x42   : > { %v1245_v47 = vld [vmem:[#allocation2 + $0xc0] sm:$0xff]  ;;  %1193 = vst.msk [vmem:[#allocation2 + $0x120] sm:$0xff] %vm1156_vm0, %v1128_v46  ;;  %524 = vmatpush1.msra.mxu0 %v419_v44  ;;  %v425_v54 = vld [vmem:[%s5942_s2 + $0x70] sm:$0xff]  ;;  %v412_v55 = vld [vmem:[%s5942_s2 + $0x8] sm:$0xff]  ;;  %609 = vmatpush1.msra.mxu1 %v429_v49 }
  0x43   : > { %v1229_v48 = vld [vmem:[#allocation2 + $0x40] sm:$0xff]  ;;  %v1145_v56 = vld [vmem:[%s3736_s15 + $0x1a8] sm:$0xff]  ;;  %525 = vmatprep.subr.mxu0 %v416_v50  ;;  %v422_v59 = vld [vmem:[%s5942_s2 + $0x58] sm:$0xff]  ;;  %610 = vmatprep.subr.mxu1 %v426_v52 }
  0x44   : > { %1321 = vxpose.xlu1.b32.cont [5/16] (narrow) %v1241_v63, 8  ;;  %v415_v53 = vld [vmem:[%s5942_s2 + $0x20] sm:$0xff]  ;;  %v1129_v57 = vld [vmem:[%s3736_s15 + $0x128] sm:$0xff]  ;;  %1210 = vst.msk [vmem:[#allocation2 + $0x1a8] sm:$0xff] %vm1156_vm0, %v1145_v56  ;;  %v421_v61 = vld [vmem:[%s5942_s2 + $0x50] sm:$0xff]  ;;  %611 = vmatpush1.msra.mxu1 %v425_v54 }
  0x45   : > { %1289 = vxpose.xlu0.b32.cont [5/16] (narrow) %v1225_v7, 8  ;;  %v1230_v58 = vld [vmem:[#allocation2 + $0x48] sm:$0xff]  ;;  %v411_v60 = vld [vmem:[%s5942_s2] sm:$0xff]  ;;  %1194 = vst.msk [vmem:[#allocation2 + $0x128] sm:$0xff] %vm1156_vm0, %v1129_v57  ;;  %526 = vmatpush1.msra.mxu0 %v415_v53  ;;  %v1146_v63 = vld [vmem:[%s3736_s15 + $0x1b0] sm:$0xff] }
  0x46   : > { %v3974_v62 = vld [vmem:[%s3955_s25] sm:$0xff]  ;;  %v1247_v0 = vld [vmem:[#allocation2 + $0xd0] sm:$0xff]  ;;  %527 = vmatprep.subr.mxu0 %v412_v55  ;;  %1211 = vst.msk [vmem:[#allocation2 + $0x1b0] sm:$0xff] %vm1156_vm0, %v1146_v63  ;;  %v1147_v4 = vld [vmem:[%s3736_s15 + $0x1b8] sm:$0xff]  ;;  %612 = vmatprep.subr.mxu1 %v422_v59 }
  0x47   : > { %v1231_v1 = vld [vmem:[#allocation2 + $0x50] sm:$0xff]  ;;  %v1131_v5 = vld [vmem:[%s3736_s15 + $0x138] sm:$0xff]  ;;  %1212 = vst.msk [vmem:[#allocation2 + $0x1b8] sm:$0xff] %vm1156_vm0, %v1147_v4  ;;  %v1148_v8 = vld [vmem:[%s3736_s15 + $0x1c0] sm:$0xff]  ;;  %528 = vmatpush1.msra.mxu0 %v411_v60  ;;  %613 = vmatpush1.msra.mxu1 %v421_v61 }
  0x48   : > { %1322 = vxpose.xlu1.b32.cont [6/16] (narrow) %v1242_v14, 8  ;;  %v1130_v2 = vld [vmem:[%s3736_s15 + $0x130] sm:$0xff]  ;;  %v418_v6 = vld [vmem:[%s5942_s2 + $0x38] sm:$0xff]  ;;  %1196 = vst.msk [vmem:[#allocation2 + $0x138] sm:$0xff] %vm1156_vm0, %v1131_v5  ;;  %1213 = vst.msk [vmem:[#allocation2 + $0x1c0] sm:$0xff] %vm1156_vm0, %v1148_v8  ;;  %562 = vmatmul.mubr.f32.vlgmr.msra.gmra.mxu0 %v3974_v62 }
  0x49   : > { %1290 = vxpose.xlu0.b32.cont [6/16] (narrow) %v1226_v15, 8  ;;  %v417_v7 = vld [vmem:[%s5942_s2 + $0x30] sm:$0xff]  ;;  %1195 = vst.msk [vmem:[#allocation2 + $0x130] sm:$0xff] %vm1156_vm0, %v1130_v2  ;;  %v414_v9 = vld [vmem:[%s5942_s2 + $0x18] sm:$0xff]  ;;  %v1132_v10 = vld [vmem:[%s3736_s15 + $0x140] sm:$0xff]  ;;  %614 = vmatprep.subr.mxu1 %v418_v6 }
  0x4a   : > { %v1149_v11 = vld [vmem:[%s3736_s15 + $0x1c8] sm:$0xff]  ;;  %1197 = vst.msk [vmem:[#allocation2 + $0x140] sm:$0xff] %vm1156_vm0, %v1132_v10  ;;  %v1150_v13 = vld [vmem:[%s3736_s15 + $0x1d0] sm:$0xff]  ;;  %v1151_v15 = vld [vmem:[%s3736_s15 + $0x1d8] sm:$0xff]  ;;  %567 = vmatprep.mubr.f32.mxu0 %v3517_v3  ;;  %615 = vmatpush1.msra.mxu1 %v417_v7 }
  0x4b   : > { %v1133_v12 = vld [vmem:[%s3736_s15 + $0x148] sm:$0xff]  ;;  %1214 = vst.msk [vmem:[#allocation2 + $0x1c8] sm:$0xff] %vm1156_vm0, %v1149_v11  ;;  %v1134_v14 = vld [vmem:[%s3736_s15 + $0x150] sm:$0xff]  ;;  %v1248_v16 = vld [vmem:[#allocation2 + $0xd8] sm:$0xff]  ;;  %616 = vmatprep.subr.mxu1 %v414_v9 }
  0x4c   : > { %1323 = vxpose.xlu1.b32.cont [7/16] (narrow) %v1243_v20, 8  ;;  %1198 = vst.msk [vmem:[#allocation2 + $0x148] sm:$0xff] %vm1156_vm0, %v1133_v12  ;;  %1215 = vst.msk [vmem:[#allocation2 + $0x1d0] sm:$0xff] %vm1156_vm0, %v1150_v13  ;;  %v1135_v17 = vld [vmem:[%s3736_s15 + $0x158] sm:$0xff]  ;;  %v1152_v18 = vld [vmem:[%s3736_s15 + $0x1e0] sm:$0xff] }
  0x4d   : > { %1291 = vxpose.xlu0.b32.cont [7/16] (narrow) %v1227_v21, 8  ;;  %1199 = vst.msk [vmem:[#allocation2 + $0x150] sm:$0xff] %vm1156_vm0, %v1134_v14  ;;  %1216 = vst.msk [vmem:[#allocation2 + $0x1d8] sm:$0xff] %vm1156_vm0, %v1151_v15  ;;  %v1136_v19 = vld [vmem:[%s3736_s15 + $0x160] sm:$0xff]  ;;  %v1232_v20 = vld [vmem:[#allocation2 + $0x58] sm:$0xff] }
  0x4e   : > { %v413_v21 = vld [vmem:[%s5942_s2 + $0x10] sm:$0xff]  ;;  %1200 = vst.msk [vmem:[#allocation2 + $0x158] sm:$0xff] %vm1156_vm0, %v1135_v17  ;;  %1217 = vst.msk [vmem:[#allocation2 + $0x1e0] sm:$0xff] %vm1156_vm0, %v1152_v18  ;;  %v1153_v22 = vld [vmem:[%s3736_s15 + $0x1e8] sm:$0xff] }
  0x4f   : > { %1201 = vst.msk [vmem:[#allocation2 + $0x160] sm:$0xff] %vm1156_vm0, %v1136_v19  ;;  %1218 = vst.msk [vmem:[#allocation2 + $0x1e8] sm:$0xff] %vm1156_vm0, %v1153_v22  ;;  %v1137_v23 = vld [vmem:[%s3736_s15 + $0x168] sm:$0xff]  ;;  %v1154_v24 = vld [vmem:[%s3736_s15 + $0x1f0] sm:$0xff]  ;;  %617 = vmatpush1.msra.mxu1 %v413_v21 }
  0x50   : > { %1324 = vxpose.xlu1.b32.cont [8/16] (narrow) %v1244_v33, 8  ;;  %v1138_v25 = vld [vmem:[%s3736_s15 + $0x170] sm:$0xff]  ;;  %1202 = vst.msk [vmem:[#allocation2 + $0x168] sm:$0xff] %vm1156_vm0, %v1137_v23  ;;  %1219 = vst.msk [vmem:[#allocation2 + $0x1f0] sm:$0xff] %vm1156_vm0, %v1154_v24  ;;  %v1155_v26 = vld [vmem:[%s3736_s15 + $0x1f8] sm:$0xff]  ;;  %651 = vmatmul.mubr.f32.vlgmr.msra.gmra.mxu1 %v3974_v62 }
  0x51   : > { %1292 = vxpose.xlu0.b32.cont [8/16] (narrow) %v1228_v36, 8  ;;  %1203 = vst.msk [vmem:[#allocation2 + $0x170] sm:$0xff] %vm1156_vm0, %v1138_v25  ;;  %v1139_v27 = vld [vmem:[%s3736_s15 + $0x178] sm:$0xff]  ;;  %1220 = vst.msk [vmem:[#allocation2 + $0x1f8] sm:$0xff] %vm1156_vm0, %v1155_v26  ;;  %v408_v28 = vld [vmem:[%s3955_s25 + $0x8] sm:$0xff]  ;;  %656 = vmatprep.mubr.f32.mxu1 %v3517_v3  ;;  %s5961_s15 = smov 73  }
  0x52   : > { %1204 = vst.msk [vmem:[#allocation2 + $0x178] sm:$0xff] %vm1156_vm0, %v1139_v27  ;;  %v1249_v29 = vld [vmem:[#allocation2 + $0xe0] sm:$0xff]  ;;  %568 = vmatmul.mubr.f32.gmra.mxu0 %v408_v28  ;;  %v409_v31 = vld [vmem:[%s3955_s25 + $0x10] sm:$0xff]  ;;  %v1250_v32 = vld [vmem:[#allocation2 + $0xe8] sm:$0xff] }
  0x53   : > { %v1233_v30 = vld [vmem:[#allocation2 + $0x60] sm:$0xff]  ;;  %573 = vmatprep.mubr.f32.mxu0 %v3517_v3  ;;  %v1234_v33 = vld [vmem:[#allocation2 + $0x68] sm:$0xff]  ;;  %v410_v34 = vld [vmem:[%s3955_s25 + $0x18] sm:$0xff]  ;;  %s5971_s25 = smov 119  }
  0x54   : > { %1325 = vxpose.xlu1.b32.cont [9/16] (narrow) %v1245_v47, 8  ;;  %657 = vmatmul.mubr.f32.gmra.mxu1 %v408_v28  ;;  %v1251_v35 = vld [vmem:[#allocation2 + $0xf0] sm:$0xff]  ;;  %v1252_v37 = vld [vmem:[#allocation2 + $0xf8] sm:$0xff]  ;;  %v1269_v39 = vld [vmem:[#allocation2 + $0x180] sm:$0xff] }
  0x55   : > { %1293 = vxpose.xlu0.b32.cont [9/16] (narrow) %v1229_v48, 8  ;;  %662 = vmatprep.mubr.f32.mxu1 %v3517_v3  ;;  %v1235_v36 = vld [vmem:[#allocation2 + $0x70] sm:$0xff]  ;;  %v1236_v38 = vld [vmem:[#allocation2 + $0x78] sm:$0xff]  ;;  %v1253_v40 = vld [vmem:[#allocation2 + $0x100] sm:$0xff] }
  0x56   : > { %574 = vmatmul.mubr.f32.gmra.mxu0 %v409_v31  ;;  %v1270_v41 = vld [vmem:[#allocation2 + $0x188] sm:$0xff]  ;;  %v1271_v43 = vld [vmem:[#allocation2 + $0x190] sm:$0xff]  ;;  %v1256_v45 = vld [vmem:[#allocation2 + $0x118] sm:$0xff] }
  0x57   : > { %579 = vmatprep.mubr.f32.mxu0 %v3517_v3  ;;  %v1254_v42 = vld [vmem:[#allocation2 + $0x108] sm:$0xff]  ;;  %v1255_v44 = vld [vmem:[#allocation2 + $0x110] sm:$0xff]  ;;  %v1273_v46 = vld [vmem:[#allocation2 + $0x1a0] sm:$0xff] }
  0x58   : > { %1326 = vxpose.xlu1.b32.cont [10/16] (narrow) %v1246_v51, 8  ;;  %663 = vmatmul.mubr.f32.gmra.mxu1 %v409_v31  ;;  %v1257_v47 = vld [vmem:[#allocation2 + $0x120] sm:$0xff]  ;;  %v1274_v48 = vld [vmem:[#allocation2 + $0x1a8] sm:$0xff]  ;;  %v1275_v50 = vld [vmem:[#allocation2 + $0x1b0] sm:$0xff] }
  0x59   : > { %1294 = vxpose.xlu0.b32.cont [10/16] (narrow) %v1230_v58, 8  ;;  %668 = vmatprep.mubr.f32.mxu1 %v3517_v3  ;;  %v1272_v3 = vld [vmem:[#allocation2 + $0x198] sm:$0xff]  ;;  %v1258_v49 = vld [vmem:[#allocation2 + $0x128] sm:$0xff]  ;;  %v1259_v51 = vld [vmem:[#allocation2 + $0x130] sm:$0xff] }
  0x5a   : > { %580 = vmatmul.mubr.f32.gmra.mxu0 %v410_v34  ;;  %v1276_v52 = vld [vmem:[#allocation2 + $0x1b8] sm:$0xff]  ;;  %v1277_v54 = vld [vmem:[#allocation2 + $0x1c0] sm:$0xff]  ;;  %v1278_v56 = vld [vmem:[#allocation2 + $0x1c8] sm:$0xff] }
  0x5b   : > { %v1260_v53 = vld [vmem:[#allocation2 + $0x138] sm:$0xff]  ;;  %v1261_v55 = vld [vmem:[#allocation2 + $0x140] sm:$0xff]  ;;  %v1262_v57 = vld [vmem:[#allocation2 + $0x148] sm:$0xff] }
  0x5c   : > { %1327 = vxpose.xlu1.b32.cont [11/16] (narrow) %v1247_v0, 8  ;;  %669 = vmatmul.mubr.f32.gmra.mxu1 %v410_v34  ;;  %v1279_v58 = vld [vmem:[#allocation2 + $0x1d0] sm:$0xff]  ;;  %v1280_v60 = vld [vmem:[#allocation2 + $0x1d8] sm:$0xff]  ;;  %v1281_v62 = vld [vmem:[#allocation2 + $0x1e0] sm:$0xff] }
  0x5d   : > { %1295 = vxpose.xlu0.b32.cont [11/16] (narrow) %v1231_v1, 8  ;;  %v1263_v59 = vld [vmem:[#allocation2 + $0x150] sm:$0xff]  ;;  %v1264_v61 = vld [vmem:[#allocation2 + $0x158] sm:$0xff]  ;;  %v1265_v63 = vld [vmem:[#allocation2 + $0x160] sm:$0xff] }
  0x5e   : > { %v1282_v0 = vld [vmem:[#allocation2 + $0x1e8] sm:$0xff]  ;;  %v1283_v2 = vld [vmem:[#allocation2 + $0x1f0] sm:$0xff]  ;;  %v1284_v5 = vld [vmem:[#allocation2 + $0x1f8] sm:$0xff] }
  0x5f   : > { %v1266_v1 = vld [vmem:[#allocation2 + $0x168] sm:$0xff]  ;;  %v1267_v4 = vld [vmem:[#allocation2 + $0x170] sm:$0xff]  ;;  %v1268_v6 = vld [vmem:[#allocation2 + $0x178] sm:$0xff] }
  0x60   : > { %1328 = vxpose.xlu1.b32.cont [12/16] (narrow) %v1248_v16, 8  ;;  %v818_v7 = vld [vmem:[%s5944_s4 + $0xf8] sm:$0xff]  ;;  %v817_v9 = vld [vmem:[%s5944_s4 + $0xf0] sm:$0xff]  ;;  %v816_v11 = vld [vmem:[%s5944_s4 + $0xe8] sm:$0xff] }
  0x61   : > { %1296 = vxpose.xlu0.b32.cont [12/16] (narrow) %v1232_v20, 8  ;;  %v802_v8 = vld [vmem:[%s5944_s4 + $0x78] sm:$0xff]  ;;  %3352 = vmatprep.subr.mxu0 %v818_v7  ;;  %v801_v10 = vld [vmem:[%s5944_s4 + $0x70] sm:$0xff]  ;;  %v800_v13 = vld [vmem:[%s5944_s4 + $0x68] sm:$0xff] }
  0x62   : > { %3353 = vmatpush3.msra.mxu0 %v802_v8  ;;  %v850_v12 = vld [vmem:[%s5944_s4 + $0x1f8] sm:$0xff]  ;;  %v815_v15 = vld [vmem:[%s5944_s4 + $0xe0] sm:$0xff]  ;;  %v849_v17 = vld [vmem:[%s5944_s4 + $0x1f0] sm:$0xff] }
  0x63   : > { %3354 = vmatprep.subr.mxu0 %v817_v9  ;;  %3396 = vmatprep.subr.mxu1 %v850_v12  ;;  %v834_v14 = vld [vmem:[%s5944_s4 + $0x178] sm:$0xff]  ;;  %v799_v18 = vld [vmem:[%s5944_s4 + $0x60] sm:$0xff]  ;;  %v833_v19 = vld [vmem:[%s5944_s4 + $0x170] sm:$0xff] }
  0x64   : > { %1329 = vxpose.xlu1.b32.cont [13/16] (narrow) %v1249_v29, 8  ;;  %3355 = vmatpush3.msra.mxu0 %v801_v10  ;;  %v814_v20 = vld [vmem:[%s5944_s4 + $0xd8] sm:$0xff]  ;;  %v848_v21 = vld [vmem:[%s5944_s4 + $0x1e8] sm:$0xff]  ;;  %v813_v24 = vld [vmem:[%s5944_s4 + $0xd0] sm:$0xff] }
  0x65   : > { %1297 = vxpose.xlu0.b32.cont [13/16] (narrow) %v1233_v30, 8  ;;  %3356 = vmatprep.subr.mxu0 %v816_v11  ;;  %v798_v22 = vld [vmem:[%s5944_s4 + $0x58] sm:$0xff]  ;;  %v832_v23 = vld [vmem:[%s5944_s4 + $0x168] sm:$0xff]  ;;  %v847_v25 = vld [vmem:[%s5944_s4 + $0x1e0] sm:$0xff]  ;;  %v477_v11 = vlaneseq }
  0x66   : > { %3397 = vmatpush3.msra.mxu1 %v834_v14  ;;  %3357 = vmatpush3.msra.mxu0 %v800_v13  ;;  %v797_v26 = vld [vmem:[%s5944_s4 + $0x50] sm:$0xff]  ;;  %v831_v27 = vld [vmem:[%s5944_s4 + $0x160] sm:$0xff]  ;;  %v812_v28 = vld [vmem:[%s5944_s4 + $0xc8] sm:$0xff] }
  0x67   : > { %3398 = vmatprep.subr.mxu1 %v849_v17  ;;  %3358 = vmatprep.subr.mxu0 %v815_v15  ;;  %v846_v29 = vld [vmem:[%s5944_s4 + $0x1d8] sm:$0xff]  ;;  %v796_v30 = vld [vmem:[%s5944_s4 + $0x48] sm:$0xff]  ;;  %v795_v34 = vld [vmem:[%s5944_s4 + $0x40] sm:$0xff]  ;;  %v478_v12 = vshrl.u32 %v477_v11, 7 }
  0x68   : > { %1330 = vxpose.xlu1.b32.cont [14/16] (narrow) %v1250_v32, 8  ;;  %3359 = vmatpush3.msra.mxu0 %v799_v18  ;;  %v830_v31 = vld [vmem:[%s5944_s4 + $0x158] sm:$0xff]  ;;  %v811_v32 = vld [vmem:[%s5944_s4 + $0xc0] sm:$0xff] }
  0x69   : > { %1298 = vxpose.xlu0.b32.cont [14/16] (narrow) %v1234_v33, 8  ;;  %3399 = vmatpush3.msra.mxu1 %v833_v19  ;;  %v845_v33 = vld [vmem:[%s5944_s4 + $0x1d0] sm:$0xff]  ;;  %v835_v7 = vld [vmem:[%s5944_s4 + $0x180] sm:$0xff]  ;;  %v479_v13 = vsub.s32 0, %v478_v12  ;;  %v483_v15 = vsub.s32 1, %v478_v12 }
  0x6a   : > { %3360 = vmatprep.subr.mxu0 %v814_v20  ;;  %3400 = vmatprep.subr.mxu1 %v848_v21  ;;  %v819_v8 = vld [vmem:[%s5944_s4 + $0x100] sm:$0xff]  ;;  %v487_v20 = vsub.s32 2, %v478_v12 }
  0x6b   : > { %3361 = vmatpush3.msra.mxu0 %v798_v22  ;;  %3401 = vmatpush3.msra.mxu1 %v832_v23  ;;  %v475_v14 = vld [vmem:[%s5943_s3] sm:$0xf]  ;;  %v491_v23 = vsub.s32 3, %v478_v12 }
  0x6c   : > { %1331 = vxpose.xlu1.b32.cont [15/16] (narrow) %v1251_v35, 8  ;;  %3362 = vmatprep.subr.mxu0 %v813_v24  ;;  %v829_v35 = vld [vmem:[%s5944_s4 + $0x150] sm:$0xff]  ;;  %v4289_v17 = vrot.slane %v475_v14, %v479_v13  ;;  %v4295_v18 = vrot.slane %v475_v14, %v483_v15 }
  0x6d   : > { %1299 = vxpose.xlu0.b32.cont [15/16] (narrow) %v1235_v36, 8  ;;  %3402 = vmatprep.subr.mxu1 %v847_v25  ;;  %v810_v36 = vld [vmem:[%s5944_s4 + $0xb8] sm:$0xff] }
  0x6e   : > { %3363 = vmatpush3.msra.mxu0 %v797_v26  ;;  %3403 = vmatpush3.msra.mxu1 %v831_v27  ;;  %v4309_v26 = vrot.slane %v475_v14, %v487_v20 }
  0x6f   : > { %3364 = vmatprep.subr.mxu0 %v812_v28  ;;  %3404 = vmatprep.subr.mxu1 %v846_v29  ;;  %v4313_v29 = vrot.slane %v475_v14, %v491_v23 }
  0x70   : > { %1332 = vxpose.xlu1.b32.end [16/16] (narrow) %v1252_v37, 8  ;;  %3365 = vmatpush3.msra.mxu0 %v796_v30 }
  0x71   : > { %1300 = vxpose.xlu0.b32.end [16/16] (narrow) %v1236_v38, 8  ;;  %3405 = vmatpush3.msra.mxu1 %v830_v31  ;;  %v844_v38 = vld [vmem:[%s5944_s4 + $0x1c8] sm:$0xff] }
  0x72   : > { %3366 = vmatprep.subr.mxu0 %v811_v32  ;;  %3406 = vmatprep.subr.mxu1 %v845_v33 }
  0x73   : > { %3367 = vmatpush3.msra.mxu0 %v795_v34  ;;  %3407 = vmatpush3.msra.mxu1 %v829_v35 }
  0x74   : > { %1381 = vxpose.xlu1.b32.start [1/16] (narrow) %v1269_v39, 8  ;;  %v794_v39 = vld [vmem:[%s5944_s4 + $0x38] sm:$0xff]  ;;  %3368 = vmatprep.subr.mxu0 %v810_v36 }
  0x75   : > { %1349 = vxpose.xlu0.b32.start [1/16] (narrow) %v1253_v40, 8  ;;  %v828_v40 = vld [vmem:[%s5944_s4 + $0x148] sm:$0xff]  ;;  %3408 = vmatprep.subr.mxu1 %v844_v38 }
  0x76   : > { %3369 = vmatpush3.msra.mxu0 %v794_v39  ;;  %3409 = vmatpush3.msra.mxu1 %v828_v40 }
  0x78   : > { %1382 = vxpose.xlu1.b32.cont [2/16] (narrow) %v1270_v41, 8  ;;  %v809_v41 = vld [vmem:[%s5944_s4 + $0xb0] sm:$0xff] }
  0x79   : > { %1350 = vxpose.xlu0.b32.cont [2/16] (narrow) %v1254_v42, 8  ;;  %v843_v42 = vld [vmem:[%s5944_s4 + $0x1c0] sm:$0xff]  ;;  %3370 = vmatprep.subr.mxu0 %v809_v41 }
  0x7a   : > { %3410 = vmatprep.subr.mxu1 %v843_v42 }
  0x7c   : > { %1383 = vxpose.xlu1.b32.cont [3/16] (narrow) %v1271_v43, 8  ;;  %v793_v43 = vld [vmem:[%s5944_s4 + $0x30] sm:$0xff] }
  0x7d   : > { %1351 = vxpose.xlu0.b32.cont [3/16] (narrow) %v1255_v44, 8  ;;  %v827_v44 = vld [vmem:[%s5944_s4 + $0x140] sm:$0xff]  ;;  %3371 = vmatpush3.msra.mxu0 %v793_v43 }
  0x7e   : > { %3411 = vmatpush3.msra.mxu1 %v827_v44 }
  0x80   : > { %1384 = vxpose.xlu1.b32.cont [4/16] (narrow) %v1272_v3, 8  ;;  %v808_v3 = vld [vmem:[%s5944_s4 + $0xa8] sm:$0xff] }
  0x81   : > { %1352 = vxpose.xlu0.b32.cont [4/16] (narrow) %v1256_v45, 8  ;;  %v842_v45 = vld [vmem:[%s5944_s4 + $0x1b8] sm:$0xff]  ;;  %3372 = vmatprep.subr.mxu0 %v808_v3 }
  0x82   : > { %3412 = vmatprep.subr.mxu1 %v842_v45 }
  0x84   : > { %1385 = vxpose.xlu1.b32.cont [5/16] (narrow) %v1273_v46, 8  ;;  %v792_v46 = vld [vmem:[%s5944_s4 + $0x28] sm:$0xff] }
  0x85   : > { %1353 = vxpose.xlu0.b32.cont [5/16] (narrow) %v1257_v47, 8  ;;  %v826_v47 = vld [vmem:[%s5944_s4 + $0x138] sm:$0xff]  ;;  %3373 = vmatpush3.msra.mxu0 %v792_v46 }
  0x86   : > { %3413 = vmatpush3.msra.mxu1 %v826_v47 }
  0x88   : > { %1386 = vxpose.xlu1.b32.cont [6/16] (narrow) %v1274_v48, 8  ;;  %v807_v48 = vld [vmem:[%s5944_s4 + $0xa0] sm:$0xff] }
  0x89   : > { %1354 = vxpose.xlu0.b32.cont [6/16] (narrow) %v1258_v49, 8  ;;  %v841_v49 = vld [vmem:[%s5944_s4 + $0x1b0] sm:$0xff]  ;;  %3374 = vmatprep.subr.mxu0 %v807_v48 }
  0x8a   : > { %3414 = vmatprep.subr.mxu1 %v841_v49 }
  0x8c   : > { %1387 = vxpose.xlu1.b32.cont [7/16] (narrow) %v1275_v50, 8  ;;  %v791_v50 = vld [vmem:[%s5944_s4 + $0x20] sm:$0xff] }
  0x8d   : > { %1355 = vxpose.xlu0.b32.cont [7/16] (narrow) %v1259_v51, 8  ;;  %v825_v51 = vld [vmem:[%s5944_s4 + $0x130] sm:$0xff]  ;;  %3375 = vmatpush3.msra.mxu0 %v791_v50 }
  0x8e   : > { %3415 = vmatpush3.msra.mxu1 %v825_v51 }
  0x90   : > { %1388 = vxpose.xlu1.b32.cont [8/16] (narrow) %v1276_v52, 8  ;;  %v806_v52 = vld [vmem:[%s5944_s4 + $0x98] sm:$0xff] }
  0x91   : > { %1356 = vxpose.xlu0.b32.cont [8/16] (narrow) %v1260_v53, 8  ;;  %v840_v53 = vld [vmem:[%s5944_s4 + $0x1a8] sm:$0xff]  ;;  %3376 = vmatprep.subr.mxu0 %v806_v52 }
  0x92   : > { %3416 = vmatprep.subr.mxu1 %v840_v53 }
  0x94   : > { %1389 = vxpose.xlu1.b32.cont [9/16] (narrow) %v1277_v54, 8  ;;  %v790_v54 = vld [vmem:[%s5944_s4 + $0x18] sm:$0xff] }
  0x95   : > { %1357 = vxpose.xlu0.b32.cont [9/16] (narrow) %v1261_v55, 8  ;;  %v824_v55 = vld [vmem:[%s5944_s4 + $0x128] sm:$0xff]  ;;  %3377 = vmatpush3.msra.mxu0 %v790_v54 }
  0x96   : > { %3417 = vmatpush3.msra.mxu1 %v824_v55 }
  0x98   : > { %1390 = vxpose.xlu1.b32.cont [10/16] (narrow) %v1278_v56, 8  ;;  %v805_v56 = vld [vmem:[%s5944_s4 + $0x90] sm:$0xff] }
  0x99   : > { %1358 = vxpose.xlu0.b32.cont [10/16] (narrow) %v1262_v57, 8  ;;  %v839_v57 = vld [vmem:[%s5944_s4 + $0x1a0] sm:$0xff]  ;;  %3378 = vmatprep.subr.mxu0 %v805_v56 }
  0x9a   : > { %3418 = vmatprep.subr.mxu1 %v839_v57 }
  0x9c   : > { %1391 = vxpose.xlu1.b32.cont [11/16] (narrow) %v1279_v58, 8  ;;  %v789_v58 = vld [vmem:[%s5944_s4 + $0x10] sm:$0xff] }
  0x9d   : > { %1359 = vxpose.xlu0.b32.cont [11/16] (narrow) %v1263_v59, 8  ;;  %v823_v59 = vld [vmem:[%s5944_s4 + $0x120] sm:$0xff]  ;;  %3379 = vmatpush3.msra.mxu0 %v789_v58 }
  0x9e   : > { %3419 = vmatpush3.msra.mxu1 %v823_v59 }
  0xa0   : > { %1392 = vxpose.xlu1.b32.cont [12/16] (narrow) %v1280_v60, 8  ;;  %v804_v60 = vld [vmem:[%s5944_s4 + $0x88] sm:$0xff] }
  0xa1   : > { %1360 = vxpose.xlu0.b32.cont [12/16] (narrow) %v1264_v61, 8  ;;  %v838_v61 = vld [vmem:[%s5944_s4 + $0x198] sm:$0xff]  ;;  %3380 = vmatprep.subr.mxu0 %v804_v60 }
  0xa2   : > { %3420 = vmatprep.subr.mxu1 %v838_v61 }
  0xa4   : > { %1393 = vxpose.xlu1.b32.cont [13/16] (narrow) %v1281_v62, 8  ;;  %v788_v62 = vld [vmem:[%s5944_s4 + $0x8] sm:$0xff] }
  0xa5   : > { %1361 = vxpose.xlu0.b32.cont [13/16] (narrow) %v1265_v63, 8  ;;  %v822_v63 = vld [vmem:[%s5944_s4 + $0x118] sm:$0xff]  ;;  %3381 = vmatpush3.msra.mxu0 %v788_v62 }
  0xa6   : > { %3421 = vmatpush3.msra.mxu1 %v822_v63 }
  0xa8   : > { %1394 = vxpose.xlu1.b32.cont [14/16] (narrow) %v1282_v0, 8  ;;  %v803_v0 = vld [vmem:[%s5944_s4 + $0x80] sm:$0xff] }
  0xa9   : > { %1362 = vxpose.xlu0.b32.cont [14/16] (narrow) %v1266_v1, 8  ;;  %v837_v1 = vld [vmem:[%s5944_s4 + $0x190] sm:$0xff]  ;;  %3382 = vmatprep.subr.mxu0 %v803_v0 }
  0xaa   : > { %3422 = vmatprep.subr.mxu1 %v837_v1 }
  0xac   : > { %1395 = vxpose.xlu1.b32.cont [15/16] (narrow) %v1283_v2, 8  ;;  %v787_v2 = vld [vmem:[%s5944_s4] sm:$0xff] }
  0xad   : > { %1363 = vxpose.xlu0.b32.cont [15/16] (narrow) %v1267_v4, 8  ;;  %v821_v4 = vld [vmem:[%s5944_s4 + $0x110] sm:$0xff]  ;;  %3383 = vmatpush3.msra.mxu0 %v787_v2 }
  0xae   : > { %3423 = vmatpush3.msra.mxu1 %v821_v4 }
  0xb0   : > { %1396 = vxpose.xlu1.b32.end [16/16] (narrow) %v1284_v5, 8  ;;  %v4066_v16 = vpop.trf.xlu1  ;;  %v836_v5 = vld [vmem:[%s5944_s4 + $0x188] sm:$0xff] }
  0xb1   : > { %1364 = vxpose.xlu0.b32.end [16/16] (narrow) %v1268_v6, 8  ;;  %v4130_v37 = vpop.trf.xlu0  ;;  %v820_v6 = vld [vmem:[%s5944_s4 + $0x108] sm:$0xff]  ;;  %3424 = vmatprep.subr.mxu1 %v836_v5 }
  0xb2   : > { %3425 = vmatpush3.msra.mxu1 %v820_v6 }
  0xb3   : > { %3426 = vmatprep.subr.mxu1 %v835_v7 }
  0xb4   : > { %3427 = vmatpush3.msra.mxu1 %v819_v8 }
  0xce   : > { %1784 = vrot.lane.b32.xlu1 %v4066_v16, %s3518_s21 }
  0xda   : > { %1782 = vrot.lane.b32.xlu0 %v4130_v37, %s3518_s21 }
  0xde   : > { %1758 = vrot.lane.b32.xlu0 %v4066_v16, %s3519_s19 }
  0xf0   : > { %v4241_v9 = vpop.trf.xlu1 }
  0xf1   : > { %v4243_v10 = vpop.trf.xlu0  ;;  %1762 = vrot.lane.b32.xlu0 %v4241_v9, %s3519_s19 }
  0xf2   : > { %1786 = vrot.lane.b32.xlu1 %v4243_v10, %s3518_s21 }
  0xf5   : > { %1728 = vrot.lane.b32.xlu0 %v4066_v16, %s3520_s23 }
  0xf6   : > { %1788 = vrot.lane.b32.xlu1 %v4241_v9, %s3518_s21 }
  0xf9   : > { %1732 = vrot.lane.b32.xlu0 %v4241_v9, %s3520_s23 }
  0xfa   : > { %1756 = vrot.lane.b32.xlu1 %v4130_v37, %s3519_s19 }
  0xfd   : > { %1702 = vrot.lane.b32.xlu0 %v4066_v16, %s3521_s24 }
  0xfe   : > { %1760 = vrot.lane.b32.xlu1 %v4243_v10, %s3519_s19 }
 0x101   : > { %1706 = vrot.lane.b32.xlu0 %v4241_v9, %s3521_s24 }
 0x102   : > { %1726 = vrot.lane.b32.xlu1 %v4130_v37, %s3520_s23 }
 0x105   : > { %1676 = vrot.lane.b32.xlu0 %v4066_v16, %s3522_s26 }
 0x106   : > { %1730 = vrot.lane.b32.xlu1 %v4243_v10, %s3520_s23 }
 0x108   : > { %v563_v19 = vpop.f32.mrf.mxu0 }
 0x109   : > { %1680 = vrot.lane.b32.xlu0 %v4241_v9, %s3522_s26  ;;  %v4298_v21 = vadd.f32 %v563_v19, %v4289_v17 }
 0x10a   : > { %1700 = vrot.lane.b32.xlu1 %v4130_v37, %s3521_s24  ;;  %v565_v22 = vpop.f32.mrf.mxu0 }
 0x10b   : > { %v675_v24 = vmul.f32 %v4298_v21, %v4298_v21  ;;  %v4307_v25 = vadd.f32 %v565_v22, %v4295_v18 }
 0x10d   : > { %1650 = vrot.lane.b32.xlu0 %v4066_v16, %s3523_s27  ;;  %v691_v27 = vmul.f32 0.035677407, %v675_v24  ;;  %v676_v28 = vmul.f32 %v4307_v25, %v4307_v25 }
 0x10e   : > { %1704 = vrot.lane.b32.xlu1 %v4243_v10, %s3521_s24 }
 0x10f   : > { %v707_v30 = vadd.f32 0.7978846, %v691_v27  ;;  %v692_v31 = vmul.f32 0.035677407, %v676_v28 }
 0x110   : > { %v652_v32 = vpop.f32.mrf.mxu1 }
 0x111   : > { %1654 = vrot.lane.b32.xlu0 %v4241_v9, %s3523_s27  ;;  %v4320_v33 = vadd.f32 %v652_v32, %v4309_v26  ;;  %v723_v34 = vmul.f32 %v707_v30, %v4298_v21  ;;  %v708_v35 = vadd.f32 0.7978846, %v692_v31 }
 0x112   : > { %1674 = vrot.lane.b32.xlu1 %v4130_v37, %s3522_s26  ;;  %v654_v36 = vpop.f32.mrf.mxu1  ;;  %v569_v41 = vpop.f32.mrf.mxu0 }
 0x113   : > { %v677_v38 = vmul.f32 %v4320_v33, %v4320_v33  ;;  %v4326_v39 = vadd.f32 %v654_v36, %v4313_v29  ;;  %3469 = vtanh.f32 %v723_v34  ;;  %v724_v40 = vmul.f32 %v708_v35, %v4307_v25 }
 0x114   : > { %v4336_v44 = vadd.f32 %v569_v41, %v4289_v17  ;;  %v571_v47 = vpop.f32.mrf.mxu0  ;;  %v658_v48 = vpop.f32.mrf.mxu1 }
 0x115   : > { %1624 = vrot.lane.b32.xlu0 %v4066_v16, %s3524_s29  ;;  %v693_v42 = vmul.f32 0.035677407, %v677_v38  ;;  %v678_v43 = vmul.f32 %v4326_v39, %v4326_v39  ;;  %3471 = vtanh.f32 %v724_v40  ;;  %v4346_v52 = vadd.f32 %v571_v47, %v4295_v18 }
 0x116   : > { %1678 = vrot.lane.b32.xlu1 %v4243_v10, %s3522_s26  ;;  %v679_v46 = vmul.f32 %v4336_v44, %v4336_v44  ;;  %v4349_v53 = vadd.f32 %v658_v48, %v4309_v26  ;;  %v575_v54 = vpop.f32.mrf.mxu0  ;;  %v660_v55 = vpop.f32.mrf.mxu1 }
 0x117   : > { %v709_v3 = vadd.f32 0.7978846, %v693_v42  ;;  %v694_v45 = vmul.f32 0.035677407, %v678_v43  ;;  %v680_v58 = vmul.f32 %v4346_v52, %v4346_v52  ;;  %v4361_v60 = vadd.f32 %v575_v54, %v4289_v17 }
 0x118   : > { %v695_v51 = vmul.f32 0.035677407, %v679_v46  ;;  %v681_v59 = vmul.f32 %v4349_v53, %v4349_v53  ;;  %v4364_v61 = vadd.f32 %v660_v55, %v4313_v29  ;;  %v577_v62 = vpop.f32.mrf.mxu0  ;;  %v664_v63 = vpop.f32.mrf.mxu1 }
 0x119   : > { %1628 = vrot.lane.b32.xlu0 %v4241_v9, %s3524_s29  ;;  %v725_v49 = vmul.f32 %v709_v3, %v4320_v33  ;;  %v710_v50 = vadd.f32 0.7978846, %v694_v45  ;;  %v696_v1 = vmul.f32 0.035677407, %v680_v58  ;;  %v4368_v2 = vadd.f32 %v577_v62, %v4295_v18 }
 0x11a   : > { %1648 = vrot.lane.b32.xlu1 %v4130_v37, %s3523_s27  ;;  %v711_v57 = vadd.f32 0.7978846, %v695_v51  ;;  %v697_v4 = vmul.f32 0.035677407, %v681_v59  ;;  %v683_v5 = vmul.f32 %v4361_v60, %v4361_v60  ;;  %v682_v6 = vmul.f32 %v4364_v61, %v4364_v61  ;;  %v581_v8 = vpop.f32.mrf.mxu0  ;;  %v666_v12 = vpop.f32.mrf.mxu1 }
 0x11b   : > { %3473 = vtanh.f32 %v725_v49  ;;  %v726_v56 = vmul.f32 %v710_v50, %v4326_v39  ;;  %v4375_v7 = vadd.f32 %v664_v63, %v4309_v26  ;;  %v712_v13 = vadd.f32 0.7978846, %v696_v1 }
 0x11c   : > { %v727_v0 = vmul.f32 %v711_v57, %v4336_v44  ;;  %v684_v14 = vmul.f32 %v4368_v2, %v4368_v2  ;;  %v4380_v15 = vadd.f32 %v581_v8, %v4289_v17  ;;  %v713_v19 = vadd.f32 0.7978846, %v697_v4  ;;  %v670_v31 = vpop.f32.mrf.mxu1  ;;  %v583_v43 = vpop.f32.mrf.mxu0 }
 0x11d   : > { %1598 = vrot.lane.b32.xlu0 %v4066_v16, %s5967_s30  ;;  %3475 = vtanh.f32 %v726_v56  ;;  %v699_v20 = vmul.f32 0.035677407, %v683_v5  ;;  %v698_v22 = vmul.f32 0.035677407, %v682_v6  ;;  %v685_v23 = vmul.f32 %v4375_v7, %v4375_v7 }
 0x11e   : > { %1652 = vrot.lane.b32.xlu1 %v4243_v10, %s3523_s27  ;;  %3477 = vtanh.f32 %v727_v0  ;;  %v728_v27 = vmul.f32 %v712_v13, %v4346_v52  ;;  %v700_v28 = vmul.f32 0.035677407, %v684_v14  ;;  %v687_v17 = vmul.f32 %v4380_v15, %v4380_v15  ;;  %v672_v51 = vpop.f32.mrf.mxu1 }
 0x11f   : > { %v4392_v30 = vadd.f32 %v666_v12, %v4313_v29  ;;  %v729_v34 = vmul.f32 %v713_v19, %v4349_v53  ;;  %v715_v35 = vadd.f32 0.7978846, %v699_v20  ;;  %v714_v36 = vadd.f32 0.7978846, %v698_v22 }
 0x120   : > { %v3470_v24 = vpop.eup %3469  ;;  %3479 = vtanh.f32 %v728_v27  ;;  %v716_v40 = vadd.f32 0.7978846, %v700_v28  ;;  %v701_v41 = vmul.f32 0.035677407, %v685_v23  ;;  %v703_v42 = vmul.f32 0.035677407, %v687_v17 }
 0x121   : > { %1602 = vrot.lane.b32.xlu0 %v4241_v9, %s5967_s30  ;;  %v755_v32 = vadd.f32 1.0, %v3470_v24  ;;  %3481 = vtanh.f32 %v729_v34  ;;  %v731_v46 = vmul.f32 %v715_v35, %v4361_v60  ;;  %v730_v47 = vmul.f32 %v714_v36, %v4364_v61 }
 0x122   : > { %1622 = vrot.lane.b32.xlu1 %v4130_v37, %s3524_s29  ;;  %v3472_v38 = vpop.eup %3471  ;;  %v732_v48 = vmul.f32 %v716_v40, %v4368_v2  ;;  %v717_v49 = vadd.f32 0.7978846, %v701_v41  ;;  %v719_v50 = vadd.f32 0.7978846, %v703_v42  ;;  %v686_v55 = vmul.f32 %v4392_v30, %v4392_v30 }
 0x123   : > { %v771_v3 = vmul.f32 %v755_v32, %v4298_v21  ;;  %v756_v45 = vadd.f32 1.0, %v3472_v38  ;;  %3483 = vtanh.f32 %v731_v46  ;;  %v4407_v56 = vadd.f32 %v583_v43, %v4295_v18 }
 0x124   : > { %3485 = vtanh.f32 %v730_v47  ;;  %v733_v21 = vmul.f32 %v717_v49, %v4375_v7  ;;  %v735_v57 = vmul.f32 %v719_v50, %v4380_v15  ;;  %v4412_v58 = vadd.f32 %v670_v31, %v4309_v26 }
 0x125   : > { %1572 = vrot.lane.b32.xlu0 %v4066_v16, %s5965_s12  ;;  %v772_v54 = vmul.f32 %v756_v45, %v4307_v25  ;;  %3487 = vtanh.f32 %v732_v48  ;;  %v702_v25 = vmul.f32 0.035677407, %v686_v55  ;;  %v688_v18 = vmul.f32 %v4407_v56, %v4407_v56 }
 0x126   : > { %1626 = vrot.lane.b32.xlu1 %v4243_v10, %s3524_s29  ;;  %v4421_v62 = vadd.f32 %v672_v51, %v4313_v29  ;;  %v689_v26 = vmul.f32 %v4412_v58, %v4412_v58  ;;  %3489 = vtanh.f32 %v733_v21 }
 0x127   : > { %922 = vmatprep.mubr.f32.mxu0 %v772_v54  ;;  %v718_v1 = vadd.f32 0.7978846, %v702_v25  ;;  %v704_v4 = vmul.f32 0.035677407, %v688_v18  ;;  %3491 = vtanh.f32 %v735_v57 }
 0x128   : > { %v3474_v59 = vpop.eup %3473  ;;  %923 = vmatmul.mubr.f32.vlgmr.msra.gmra.mxu0 %v771_v3  ;;  %v690_v5 = vmul.f32 %v4421_v62, %v4421_v62  ;;  %v705_v8 = vmul.f32 0.035677407, %v689_v26 }
 0x129   : > { %1576 = vrot.lane.b32.xlu0 %v4241_v9, %s5965_s12  ;;  %v757_v63 = vadd.f32 1.0, %v3474_v59  ;;  %v734_v29 = vmul.f32 %v718_v1, %v4392_v30  ;;  %v720_v13 = vadd.f32 0.7978846, %v704_v4 }
 0x12a   : > { %1596 = vrot.lane.b32.xlu1 %v4130_v37, %s5967_s30  ;;  %v3476_v0 = vpop.eup %3475  ;;  %v706_v14 = vmul.f32 0.035677407, %v690_v5  ;;  %v721_v22 = vadd.f32 0.7978846, %v705_v8  ;;  %v3198_v8 = vld [vmem:[%s5946_s6 + $0x1f8] sm:$0xff] }
 0x12b   : > { %v758_v6 = vadd.f32 1.0, %v3476_v0  ;;  %v3478_v12 = vpop.eup %3477  ;;  %v773_v19 = vmul.f32 %v757_v63, %v4320_v33  ;;  %3493 = vtanh.f32 %v734_v29  ;;  %v736_v23 = vmul.f32 %v720_v13, %v4407_v56 }
 0x12c   : > { %v722_v24 = vadd.f32 0.7978846, %v706_v14  ;;  %v737_v27 = vmul.f32 %v721_v22, %v4412_v58  ;;  %v759_v31 = vadd.f32 1.0, %v3478_v12  ;;  %v3194_v22 = vld [vmem:[%s5946_s6 + $0x1d8] sm:$0xff] }
 0x12d   : > { %1546 = vrot.lane.b32.xlu0 %v4066_v16, %s5963_s13  ;;  %v774_v20 = vmul.f32 %v758_v6, %v4326_v39  ;;  %v3480_v28 = vpop.eup %3479  ;;  %3495 = vtanh.f32 %v736_v23  ;;  %v3197_v6 = vld [vmem:[%s5946_s6 + $0x1f0] sm:$0xff] }
 0x12e   : > { %1600 = vrot.lane.b32.xlu1 %v4243_v10, %s5967_s30  ;;  %v738_v33 = vmul.f32 %v722_v24, %v4421_v62  ;;  %v3482_v17 = vpop.eup %3481  ;;  %3497 = vtanh.f32 %v737_v27  ;;  %v760_v39 = vadd.f32 1.0, %v3480_v28  ;;  %v775_v36 = vmul.f32 %v759_v31, %v4336_v44  ;;  %v3191_v31 = vld [vmem:[%s5946_s6 + $0x1c0] sm:$0xff] }
 0x12f   : > { %1007 = vmatprep.mubr.f32.mxu1 %v774_v20  ;;  %v761_v38 = vadd.f32 1.0, %v3482_v17  ;;  %v3192_v17 = vld [vmem:[%s5946_s6 + $0x1c8] sm:$0xff] }
 0x130   : > { %1008 = vmatmul.mubr.f32.vlgmr.msra.gmra.mxu1 %v773_v19  ;;  %3499 = vtanh.f32 %v738_v33  ;;  %v3484_v32 = vpop.eup %3483  ;;  %v776_v34 = vmul.f32 %v760_v39, %v4346_v52  ;;  %v3193_v33 = vld [vmem:[%s5946_s6 + $0x1d0] sm:$0xff]  ;;  %v1978_v39 = vld [vmem:[%s5947_s7 + $0x8] sm:$0xff] }
 0x131   : > { %1550 = vrot.lane.b32.xlu0 %v4241_v9, %s5963_s13  ;;  %v3486_v35 = vpop.eup %3485  ;;  %v777_v42 = vmul.f32 %v761_v38, %v4349_v53  ;;  %v763_v3 = vadd.f32 1.0, %v3484_v32 }
 0x132   : > { %1570 = vrot.lane.b32.xlu1 %v4130_v37, %s5965_s12  ;;  %v3488_v40 = vpop.eup %3487  ;;  %927 = vmatprep.mubr.f32.mxu0 %v776_v34  ;;  %v762_v41 = vadd.f32 1.0, %v3486_v35 }
 0x133   : > { %928 = vmatmul.mubr.f32.gmra.mxu0 %v775_v36  ;;  %v764_v43 = vadd.f32 1.0, %v3488_v40  ;;  %v3490_v52 = vpop.eup %3489  ;;  %v779_v47 = vmul.f32 %v763_v3, %v4361_v60  ;;  %v3188_v3 = vld [vmem:[%s5946_s6 + $0x188] sm:$0xff] }
 0x134   : > { %v778_v45 = vmul.f32 %v762_v41, %v4364_v61  ;;  %v3492_v46 = vpop.eup %3491  ;;  %v765_v53 = vadd.f32 1.0, %v3490_v52 }
 0x135   : > { %1520 = vrot.lane.b32.xlu0 %v4066_v16, %s5957_s14  ;;  %v780_v44 = vmul.f32 %v764_v43, %v4368_v2  ;;  %v767_v49 = vadd.f32 1.0, %v3492_v46  ;;  %v3187_v43 = vld [vmem:[%s5946_s6 + $0x180] sm:$0xff] }
 0x136   : > { %1574 = vrot.lane.b32.xlu1 %v4243_v10, %s5965_s12  ;;  %1012 = vmatprep.mubr.f32.mxu1 %v778_v45  ;;  %v781_v60 = vmul.f32 %v765_v53, %v4375_v7  ;;  %s5984_s12 = smov 119  }
 0x137   : > { %1013 = vmatmul.mubr.f32.gmra.mxu1 %v777_v42  ;;  %932 = vmatprep.mubr.f32.mxu0 %v780_v44  ;;  %v783_v21 = vmul.f32 %v767_v49, %v4380_v15  ;;  %v3190_v49 = vld [vmem:[%s5946_s6 + $0x198] sm:$0xff] }
 0x138   : > { %v3494_v48 = vpop.eup %3493  ;;  %933 = vmatmul.mubr.f32.gmra.mxu0 %v779_v47 }
 0x139   : > { %1524 = vrot.lane.b32.xlu0 %v4241_v9, %s5957_s14  ;;  %v766_v61 = vadd.f32 1.0, %v3494_v48  ;;  %v3189_v48 = vld [vmem:[%s5946_s6 + $0x190] sm:$0xff] }
 0x13a   : > { %1544 = vrot.lane.b32.xlu1 %v4130_v37, %s5963_s13  ;;  %v3496_v50 = vpop.eup %3495 }
 0x13b   : > { %v3498_v51 = vpop.eup %3497  ;;  %v782_v2 = vmul.f32 %v766_v61, %v4392_v30  ;;  %v768_v54 = vadd.f32 1.0, %v3496_v50  ;;  %v3535_v50 = vmov 0  }
 0x13c   : > { %v769_v57 = vadd.f32 1.0, %v3498_v51  ;;  %3467 = vset.pattern.permute.xlu1 %v3535_v50  ;;  %3468 = vset.pattern.permute.xlu0 %v3535_v50 }
 0x13d   : > { %1494 = vrot.lane.b32.xlu0 %v4066_v16, %s5955_s16  ;;  %v3500_v55 = vpop.eup %3499  ;;  %v784_v59 = vmul.f32 %v768_v54, %v4407_v56  ;;  %1017 = vmatprep.mubr.f32.mxu1 %v782_v2  ;;  %v4478_v56 = vand.u32 127, %v477_v11  ;;  %v3196_v11 = vld [vmem:[%s5946_s6 + $0x1e8] sm:$0xff] }
 0x13e   : > { %1548 = vrot.lane.b32.xlu1 %v4243_v10, %s5963_s13  ;;  %v770_v25 = vadd.f32 1.0, %v3500_v55  ;;  %1018 = vmatmul.mubr.f32.gmra.mxu1 %v781_v60  ;;  %v785_v7 = vmul.f32 %v769_v57, %v4412_v58  ;;  %v3183_v60 = vld [vmem:[%s5946_s6 + $0x160] sm:$0xff]  ;;  %v3184_v54 = vld [vmem:[%s5946_s6 + $0x168] sm:$0xff]  ;;  %s5983_s13 = smov 73  }
 0x13f   : > { %937 = vmatprep.mubr.f32.mxu0 %v784_v59  ;;  %vm1790_vm1 = vcmp.lt.s32.totalorder %v4478_v56, 121  ;;  %vm1764_vm2 = vcmp.lt.s32.totalorder %v4478_v56, 127  ;;  %vm1734_vm4 = vcmp.lt.s32.totalorder %v4478_v56, 1  ;;  %vm1708_vm5 = vcmp.lt.s32.totalorder %v4478_v56, 7 }
 0x140   : > { %v786_v30 = vmul.f32 %v770_v25, %v4421_v62  ;;  %938 = vmatmul.mubr.f32.gmra.mxu0 %v783_v21  ;;  %v1785_v58 = vpop.permute.xlu1 %1784  ;;  %v3195_v62 = vld [vmem:[%s5946_s6 + $0x1e0] sm:$0xff]  ;;  %vm1682_vm6 = vcmp.lt.s32.totalorder %v4478_v56, 8  ;;  %vm1656_vm7 = vcmp.lt.s32.totalorder %v4478_v56, 9  ;;  %vm1630_vm8 = vcmp.lt.s32.totalorder %v4478_v56, 55 }
 0x141   : > { %1498 = vrot.lane.b32.xlu0 %v4241_v9, %s5955_s16  ;;  %3243 = vmatprep.mubr.msk.f32.mxu0 %vm2093_vm3, %v1978_v39  ;;  %vm1604_vm9 = vcmp.lt.s32.totalorder %v4478_v56, 56  ;;  %vm1578_vm10 = vcmp.lt.s32.totalorder %v4478_v56, 57  ;;  %vm1552_vm11 = vcmp.lt.s32.totalorder %v4478_v56, 63  ;;  %vm1526_vm12 = vcmp.lt.s32.totalorder %v4478_v56, 64 }
 0x142   : > { %1518 = vrot.lane.b32.xlu1 %v4130_v37, %s5957_s14  ;;  %1022 = vmatprep.mubr.f32.mxu1 %v786_v30  ;;  %vm1500_vm13 = vcmp.lt.s32.totalorder %v4478_v56, 65  ;;  %vm1474_vm14 = vcmp.lt.s32.totalorder %v4478_v56, 71  ;;  %vm5974_vm15 = vcmp.lt.s32.totalorder %v4478_v56, 72  ;;  %vm5973_vm0 = vcmp.lt.s32.totalorder %v4478_v56, 73 }
 0x143   : > { %1023 = vmatmul.mubr.f32.gmra.mxu1 %v785_v7  ;;  %v3185_v7 = vld [vmem:[%s5946_s6 + $0x170] sm:$0xff] }
 0x144   : > { %3244 = vmatprep.mubr.msk.f32.mxu1 %vm2093_vm3, %v1978_v39 }
 0x145   : > { %1468 = vrot.lane.b32.xlu0 %v4066_v16, %s5953_s20 }
 0x146   : > { %1522 = vrot.lane.b32.xlu1 %v4243_v10, %s5957_s14 }
 0x149   : > { %1472 = vrot.lane.b32.xlu0 %v4241_v9, %s5953_s20 }
 0x14a   : > { %1492 = vrot.lane.b32.xlu1 %v4130_v37, %s5955_s16 }
 0x14c   : > { %v1783_v15 = vpop.permute.xlu0 %1782 }
 0x14d   : > { %1442 = vrot.lane.b32.xlu0 %v4066_v16, %s5959_s22  ;;  %v1793_v63 = vsel %vm1790_vm1, %v1783_v15, %v1785_v58 }
 0x14e   : > { %1496 = vrot.lane.b32.xlu1 %v4243_v10, %s5955_s16  ;;  %v1800_v5 = vmul.f32 %v3195_v62, %v1793_v63 }
 0x150   : > { %v1759_v18 = vpop.permute.xlu0 %1758 }
 0x151   : > { %1446 = vrot.lane.b32.xlu0 %v4241_v9, %s5959_s22 }
 0x152   : > { %1466 = vrot.lane.b32.xlu1 %v4130_v37, %s5953_s20 }
 0x155   : > { %1415 = vrot.lane.b32.xlu0 %v4066_v16, %s5961_s15 }
 0x156   : > { %1470 = vrot.lane.b32.xlu1 %v4243_v10, %s5953_s20 }
 0x159   : > { %1419 = vrot.lane.b32.xlu0 %v4241_v9, %s5961_s15 }
 0x15a   : > { %1440 = vrot.lane.b32.xlu1 %v4130_v37, %s5959_s22 }
 0x15d   : > { %1836 = vrot.lane.b32.xlu0 %v4066_v16, %s5971_s25 }
 0x15e   : > { %1444 = vrot.lane.b32.xlu1 %v4243_v10, %s5959_s22  ;;  %s5969_s22 = smov 120  }
 0x161   : > { %1840 = vrot.lane.b32.xlu0 %v4241_v9, %s5971_s25 }
 0x162   : > { %1413 = vrot.lane.b32.xlu1 %v4130_v37, %s5961_s15 }
 0x163   : > { %v1763_v0 = vpop.permute.xlu0 %1762 }
 0x164   : > { %v1787_v26 = vpop.permute.xlu1 %1786 }
 0x165   : > { %v1792_v1 = vsel %vm1790_vm1, %v1785_v58, %v1787_v26  ;;  %1810 = vrot.lane.b32.xlu0 %v4066_v16, %s5969_s22 }
 0x166   : > { %1417 = vrot.lane.b32.xlu1 %v4243_v10, %s5961_s15  ;;  %v1801_v4 = vmul.f32 %v3196_v11, %v1792_v1  ;;  %v3180_v1 = vld [vmem:[%s5946_s6 + $0x148] sm:$0xff]  ;;  %s5985_s15 = smov 120  }
 0x167   : > { %v1729_v29 = vpop.permute.xlu0 %1728 }
 0x168   : > { %2097 = vmatprep.subr.mxu0 %v1801_v4  ;;  %v1789_v12 = vpop.permute.xlu1 %1788 }
 0x169   : > { %v1791_v13 = vsel %vm1790_vm1, %v1787_v26, %v1789_v12  ;;  %v1794_v14 = vsel %vm1790_vm1, %v1789_v12, %v1783_v15  ;;  %2098 = vmatpush1.msra.mxu0 %v1800_v5  ;;  %1814 = vrot.lane.b32.xlu0 %v4241_v9, %s5969_s22  ;;  %v3186_v15 = vld [vmem:[%s5946_s6 + $0x178] sm:$0xff] }
 0x16a   : > { %v1802_v19 = vmul.f32 %v3197_v6, %v1791_v13  ;;  %1834 = vrot.lane.b32.xlu1 %v4130_v37, %s5971_s25  ;;  %v1803_v20 = vmul.f32 %v3198_v8, %v1794_v14  ;;  %v3181_v13 = vld [vmem:[%s5946_s6 + $0x150] sm:$0xff]  ;;  %v3182_v14 = vld [vmem:[%s5946_s6 + $0x158] sm:$0xff] }
 0x16b   : > { %v1733_v24 = vpop.permute.xlu0 %1732 }
 0x16c   : > { %v1757_v23 = vpop.permute.xlu1 %1756  ;;  %2168 = vmatprep.subr.mxu1 %v1803_v20 }
 0x16d   : > { %v1768_v27 = vsel %vm1764_vm2, %v1763_v0, %v1757_v23  ;;  %2169 = vmatpush1.msra.mxu1 %v1802_v19  ;;  %v1767_v32 = vsel %vm1764_vm2, %v1757_v23, %v1759_v18 }
 0x16e   : > { %1838 = vrot.lane.b32.xlu1 %v4243_v10, %s5971_s25  ;;  %v1777_v28 = vmul.f32 %v3194_v22, %v1768_v27  ;;  %v1774_v42 = vmul.f32 %v3191_v31, %v1767_v32 }
 0x16f   : > { %v1703_v35 = vpop.permute.xlu0 %1702 }
 0x170   : > { %v1761_v34 = vpop.permute.xlu1 %1760  ;;  %2170 = vmatprep.subr.mxu1 %v1777_v28  ;;  %v3175_v28 = vld [vmem:[%s5946_s6 + $0x120] sm:$0xff] }
 0x171   : > { %v1765_v36 = vsel %vm1764_vm2, %v1761_v34, %v1763_v0  ;;  %v1766_v38 = vsel %vm1764_vm2, %v1759_v18, %v1761_v34  ;;  %v3179_v0 = vld [vmem:[%s5946_s6 + $0x140] sm:$0xff] }
 0x172   : > { %v1776_v40 = vmul.f32 %v3193_v33, %v1765_v36  ;;  %1808 = vrot.lane.b32.xlu1 %v4130_v37, %s5969_s22  ;;  %v1775_v41 = vmul.f32 %v3192_v17, %v1766_v38  ;;  %v3176_v33 = vld [vmem:[%s5946_s6 + $0x128] sm:$0xff]  ;;  %v3177_v36 = vld [vmem:[%s5946_s6 + $0x130] sm:$0xff]  ;;  %v3178_v38 = vld [vmem:[%s5946_s6 + $0x138] sm:$0xff] }
 0x173   : > { %v1707_v45 = vpop.permute.xlu0 %1706 }
 0x174   : > { %v1727_v52 = vpop.permute.xlu1 %1726  ;;  %2099 = vmatprep.subr.mxu0 %v1775_v41  ;;  %2171 = vmatpush1.msra.mxu1 %v1776_v40 }
 0x175   : > { %v1737_v46 = vsel %vm1734_vm4, %v1727_v52, %v1729_v29  ;;  %v1738_v44 = vsel %vm1734_vm4, %v1733_v24, %v1727_v52  ;;  %2100 = vmatpush1.msra.mxu0 %v1774_v42  ;;  %2172 = vmatprep.subr.mxu1 %v4241_v9  ;;  %v2087_v9 = vld [vmem:[%s5948_s8] sm:$0xff] }
 0x176   : > { %v1744_v47 = vmul.f32 %v3187_v43, %v1738_v44  ;;  %1812 = vrot.lane.b32.xlu1 %v4243_v10, %s5969_s22  ;;  %2101 = vmatprep.subr.mxu0 %v4066_v16  ;;  %v1745_v53 = vmul.f32 %v3188_v3, %v1737_v46  ;;  %v3172_v46 = vld [vmem:[%s5946_s6 + $0x108] sm:$0xff] }
 0x177   : > { %2173 = vmatpush1.msra.mxu1 %v4243_v10  ;;  %2102 = vmatpush1.msra.mxu0 %v4130_v37  ;;  %v1677_v16 = vpop.permute.xlu0 %1676 }
 0x178   : > { %v1731_v61 = vpop.permute.xlu1 %1730  ;;  %2103 = vmatprep.subr.mxu0 %v1745_v53 }
 0x179   : > { %v1735_v37 = vsel %vm1734_vm4, %v1731_v61, %v1733_v24  ;;  %v1736_v10 = vsel %vm1734_vm4, %v1729_v29, %v1731_v61  ;;  %2104 = vmatpush1.msra.mxu0 %v1744_v47  ;;  %v3173_v61 = vld [vmem:[%s5946_s6 + $0x110] sm:$0xff] }
 0x17a   : > { %v1746_v51 = vmul.f32 %v3189_v48, %v1736_v10  ;;  %v1747_v2 = vmul.f32 %v3190_v49, %v1735_v37  ;;  %2090 = vperm.xlu1 %3467, %v2087_v9  }
 0x17b   : > { %v1681_v21 = vpop.permute.xlu0 %1680 }
 0x17c   : > { %v1701_v55 = vpop.permute.xlu1 %1700  ;;  %2174 = vmatprep.subr.mxu1 %v1747_v2 }
 0x17d   : > { %v1711_v57 = vsel %vm1708_vm5, %v1701_v55, %v1703_v35  ;;  %v1712_v59 = vsel %vm1708_vm5, %v1707_v45, %v1701_v55  ;;  %2175 = vmatpush1.msra.mxu1 %v1746_v51  ;;  %v3168_v55 = vld [vmem:[%s5946_s6 + $0xe8] sm:$0xff] }
 0x17e   : > { %v1718_v25 = vmul.f32 %v3183_v60, %v1712_v59  ;;  %v1719_v30 = vmul.f32 %v3184_v54, %v1711_v57  ;;  %v3167_v54 = vld [vmem:[%s5946_s6 + $0xe0] sm:$0xff] }
 0x17f   : > { %v1651_v18 = vpop.permute.xlu0 %1650 }
 0x180   : > { %v1705_v58 = vpop.permute.xlu1 %1704  ;;  %2105 = vmatprep.subr.mxu0 %v1719_v30 }
 0x181   : > { %v1709_v11 = vsel %vm1708_vm5, %v1705_v58, %v1707_v45  ;;  %v1710_v62 = vsel %vm1708_vm5, %v1703_v35, %v1705_v58  ;;  %2106 = vmatpush1.msra.mxu0 %v1718_v25  ;;  %v3171_v45 = vld [vmem:[%s5946_s6 + $0x100] sm:$0xff]  ;;  %v3170_v58 = vld [vmem:[%s5946_s6 + $0xf8] sm:$0xff] }
 0x182   : > { %v1720_v63 = vmul.f32 %v3185_v7, %v1710_v62  ;;  %v1721_v26 = vmul.f32 %v3186_v15, %v1709_v11  ;;  %v3169_v15 = vld [vmem:[%s5946_s6 + $0xf0] sm:$0xff] }
 0x183   : > { %v1655_v5 = vpop.permute.xlu0 %1654 }
 0x184   : > { %v1675_v4 = vpop.permute.xlu1 %1674  ;;  %2176 = vmatprep.subr.mxu1 %v1721_v26 }
 0x185   : > { %v1685_v6 = vsel %vm1682_vm6, %v1675_v4, %v1677_v16  ;;  %v1686_v8 = vsel %vm1682_vm6, %v1681_v21, %v1675_v4  ;;  %2177 = vmatpush1.msra.mxu1 %v1720_v63  ;;  %v3164_v4 = vld [vmem:[%s5946_s6 + $0xc8] sm:$0xff] }
 0x186   : > { %v1692_v12 = vmul.f32 %v3179_v0, %v1686_v8  ;;  %v1693_v29 = vmul.f32 %v3180_v1, %v1685_v6  ;;  %v3163_v1 = vld [vmem:[%s5946_s6 + $0xc0] sm:$0xff] }
 0x187   : > { %v1625_v20 = vpop.permute.xlu0 %1624 }
 0x188   : > { %v1679_v19 = vpop.permute.xlu1 %1678  ;;  %2107 = vmatprep.subr.mxu0 %v1693_v29 }
 0x189   : > { %v1683_v22 = vsel %vm1682_vm6, %v1679_v19, %v1681_v21  ;;  %v1684_v23 = vsel %vm1682_vm6, %v1677_v16, %v1679_v19  ;;  %2108 = vmatpush1.msra.mxu0 %v1692_v12  ;;  %v3174_v16 = vld [vmem:[%s5946_s6 + $0x118] sm:$0xff] }
 0x18a   : > { %v1694_v24 = vmul.f32 %v3181_v13, %v1684_v23  ;;  %v1695_v27 = vmul.f32 %v3182_v14, %v1683_v22  ;;  %v3165_v14 = vld [vmem:[%s5946_s6 + $0xd0] sm:$0xff]  ;;  %v3166_v19 = vld [vmem:[%s5946_s6 + $0xd8] sm:$0xff] }
 0x18b   : > { %v1629_v39 = vpop.permute.xlu0 %1628 }
 0x18c   : > { %v1649_v17 = vpop.permute.xlu1 %1648  ;;  %2178 = vmatprep.subr.mxu1 %v1695_v27 }
 0x18d   : > { %v1659_v31 = vsel %vm1656_vm7, %v1649_v17, %v1651_v18  ;;  %v1660_v32 = vsel %vm1656_vm7, %v1655_v5, %v1649_v17  ;;  %2179 = vmatpush1.msra.mxu1 %v1694_v24  ;;  %v3160_v17 = vld [vmem:[%s5946_s6 + $0xa8] sm:$0xff] }
 0x18e   : > { %v1666_v34 = vmul.f32 %v3175_v28, %v1660_v32  ;;  %v1667_v35 = vmul.f32 %v3176_v33, %v1659_v31  ;;  %v3159_v33 = vld [vmem:[%s5946_s6 + $0xa0] sm:$0xff] }
 0x18f   : > { %v1599_v41 = vpop.permute.xlu0 %1598 }
 0x190   : > { %v1653_v40 = vpop.permute.xlu1 %1652  ;;  %2109 = vmatprep.subr.mxu0 %v1667_v35 }
 0x191   : > { %v1657_v42 = vsel %vm1656_vm7, %v1653_v40, %v1655_v5  ;;  %v1658_v43 = vsel %vm1656_vm7, %v1651_v18, %v1653_v40  ;;  %2110 = vmatpush1.msra.mxu0 %v1666_v34  ;;  %v3162_v40 = vld [vmem:[%s5946_s6 + $0xb8] sm:$0xff] }
 0x192   : > { %v1668_v3 = vmul.f32 %v3177_v36, %v1658_v43  ;;  %v1669_v52 = vmul.f32 %v3178_v38, %v1657_v42  ;;  %v3161_v38 = vld [vmem:[%s5946_s6 + $0xb0] sm:$0xff] }
 0x193   : > { %v1603_v47 = vpop.permute.xlu0 %1602 }
 0x194   : > { %v1623_v44 = vpop.permute.xlu1 %1622  ;;  %2180 = vmatprep.subr.mxu1 %v1669_v52 }
 0x195   : > { %v4649_v53 = vsel %vm1630_vm8, %v1623_v44, %v1625_v20  ;;  %v4653_v48 = vsel %vm1630_vm8, %v1629_v39, %v1623_v44  ;;  %2181 = vmatpush1.msra.mxu1 %v1668_v3  ;;  %v3156_v44 = vld [vmem:[%s5946_s6 + $0x88] sm:$0xff] }
 0x196   : > { %v1640_v49 = vmul.f32 %v3171_v45, %v4653_v48  ;;  %v1641_v9 = vmul.f32 %v3172_v46, %v4649_v53  ;;  %v3155_v46 = vld [vmem:[%s5946_s6 + $0x80] sm:$0xff] }
 0x197   : > { %v1573_v37 = vpop.permute.xlu0 %1572 }
 0x198   : > { %v1627_v50 = vpop.permute.xlu1 %1626  ;;  %2111 = vmatprep.subr.mxu0 %v1641_v9 }
 0x199   : > { %v4665_v10 = vsel %vm1630_vm8, %v1627_v50, %v1629_v39  ;;  %v4669_v51 = vsel %vm1630_vm8, %v1625_v20, %v1627_v50  ;;  %2112 = vmatpush1.msra.mxu0 %v1640_v49 }
 0x19a   : > { %v1642_v2 = vmul.f32 %v3173_v61, %v4669_v51  ;;  %v1643_v60 = vmul.f32 %v3174_v16, %v4665_v10 }
 0x19b   : > { %v1577_v57 = vpop.permute.xlu0 %1576 }
 0x19c   : > { %v1597_v21 = vpop.permute.xlu1 %1596  ;;  %2182 = vmatprep.subr.mxu1 %v1643_v60 }
 0x19d   : > { %v4682_v59 = vsel %vm1604_vm9, %v1597_v21, %v1599_v41  ;;  %v4686_v25 = vsel %vm1604_vm9, %v1603_v47, %v1597_v21  ;;  %2183 = vmatpush1.msra.mxu1 %v1642_v2  ;;  %v3158_v2 = vld [vmem:[%s5946_s6 + $0x98] sm:$0xff] }
 0x19e   : > { %v1614_v30 = vmul.f32 %v3167_v54, %v4686_v25  ;;  %v1615_v7 = vmul.f32 %v3168_v55, %v4682_v59 }
 0x19f   : > { %v1547_v11 = vpop.permute.xlu0 %1546 }
 0x1a0   : > { %v1601_v18 = vpop.permute.xlu1 %1600  ;;  %2113 = vmatprep.subr.mxu0 %v1615_v7  ;;  %v3151_v7 = vld [vmem:[%s5946_s6 + $0x60] sm:$0xff] }
 0x1a1   : > { %v4698_v62 = vsel %vm1604_vm9, %v1601_v18, %v1603_v47  ;;  %v4702_v63 = vsel %vm1604_vm9, %v1599_v41, %v1601_v18  ;;  %2114 = vmatpush1.msra.mxu0 %v1614_v30 }
 0x1a2   : > { %v1616_v26 = vmul.f32 %v3169_v15, %v4702_v63  ;;  %v1617_v0 = vmul.f32 %v3170_v58, %v4698_v62  ;;  %v3152_v15 = vld [vmem:[%s5946_s6 + $0x68] sm:$0xff] }
 0x1a3   : > { %v1551_v6 = vpop.permute.xlu0 %1550 }
 0x1a4   : > { %v1571_v5 = vpop.permute.xlu1 %1570  ;;  %2184 = vmatprep.subr.mxu1 %v1617_v0 }
 0x1a5   : > { %v4715_v8 = vsel %vm1578_vm10, %v1571_v5, %v1573_v37  ;;  %v4719_v12 = vsel %vm1578_vm10, %v1577_v57, %v1571_v5  ;;  %2185 = vmatpush1.msra.mxu1 %v1616_v26  ;;  %v3154_v5 = vld [vmem:[%s5946_s6 + $0x78] sm:$0xff] }
 0x1a6   : > { %v1588_v29 = vmul.f32 %v3163_v1, %v4719_v12  ;;  %v1589_v13 = vmul.f32 %v3164_v4, %v4715_v8  ;;  %v3153_v4 = vld [vmem:[%s5946_s6 + $0x70] sm:$0xff] }
 0x1a7   : > { %v1521_v22 = vpop.permute.xlu0 %1520 }
 0x1a8   : > { %v1575_v20 = vpop.permute.xlu1 %1574  ;;  %2115 = vmatprep.subr.mxu0 %v1589_v13 }
 0x1a9   : > { %v4731_v23 = vsel %vm1578_vm10, %v1575_v20, %v1577_v57  ;;  %v4735_v24 = vsel %vm1578_vm10, %v1573_v37, %v1575_v20  ;;  %2116 = vmatpush1.msra.mxu0 %v1588_v29  ;;  %v3157_v37 = vld [vmem:[%s5946_s6 + $0x90] sm:$0xff] }
 0x1aa   : > { %v1590_v27 = vmul.f32 %v3165_v14, %v4735_v24  ;;  %v1591_v28 = vmul.f32 %v3166_v19, %v4731_v23 }
 0x1ab   : > { %v1525_v31 = vpop.permute.xlu0 %1524 }
 0x1ac   : > { %v1545_v39 = vpop.permute.xlu1 %1544  ;;  %2186 = vmatprep.subr.mxu1 %v1591_v28 }
 0x1ad   : > { %v4748_v32 = vsel %vm1552_vm11, %v1545_v39, %v1547_v11  ;;  %v4752_v34 = vsel %vm1552_vm11, %v1551_v6, %v1545_v39  ;;  %2187 = vmatpush1.msra.mxu1 %v1590_v27  ;;  %v3148_v27 = vld [vmem:[%s5946_s6 + $0x48] sm:$0xff] }
 0x1ae   : > { %v1562_v35 = vmul.f32 %v3159_v33, %v4752_v34  ;;  %v1563_v36 = vmul.f32 %v3160_v17, %v4748_v32 }
 0x1af   : > { %v1495_v42 = vpop.permute.xlu0 %1494 }
 0x1b0   : > { %v1549_v41 = vpop.permute.xlu1 %1548  ;;  %2117 = vmatprep.subr.mxu0 %v1563_v36  ;;  %v3150_v36 = vld [vmem:[%s5946_s6 + $0x58] sm:$0xff] }
 0x1b1   : > { %v4764_v43 = vsel %vm1552_vm11, %v1549_v41, %v1551_v6  ;;  %v4768_v3 = vsel %vm1552_vm11, %v1547_v11, %v1549_v41  ;;  %2118 = vmatpush1.msra.mxu0 %v1562_v35  ;;  %v3149_v35 = vld [vmem:[%s5946_s6 + $0x50] sm:$0xff] }
 0x1b2   : > { %v1564_v52 = vmul.f32 %v3161_v38, %v4768_v3  ;;  %v1565_v45 = vmul.f32 %v3162_v40, %v4764_v43 }
 0x1b3   : > { %v1499_v49 = vpop.permute.xlu0 %1498 }
 0x1b4   : > { %v1519_v47 = vpop.permute.xlu1 %1518  ;;  %2188 = vmatprep.subr.mxu1 %v1565_v45 }
 0x1b5   : > { %v4781_v9 = vsel %vm1526_vm12, %v1519_v47, %v1521_v22  ;;  %v4785_v61 = vsel %vm1526_vm12, %v1525_v31, %v1519_v47  ;;  %2189 = vmatpush1.msra.mxu1 %v1564_v52 }
 0x1b6   : > { %v1536_v16 = vmul.f32 %v3155_v46, %v4785_v61  ;;  %v1537_v50 = vmul.f32 %v3156_v44, %v4781_v9  ;;  %v3143_v46 = vld [vmem:[%s5946_s6 + $0x20] sm:$0xff]  ;;  %v3144_v44 = vld [vmem:[%s5946_s6 + $0x28] sm:$0xff] }
 0x1b7   : > { %v1469_v54 = vpop.permute.xlu0 %1468 }
 0x1b8   : > { %v1523_v60 = vpop.permute.xlu1 %1522  ;;  %2119 = vmatprep.subr.mxu0 %v1537_v50 }
 0x1b9   : > { %v4797_v55 = vsel %vm1526_vm12, %v1523_v60, %v1525_v31  ;;  %v4801_v21 = vsel %vm1526_vm12, %v1521_v22, %v1523_v60  ;;  %2120 = vmatpush1.msra.mxu0 %v1536_v16  ;;  %v3147_v22 = vld [vmem:[%s5946_s6 + $0x40] sm:$0xff]  ;;  %v3145_v60 = vld [vmem:[%s5946_s6 + $0x30] sm:$0xff] }
 0x1ba   : > { %v1538_v57 = vmul.f32 %v3157_v37, %v4801_v21  ;;  %v1539_v30 = vmul.f32 %v3158_v2, %v4797_v55 }
 0x1bb   : > { %v1473_v18 = vpop.permute.xlu0 %1472 }
 0x1bc   : > { %v1493_v58 = vpop.permute.xlu1 %1492  ;;  %2190 = vmatprep.subr.mxu1 %v1539_v30 }
 0x1bd   : > { %v4814_v11 = vsel %vm1500_vm13, %v1493_v58, %v1495_v42  ;;  %v4818_v26 = vsel %vm1500_vm13, %v1499_v49, %v1493_v58  ;;  %2191 = vmatpush1.msra.mxu1 %v1538_v57 }
 0x1be   : > { %v1510_v0 = vmul.f32 %v3151_v7, %v4818_v26  ;;  %v1511_v1 = vmul.f32 %v3152_v15, %v4814_v11 }
 0x1bf   : > { %v1443_v20 = vpop.permute.xlu0 %1442 }
 0x1c0   : > { %v1497_v6 = vpop.permute.xlu1 %1496  ;;  %2121 = vmatprep.subr.mxu0 %v1511_v1 }
 0x1c1   : > { %v4830_v29 = vsel %vm1500_vm13, %v1497_v6, %v1499_v49  ;;  %v4834_v13 = vsel %vm1500_vm13, %v1495_v42, %v1497_v6  ;;  %2122 = vmatpush1.msra.mxu0 %v1510_v0  ;;  %v1429_v0 = vld [vmem:[%s5946_s6 + $0x8] sm:$0xff] }
 0x1c2   : > { %v1512_v14 = vmul.f32 %v3153_v4, %v4834_v13  ;;  %v1513_v19 = vmul.f32 %v3154_v5, %v4830_v29 }
 0x1c3   : > { %v1447_v38 = vpop.permute.xlu0 %1446 }
 0x1c4   : > { %v1467_v28 = vpop.permute.xlu1 %1466  ;;  %2192 = vmatprep.subr.mxu1 %v1513_v19  ;;  %v3239_v19 = vld [vmem:[%s5946_s6 + $0x340] sm:$0xff] }
 0x1c5   : > { %v4847_v33 = vsel %vm1474_vm14, %v1467_v28, %v1469_v54  ;;  %v4851_v17 = vsel %vm1474_vm14, %v1473_v18, %v1467_v28  ;;  %2193 = vmatpush1.msra.mxu1 %v1512_v14  ;;  %v3240_v14 = vld [vmem:[%s5946_s6 + $0x348] sm:$0xff]  ;;  %v1431_v28 = vld [vmem:[%s5946_s6 + $0x18] sm:$0xff] }
 0x1c6   : > { %v1484_v39 = vmul.f32 %v3147_v22, %v4851_v17  ;;  %v1485_v31 = vmul.f32 %v3148_v27, %v4847_v33  ;;  %v1430_v27 = vld [vmem:[%s5946_s6 + $0x10] sm:$0xff] }
 0x1c7   : > { %v1416_v50 = vpop.permute.xlu0 %1415 }
 0x1c8   : > { %v1471_v40 = vpop.permute.xlu1 %1470  ;;  %2123 = vmatprep.subr.mxu0 %v1485_v31  ;;  %v3235_v31 = vld [vmem:[%s5946_s6 + $0x320] sm:$0xff] }
 0x1c9   : > { %v4863_v41 = vsel %vm1474_vm14, %v1471_v40, %v1473_v18  ;;  %v4867_v42 = vsel %vm1474_vm14, %v1469_v54, %v1471_v40  ;;  %2124 = vmatpush1.msra.mxu0 %v1484_v39  ;;  %v3146_v54 = vld [vmem:[%s5946_s6 + $0x38] sm:$0xff]  ;;  %v1428_v18 = vld [vmem:[%s5946_s6] sm:$0xff]  ;;  %v3236_v39 = vld [vmem:[%s5946_s6 + $0x328] sm:$0xff] }
 0x1ca   : > { %v1486_v52 = vmul.f32 %v3149_v35, %v4867_v42  ;;  %v1487_v45 = vmul.f32 %v3150_v36, %v4863_v41  ;;  %v1970_v36 = vmul.f32 %v3240_v14, %v4669_v51  ;;  %v3231_v51 = vld [vmem:[%s5946_s6 + $0x300] sm:$0xff] }
 0x1cb   : > { %v1420_v1 = vpop.permute.xlu0 %1419 }
 0x1cc   : > { %v1441_v47 = vpop.permute.xlu1 %1440  ;;  %2194 = vmatprep.subr.mxu1 %v1487_v45  ;;  %v3232_v45 = vld [vmem:[%s5946_s6 + $0x308] sm:$0xff] }
 0x1cd   : > { %v4880_v49 = vsel %vm5974_vm15, %v1441_v47, %v1443_v20  ;;  %v4884_v16 = vsel %vm5974_vm15, %v1447_v38, %v1441_v47  ;;  %2195 = vmatpush1.msra.mxu1 %v1486_v52 }
 0x1ce   : > { %v1458_v37 = vmul.f32 %v3143_v46, %v4884_v16  ;;  %v1459_v2 = vmul.f32 %v3144_v44, %v4880_v49  ;;  %v3242_v46 = vld [vmem:[%s5946_s6 + $0x358] sm:$0xff] }
 0x1cf   : > { %v4961_v44 = vpop.permute.xlu0 %1836 }
 0x1d0   : > { %v1445_v57 = vpop.permute.xlu1 %1444  ;;  %2125 = vmatprep.subr.mxu0 %v1459_v2  ;;  %v1956_v2 = vmul.f32 %v3235_v31, %v4682_v59  ;;  %v1944_v59 = vmul.f32 %v3232_v45, %v4735_v24  ;;  %v3233_v24 = vld [vmem:[%s5946_s6 + $0x310] sm:$0xff]  ;;  %v3226_v31 = vld [vmem:[%s5946_s6 + $0x2d8] sm:$0xff] }
 0x1d1   : > { %v4896_v30 = vsel %vm5974_vm15, %v1445_v57, %v1447_v38  ;;  %v4900_v7 = vsel %vm5974_vm15, %v1443_v20, %v1445_v57  ;;  %2126 = vmatpush1.msra.mxu0 %v1458_v37  ;;  %v1969_v38 = vmul.f32 %v3239_v19, %v4649_v53  ;;  %v3241_v53 = vld [vmem:[%s5946_s6 + $0x350] sm:$0xff]  ;;  %v1957_v37 = vmul.f32 %v3236_v39, %v4702_v63  ;;  %v3222_v45 = vld [vmem:[%s5946_s6 + $0x2b8] sm:$0xff] }
 0x1d2   : > { %v1460_v15 = vmul.f32 %v3145_v60, %v4900_v7  ;;  %v1461_v58 = vmul.f32 %v3146_v54, %v4896_v30  ;;  %v3228_v60 = vld [vmem:[%s5946_s6 + $0x2e8] sm:$0xff]  ;;  %v3238_v54 = vld [vmem:[%s5946_s6 + $0x338] sm:$0xff]  ;;  %v3237_v57 = vld [vmem:[%s5946_s6 + $0x330] sm:$0xff]  ;;  %v1945_v39 = vmul.f32 %v3233_v24, %v4731_v23  ;;  %vm1816_vm15 = vcmp.lt.s32.totalorder %v4478_v56, 120 }
 0x1d3   : > { %v1958_v14 = vmul.f32 %v3237_v57, %v4698_v62  ;;  %v3219_v62 = vld [vmem:[%s5946_s6 + $0x2a0] sm:$0xff]  ;;  %v3214_v57 = vld [vmem:[%s5946_s6 + $0x278] sm:$0xff] }
 0x1d4   : > { %v1414_v4 = vpop.permute.xlu1 %1413  ;;  %2196 = vmatprep.subr.mxu1 %v1461_v58  ;;  %v1972_v58 = vmul.f32 %v3242_v46, %v4653_v48  ;;  %v3223_v48 = vld [vmem:[%s5946_s6 + $0x2c0] sm:$0xff]  ;;  %v1904_v46 = vmul.f32 %v3219_v62, %v4814_v11  ;;  %v3202_v62 = vld [vmem:[%s5946_s6 + $0x218] sm:$0xff] }
 0x1d5   : > { %v4913_v5 = vsel %vm5973_vm0, %v1414_v4, %v1416_v50  ;;  %v4917_v6 = vsel %vm5973_vm0, %v1420_v1, %v1414_v4  ;;  %2197 = vmatpush1.msra.mxu1 %v1460_v15  ;;  %v3227_v15 = vld [vmem:[%s5946_s6 + $0x2e0] sm:$0xff]  ;;  %v3234_v4 = vld [vmem:[%s5946_s6 + $0x318] sm:$0xff] }
 0x1d6   : > { %v1432_v20 = vmul.f32 %v1428_v18, %v4917_v6  ;;  %v1433_v22 = vmul.f32 %v1429_v0, %v4913_v5  ;;  %v1971_v18 = vmul.f32 %v3241_v53, %v4665_v10  ;;  %v1943_v0 = vmul.f32 %v3231_v51, %v4715_v8  ;;  %v3215_v23 = vld [vmem:[%s5946_s6 + $0x280] sm:$0xff] }
 0x1d7   : > { %v1931_v10 = vmul.f32 %v3228_v60, %v4768_v3  ;;  %v1959_v8 = vmul.f32 %v3238_v54, %v4686_v25  ;;  %v1930_v19 = vmul.f32 %v3227_v15, %v4748_v32  ;;  %v3229_v3 = vld [vmem:[%s5946_s6 + $0x2f0] sm:$0xff]  ;;  %v5014_v32 = vpop.permute.xlu0 %1840  ;;  %v1920_v53 = vmul.f32 %v3226_v31, %v4785_v61  ;;  %v3211_v51 = vld [vmem:[%s5946_s6 + $0x260] sm:$0xff]  ;;  %v3218_v61 = vld [vmem:[%s5946_s6 + $0x298] sm:$0xff] }
 0x1d8   : > { %v1418_v35 = vpop.permute.xlu1 %1417  ;;  %2127 = vmatprep.subr.mxu0 %v1433_v22  ;;  %v3230_v22 = vld [vmem:[%s5946_s6 + $0x2f8] sm:$0xff]  ;;  %v3204_v15 = vld [vmem:[%s5946_s6 + $0x228] sm:$0xff] }
 0x1d9   : > { %v4943_v40 = vsel %vm5973_vm0, %v1418_v35, %v1420_v1  ;;  %v4947_v52 = vsel %vm5973_vm0, %v1416_v50, %v1418_v35  ;;  %2128 = vmatpush1.msra.mxu0 %v1432_v20  ;;  %v3224_v1 = vld [vmem:[%s5946_s6 + $0x2c8] sm:$0xff]  ;;  %vm1842_vm0 = vcmp.lt.s32.totalorder %v4478_v56, 119 }
 0x1da   : > { %v1434_v47 = vmul.f32 %v1430_v27, %v4947_v52  ;;  %v1435_v50 = vmul.f32 %v1431_v28, %v4943_v40  ;;  %2139 = vmatprep.subr.mxu0 %v1970_v36  ;;  %v3220_v20 = vld [vmem:[%s5946_s6 + $0x2a8] sm:$0xff]  ;;  %v1918_v25 = vmul.f32 %v3224_v1, %v4801_v21  ;;  %v1946_v28 = vmul.f32 %v3234_v4, %v4719_v12  ;;  %v3225_v36 = vld [vmem:[%s5946_s6 + $0x2d0] sm:$0xff]  ;;  %v3210_v1 = vld [vmem:[%s5946_s6 + $0x258] sm:$0xff] }
 0x1db   : > { %2140 = vmatpush2.msra.mxu0 %v1969_v38  ;;  %v1917_v21 = vmul.f32 %v3223_v48, %v4781_v9  ;;  %v3216_v35 = vld [vmem:[%s5946_s6 + $0x288] sm:$0xff]  ;;  %v1905_v12 = vmul.f32 %v3220_v20, %v4834_v13  ;;  %v1933_v9 = vmul.f32 %v3230_v22, %v4752_v34  ;;  %v1932_v38 = vmul.f32 %v3229_v3, %v4764_v43  ;;  %v3221_v34 = vld [vmem:[%s5946_s6 + $0x2b0] sm:$0xff]  ;;  %v1811_v60 = vpop.permute.xlu0 %1810 }
 0x1dc   : > { %v4979_v63 = vpop.permute.xlu1 %1834  ;;  %2141 = vmatprep.subr.mxu0 %v1957_v37  ;;  %2198 = vmatprep.subr.mxu1 %v1435_v50  ;;  %v3212_v13 = vld [vmem:[%s5946_s6 + $0x268] sm:$0xff]  ;;  %v1892_v43 = vmul.f32 %v3216_v35, %v4867_v42  ;;  %v1919_v11 = vmul.f32 %v3225_v36, %v4797_v55  ;;  %v1891_v50 = vmul.f32 %v3215_v23, %v4847_v33  ;;  %v3217_v55 = vld [vmem:[%s5946_s6 + $0x290] sm:$0xff]  ;;  %v3207_v33 = vld [vmem:[%s5946_s6 + $0x240] sm:$0xff] }
 0x1dd   : > { %2142 = vmatpush2.msra.mxu0 %v1956_v2  ;;  %2199 = vmatpush1.msra.mxu1 %v1434_v47  ;;  %v3208_v42 = vld [vmem:[%s5946_s6 + $0x248] sm:$0xff]  ;;  %v1907_v37 = vmul.f32 %v3222_v45, %v4818_v26  ;;  %v1879_v2 = vmul.f32 %v3212_v13, %v4900_v7  ;;  %v1906_v54 = vmul.f32 %v3221_v34, %v4830_v29  ;;  %v3205_v3 = vld [vmem:[%s5946_s6 + $0x230] sm:$0xff] }
 0x1de   : > { %2143 = vmatprep.subr.mxu0 %v1944_v59  ;;  %2210 = vmatprep.subr.mxu1 %v1972_v58  ;;  %v1878_v26 = vmul.f32 %v3211_v51, %v4880_v49  ;;  %v1894_v29 = vmul.f32 %v3218_v61, %v4851_v17  ;;  %v3213_v59 = vld [vmem:[%s5946_s6 + $0x270] sm:$0xff]  ;;  %v1866_v49 = vmul.f32 %v3208_v42, %v4947_v52  ;;  %v3203_v58 = vld [vmem:[%s5946_s6 + $0x220] sm:$0xff]  ;;  %v3200_v4 = vld [vmem:[%s5946_s6 + $0x208] sm:$0xff] }
 0x1df   : > { %2144 = vmatpush2.msra.mxu0 %v1943_v0  ;;  %2211 = vmatpush2.msra.mxu1 %v1971_v18  ;;  %v1845_v18 = vsel %vm1842_vm0, %v4979_v63, %v4961_v44  ;;  %v1893_v17 = vmul.f32 %v3217_v55, %v4863_v41  ;;  %v1865_v52 = vmul.f32 %v3207_v33, %v4913_v5  ;;  %v3209_v41 = vld [vmem:[%s5946_s6 + $0x250] sm:$0xff]  ;;  %v3199_v5 = vld [vmem:[%s5946_s6 + $0x200] sm:$0xff]  ;;  %v1815_v22 = vpop.permute.xlu0 %1814 }
 0x1e0   : > { %v5016_v27 = vpop.permute.xlu1 %1838  ;;  %2145 = vmatprep.subr.mxu0 %v1931_v10  ;;  %2212 = vmatprep.subr.mxu1 %v1959_v8  ;;  %v1880_v8 = vmul.f32 %v3213_v59, %v4896_v30  ;;  %v1868_v20 = vmul.f32 %v3210_v1, %v4917_v6 }
 0x1e1   : > { %2146 = vmatpush2.msra.mxu0 %v1930_v19  ;;  %2213 = vmatpush2.msra.mxu1 %v1958_v14  ;;  %v1844_v7 = vsel %vm1842_vm0, %v4961_v44, %v5016_v27  ;;  %v1881_v44 = vmul.f32 %v3214_v57, %v4884_v16  ;;  %v3206_v16 = vld [vmem:[%s5946_s6 + $0x238] sm:$0xff]  ;;  %v1846_v14 = vsel %vm1842_vm0, %v5014_v32, %v4979_v63 }
 0x1e2   : > { %2147 = vmatprep.subr.mxu0 %v1918_v25  ;;  %2214 = vmatprep.subr.mxu1 %v1946_v28  ;;  %v1853_v48 = vmul.f32 %v3204_v15, %v1844_v7  ;;  %v1852_v19 = vmul.f32 %v3203_v58, %v1845_v18  ;;  %v1843_v30 = vsel %vm1842_vm0, %v5016_v27, %v5014_v32  ;;  %v1977_v32 = vld [vmem:[%s5947_s7] sm:$0xff] }
 0x1e3   : > { %2148 = vmatpush2.msra.mxu0 %v1917_v21  ;;  %2215 = vmatpush2.msra.mxu1 %v1945_v39  ;;  %v1867_v63 = vmul.f32 %v3209_v41, %v4943_v40  ;;  %v1855_v27 = vmul.f32 %v3206_v16, %v1846_v14  ;;  %v3201_v40 = vld [vmem:[%s5946_s6 + $0x210] sm:$0xff]  ;;  %v1854_v31 = vmul.f32 %v3205_v3, %v1843_v30  ;;  %v3298_v16 = vld [vmem:[%s5946_s6 + $0x1e8] sm:$0xff]  ;;  %v3297_v14 = vld [vmem:[%s5946_s6 + $0x1e0] sm:$0xff] }
 0x1e4   : > { %v5051_v47 = vpop.permute.xlu1 %1808  ;;  %2149 = vmatprep.subr.mxu0 %v1905_v12  ;;  %2216 = vmatprep.subr.mxu1 %v1933_v9  ;;  %v3142_v9 = vld [vmem:[%s5945_s5] ss:$0 sm:$0xff]  ;;  %v3299_v3 = vld [vmem:[%s5946_s6 + $0x1f0] sm:$0xff]  ;;  %v3300_v30 = vld [vmem:[%s5946_s6 + $0x1f8] sm:$0xff] }
 0x1e5   : > { %2150 = vmatpush2.msra.mxu0 %v1904_v46  ;;  %2217 = vmatpush2.msra.mxu1 %v1932_v38  ;;  %v1819_v10 = vsel %vm1816_vm15, %v5051_v47, %v1811_v60  ;;  %v1820_v6 = vsel %vm1816_vm15, %v1815_v22, %v5051_v47 }
 0x1e6   : > { %2151 = vmatprep.subr.mxu0 %v1892_v43  ;;  %2218 = vmatprep.subr.mxu1 %v1920_v53  ;;  %v1826_v28 = vmul.f32 %v3199_v5, %v1819_v10  ;;  %v1829_v21 = vmul.f32 %v3202_v62, %v1820_v6 }
 0x1e7   : > { %2152 = vmatpush2.msra.mxu0 %v1891_v50  ;;  %2219 = vmatpush2.msra.mxu1 %v1919_v11 }
 0x1e8   : > { %v1813_v0 = vpop.permute.xlu1 %1812  ;;  %2153 = vmatprep.subr.mxu0 %v1879_v2  ;;  %2220 = vmatprep.subr.mxu1 %v1907_v37  ;;  %v3384_v36 = vpop.f32.mrf.mxu0 }
 0x1e9   : > { %v1818_v24 = vsel %vm1816_vm15, %v1811_v60, %v1813_v0  ;;  %2154 = vmatpush2.msra.mxu0 %v1878_v26  ;;  %2221 = vmatpush2.msra.mxu1 %v1906_v54  ;;  %v1817_v39 = vsel %vm1816_vm15, %v1813_v0, %v1815_v22 }
 0x1ea   : > { %2155 = vmatprep.subr.mxu0 %v1866_v49  ;;  %2222 = vmatprep.subr.mxu1 %v1894_v29  ;;  %v1827_v25 = vmul.f32 %v3200_v4, %v1818_v24  ;;  %v1828_v35 = vmul.f32 %v3201_v40, %v1817_v39  ;;  %v3385_v12 = vpop.f32.mrf.mxu0 }
 0x1eb   : > { %2156 = vmatpush2.msra.mxu0 %v1865_v52  ;;  %2223 = vmatpush2.msra.mxu1 %v1893_v17  ;;  %v3386_v23 = vadd.f32 %v3385_v12, %v3384_v36 }
 0x1ec   : > { %2157 = vmatprep.subr.mxu0 %v1853_v48  ;;  %2224 = vmatprep.subr.mxu1 %v1881_v44 }
 0x1ed   : > { %2158 = vmatpush2.msra.mxu0 %v1852_v19  ;;  %2225 = vmatpush2.msra.mxu1 %v1880_v8  ;;  %v925_v45 = vadd.f32 %v3386_v23, %v3142_v9  ;;  %v3295_v23 = vld [vmem:[%s5946_s6 + $0x1d0] sm:$0xff] }
 0x1ee   : > { %2159 = vmatprep.subr.mxu0 %v1827_v25  ;;  %2226 = vmatprep.subr.mxu1 %v1868_v20 }
 0x1ef   : > { %2160 = vmatpush2.msra.mxu0 %v1826_v28  ;;  %2227 = vmatpush2.msra.mxu1 %v1867_v63 }
 0x1f0   : > { %2162 = vmatmul.mubr.f32.vlgmr.msra.gmra.mxu0 %v1977_v32  ;;  %2228 = vmatprep.subr.mxu1 %v1855_v27  ;;  %v3428_v38 = vpop.f32.mrf.mxu1 }
 0x1f1   : > { %2229 = vmatpush2.msra.mxu1 %v1854_v31  ;;  %v3294_v31 = vld [vmem:[%s5946_s6 + $0x1c8] sm:$0xff] }
 0x1f2   : > { %2230 = vmatprep.subr.mxu1 %v1829_v21  ;;  %v3429_v46 = vpop.f32.mrf.mxu1  ;;  %v3293_v21 = vld [vmem:[%s5946_s6 + $0x1c0] sm:$0xff] }
 0x1f3   : > { %2231 = vmatpush2.msra.mxu1 %v1828_v35  ;;  %v3430_v13 = vadd.f32 %v3429_v46, %v3428_v38  ;;  %v3387_v34 = vpop.f32.mrf.mxu0 }
 0x1f4   : > { %2233 = vmatmul.mubr.f32.vlgmr.msra.gmra.mxu1 %v1977_v32 }
 0x1f5   : > { %v5149_v53 = vadd.f32 %v3430_v13, %v925_v45  ;;  %v3388_v43 = vpop.f32.mrf.mxu0  ;;  %v2091_v17 = vpop.permute.xlu1 %2090 }
 0x1f6   : > { %v3389_v51 = vadd.f32 %v3388_v43, %v3387_v34 }
 0x1f7   : > { %v3431_v47 = vpop.f32.mrf.mxu1 }
 0x1f8   : > { %v930_v11 = vadd.f32 %v3389_v51, %v3142_v9  ;;  %v3390_v61 = vpop.f32.mrf.mxu0 }
 0x1f9   : > { %v3432_v50 = vpop.f32.mrf.mxu1 }
 0x1fa   : > { %v3433_v42 = vadd.f32 %v3432_v50, %v3431_v47  ;;  %v3391_v37 = vpop.f32.mrf.mxu0 }
 0x1fb   : > { %v3392_v55 = vadd.f32 %v3391_v37, %v3390_v61  ;;  %v3290_v61 = vld [vmem:[%s5946_s6 + $0x188] sm:$0xff] }
 0x1fc   : > { %v5151_v2 = vadd.f32 %v3433_v42, %v930_v11  ;;  %v2760_v11 = vld [vmem:[%s5949_s9 + $0x8] sm:$0xff] }
 0x1fd   : > { %v935_v60 = vadd.f32 %v3392_v55, %v3142_v9  ;;  %3345 = vmatprep.mubr.msk.f32.mxu0 %vm2093_vm3, %v2760_v11  ;;  %3346 = vmatprep.mubr.msk.f32.mxu1 %vm2093_vm3, %v2760_v11 }
 0x1fe   : > { %v3434_v33 = vpop.f32.mrf.mxu1 }
 0x200   : > { %v3393_v54 = vpop.f32.mrf.mxu0  ;;  %v3435_v57 = vpop.f32.mrf.mxu1 }
 0x201   : > { %v3436_v26 = vadd.f32 %v3435_v57, %v3434_v33  ;;  %v2869_v33 = vld [vmem:[%s5950_s10] sm:$0xff]  ;;  %v3291_v57 = vld [vmem:[%s5946_s6 + $0x190] sm:$0xff] }
 0x202   : > { %v3394_v15 = vpop.f32.mrf.mxu0 }
 0x203   : > { %v3395_v7 = vadd.f32 %v3394_v15, %v3393_v54  ;;  %v3437_v29 = vpop.f32.mrf.mxu1  ;;  %v5153_v59 = vadd.f32 %v3436_v26, %v935_v60  ;;  %v3289_v60 = vld [vmem:[%s5946_s6 + $0x180] sm:$0xff]  ;;  %v3292_v54 = vld [vmem:[%s5946_s6 + $0x198] sm:$0xff] }
 0x205   : > { %v940_v49 = vadd.f32 %v3395_v7, %v3142_v9  ;;  %v3438_v58 = vpop.f32.mrf.mxu1  ;;  %v3296_v9 = vld [vmem:[%s5946_s6 + $0x1d8] sm:$0xff] }
 0x206   : > { %v3439_v18 = vadd.f32 %v3438_v58, %v3437_v29 }
 0x208   : > { %v5155_v0 = vadd.f32 %v3439_v18, %v940_v49 }
 0x2b0   : > { %v2163_v1 = vpop.f32.mrf.mxu0 }
 0x2b1   : > { %v5157_v52 = vadd.f32 %v2163_v1, %v2091_v17  ;;  %v3286_v1 = vld [vmem:[%s5946_s6 + $0x168] sm:$0xff] }
 0x2b2   : > { %v2165_v4 = vpop.f32.mrf.mxu0 }
 0x2b3   : > { %v5159_v24 = vadd.f32 %v2165_v4, %v2091_v17  ;;  %2579 = vrot.lane.b32.xlu0 %v5157_v52, %s3518_s21 }
 0x2b4   : > { %v2234_v44 = vpop.f32.mrf.mxu1 }
 0x2b5   : > { %v5163_v41 = vadd.f32 %v2234_v44, %v2091_v17  ;;  %2581 = vrot.lane.b32.xlu1 %v5159_v24, %s3518_s21 }
 0x2b6   : > { %v2236_v48 = vpop.f32.mrf.mxu1 }
 0x2b7   : > { %v5167_v5 = vadd.f32 %v2236_v48, %v2091_v17  ;;  %2583 = vrot.lane.b32.xlu0 %v5163_v41, %s3518_s21  ;;  %v3288_v48 = vld [vmem:[%s5946_s6 + $0x178] sm:$0xff] }
 0x2b9   : > { %2585 = vrot.lane.b32.xlu1 %v5167_v5, %s3518_s21  ;;  %s5976_s21 = smov 56  }
 0x2bb   : > { %2555 = vrot.lane.b32.xlu0 %v5157_v52, %s3519_s19 }
 0x2bd   : > { %2557 = vrot.lane.b32.xlu1 %v5159_v24, %s3519_s19 }
 0x2bf   : > { %2559 = vrot.lane.b32.xlu0 %v5163_v41, %s3519_s19 }
 0x2c1   : > { %2561 = vrot.lane.b32.xlu1 %v5167_v5, %s3519_s19  ;;  %s5977_s19 = smov 57  }
 0x2c3   : > { %2527 = vrot.lane.b32.xlu0 %v5157_v52, %s3520_s23 }
 0x2c5   : > { %2529 = vrot.lane.b32.xlu1 %v5159_v24, %s3520_s23 }
 0x2c7   : > { %2531 = vrot.lane.b32.xlu0 %v5163_v41, %s3520_s23 }
 0x2c9   : > { %2533 = vrot.lane.b32.xlu1 %v5167_v5, %s3520_s23  ;;  %s5978_s23 = smov 63  }
 0x2cb   : > { %2503 = vrot.lane.b32.xlu0 %v5157_v52, %s3521_s24 }
 0x2cd   : > { %2505 = vrot.lane.b32.xlu1 %v5159_v24, %s3521_s24 }
 0x2cf   : > { %2507 = vrot.lane.b32.xlu0 %v5163_v41, %s3521_s24 }
 0x2d1   : > { %2509 = vrot.lane.b32.xlu1 %v5167_v5, %s3521_s24  ;;  %s5979_s24 = smov 64  }
 0x2d3   : > { %2479 = vrot.lane.b32.xlu0 %v5157_v52, %s3522_s26 }
 0x2d5   : > { %2481 = vrot.lane.b32.xlu1 %v5159_v24, %s3522_s26 }
 0x2d7   : > { %2483 = vrot.lane.b32.xlu0 %v5163_v41, %s3522_s26 }
 0x2d9   : > { %2485 = vrot.lane.b32.xlu1 %v5167_v5, %s3522_s26  ;;  %s5980_s26 = smov 65  }
 0x2db   : > { %2455 = vrot.lane.b32.xlu0 %v5157_v52, %s3523_s27 }
 0x2dd   : > { %2457 = vrot.lane.b32.xlu1 %v5159_v24, %s3523_s27 }
 0x2df   : > { %2459 = vrot.lane.b32.xlu0 %v5163_v41, %s3523_s27 }
 0x2e1   : > { %2461 = vrot.lane.b32.xlu1 %v5167_v5, %s3523_s27  ;;  %s5981_s27 = smov 71  }
 0x2e3   : > { %2431 = vrot.lane.b32.xlu0 %v5157_v52, %s3524_s29 }
 0x2e5   : > { %2433 = vrot.lane.b32.xlu1 %v5159_v24, %s3524_s29 }
 0x2e7   : > { %2435 = vrot.lane.b32.xlu0 %v5163_v41, %s3524_s29 }
 0x2e9   : > { %2437 = vrot.lane.b32.xlu1 %v5167_v5, %s3524_s29  ;;  %s5982_s29 = smov 72  }
 0x2eb   : > { %2407 = vrot.lane.b32.xlu0 %v5157_v52, %s5976_s21 }
 0x2ed   : > { %2409 = vrot.lane.b32.xlu1 %v5159_v24, %s5976_s21 }
 0x2ef   : > { %2411 = vrot.lane.b32.xlu0 %v5163_v41, %s5976_s21 }
 0x2f1   : > { %2413 = vrot.lane.b32.xlu1 %v5167_v5, %s5976_s21 }
 0x2f3   : > { %2383 = vrot.lane.b32.xlu0 %v5157_v52, %s5977_s19 }
 0x2f5   : > { %2385 = vrot.lane.b32.xlu1 %v5159_v24, %s5977_s19 }
 0x2f7   : > { %2387 = vrot.lane.b32.xlu0 %v5163_v41, %s5977_s19 }
 0x2f9   : > { %2389 = vrot.lane.b32.xlu1 %v5167_v5, %s5977_s19 }
 0x2fb   : > { %2359 = vrot.lane.b32.xlu0 %v5157_v52, %s5978_s23 }
 0x2fd   : > { %2361 = vrot.lane.b32.xlu1 %v5159_v24, %s5978_s23 }
 0x2ff   : > { %2363 = vrot.lane.b32.xlu0 %v5163_v41, %s5978_s23 }
 0x301   : > { %2365 = vrot.lane.b32.xlu1 %v5167_v5, %s5978_s23 }
 0x303   : > { %2335 = vrot.lane.b32.xlu0 %v5157_v52, %s5979_s24 }
 0x305   : > { %2337 = vrot.lane.b32.xlu1 %v5159_v24, %s5979_s24 }
 0x307   : > { %2339 = vrot.lane.b32.xlu0 %v5163_v41, %s5979_s24 }
 0x309   : > { %2341 = vrot.lane.b32.xlu1 %v5167_v5, %s5979_s24  ;;  %s5994_s24 = sshll.u32 %s5996_s18, 5 }
 0x30b   : > { %2311 = vrot.lane.b32.xlu0 %v5157_v52, %s5980_s26 }
 0x30d   : > { %2313 = vrot.lane.b32.xlu1 %v5159_v24, %s5980_s26 }
 0x30f   : > { %2315 = vrot.lane.b32.xlu0 %v5163_v41, %s5980_s26 }
 0x311   : > { %2317 = vrot.lane.b32.xlu1 %v5167_v5, %s5980_s26 }
 0x313   : > { %2287 = vrot.lane.b32.xlu0 %v5157_v52, %s5981_s27 }
 0x315   : > { %2289 = vrot.lane.b32.xlu1 %v5159_v24, %s5981_s27 }
 0x317   : > { %2291 = vrot.lane.b32.xlu0 %v5163_v41, %s5981_s27 }
 0x319   : > { %2293 = vrot.lane.b32.xlu1 %v5167_v5, %s5981_s27 }
 0x31b   : > { %2263 = vrot.lane.b32.xlu0 %v5157_v52, %s5982_s29 }
 0x31d   : > { %2265 = vrot.lane.b32.xlu1 %v5159_v24, %s5982_s29 }
 0x31f   : > { %2267 = vrot.lane.b32.xlu0 %v5163_v41, %s5982_s29 }
 0x321   : > { %2269 = vrot.lane.b32.xlu1 %v5167_v5, %s5982_s29  ;;  %s406_s29 = scalar_lea.vmem %s5951_s11, %s5994_s24 }
 0x323   : > { %2239 = vrot.lane.b32.xlu0 %v5157_v52, %s5983_s13 }
 0x325   : > { %2241 = vrot.lane.b32.xlu1 %v5159_v24, %s5983_s13  ;;  %v2580_v10 = vpop.permute.xlu0 %2579 }
 0x327   : > { %v2582_v8 = vpop.permute.xlu1 %2581  ;;  %2243 = vrot.lane.b32.xlu0 %v5163_v41, %s5983_s13 }
 0x328   : > { %v2589_v19 = vsel %vm1790_vm1, %v2580_v10, %v2582_v8 }
 0x329   : > { %2245 = vrot.lane.b32.xlu1 %v5167_v5, %s5983_s13  ;;  %v2584_v20 = vpop.permute.xlu0 %2583  ;;  %v2595_v62 = vmul.f32 %v3297_v14, %v2589_v19 }
 0x32a   : > { %v2588_v22 = vsel %vm1790_vm1, %v2582_v8, %v2584_v20 }
 0x32b   : > { %v2596_v25 = vmul.f32 %v3298_v16, %v2588_v22  ;;  %v2586_v63 = vpop.permute.xlu1 %2585  ;;  %2627 = vrot.lane.b32.xlu0 %v5157_v52, %s5984_s12 }
 0x32c   : > { %v2587_v6 = vsel %vm1790_vm1, %v2584_v20, %v2586_v63  ;;  %v2590_v28 = vsel %vm1790_vm1, %v2586_v63, %v2580_v10  ;;  %vm5986_vm1 = vcmp.lt.s32.totalorder %v4478_v56, 72 }
 0x32d   : > { %v2597_v32 = vmul.f32 %v3299_v3, %v2587_v6  ;;  %v2598_v27 = vmul.f32 %v3300_v30, %v2590_v28  ;;  %2629 = vrot.lane.b32.xlu1 %v5159_v24, %s5984_s12  ;;  %2878 = vmatprep.subr.mxu0 %v2596_v25  ;;  %v2556_v40 = vpop.permute.xlu0 %2555  ;;  %v3282_v30 = vld [vmem:[%s5946_s6 + $0x148] sm:$0xff]  ;;  %v3281_v28 = vld [vmem:[%s5946_s6 + $0x140] sm:$0xff]  ;;  %vm5988_vm3 = vmmov %vm5986_vm1 }
 0x32e   : > { %2879 = vmatpush1.msra.mxu0 %v2595_v62 }
 0x32f   : > { %v2558_v39 = vpop.permute.xlu1 %2557  ;;  %2631 = vrot.lane.b32.xlu0 %v5163_v41, %s5984_s12  ;;  %2949 = vmatprep.subr.mxu1 %v2598_v27  ;;  %v3283_v27 = vld [vmem:[%s5946_s6 + $0x150] sm:$0xff] }
 0x330   : > { %2950 = vmatpush1.msra.mxu1 %v2597_v32  ;;  %v2565_v35 = vsel %vm1764_vm2, %v2556_v40, %v2558_v39  ;;  %v3284_v32 = vld [vmem:[%s5946_s6 + $0x158] sm:$0xff] }
 0x331   : > { %2633 = vrot.lane.b32.xlu1 %v5167_v5, %s5984_s12  ;;  %v2560_v36 = vpop.permute.xlu0 %2559  ;;  %v2571_v46 = vmul.f32 %v3293_v21, %v2565_v35 }
 0x332   : > { %v2564_v12 = vsel %vm1764_vm2, %v2558_v39, %v2560_v36 }
 0x333   : > { %v2572_v38 = vmul.f32 %v3294_v31, %v2564_v12  ;;  %v2562_v45 = vpop.permute.xlu1 %2561  ;;  %2603 = vrot.lane.b32.xlu0 %v5157_v52, %s5985_s15 }
 0x334   : > { %v2563_v13 = vsel %vm1764_vm2, %v2560_v36, %v2562_v45  ;;  %v2566_v34 = vsel %vm1764_vm2, %v2562_v45, %v2556_v40  ;;  %vm5987_vm2 = vmmov %vm5986_vm1 }
 0x335   : > { %v2573_v43 = vmul.f32 %v3295_v23, %v2563_v13  ;;  %v2574_v51 = vmul.f32 %v3296_v9, %v2566_v34  ;;  %2605 = vrot.lane.b32.xlu1 %v5159_v24, %s5985_s15  ;;  %2880 = vmatprep.subr.mxu0 %v2572_v38  ;;  %v2528_v47 = vpop.permute.xlu0 %2527  ;;  %v3278_v9 = vld [vmem:[%s5946_s6 + $0x128] sm:$0xff]  ;;  %v3277_v34 = vld [vmem:[%s5946_s6 + $0x120] sm:$0xff] }
 0x336   : > { %2881 = vmatpush1.msra.mxu0 %v2571_v46 }
 0x337   : > { %v2530_v50 = vpop.permute.xlu1 %2529  ;;  %2607 = vrot.lane.b32.xlu0 %v5163_v41, %s5985_s15  ;;  %2882 = vmatprep.subr.mxu0 %v5159_v24 }
 0x338   : > { %v2537_v42 = vsel %vm1734_vm4, %v2528_v47, %v2530_v50  ;;  %2951 = vmatprep.subr.mxu1 %v2574_v51  ;;  %2883 = vmatpush1.msra.mxu0 %v5157_v52  ;;  %v3279_v51 = vld [vmem:[%s5946_s6 + $0x130] sm:$0xff] }
 0x339   : > { %v2544_v37 = vmul.f32 %v3290_v61, %v2537_v42  ;;  %2952 = vmatpush1.msra.mxu1 %v2573_v43  ;;  %2609 = vrot.lane.b32.xlu1 %v5167_v5, %s5985_s15  ;;  %v2532_v55 = vpop.permute.xlu0 %2531  ;;  %v3280_v43 = vld [vmem:[%s5946_s6 + $0x138] sm:$0xff] }
 0x33a   : > { %2953 = vmatprep.subr.mxu1 %v5167_v5  ;;  %v2536_v26 = vsel %vm1734_vm4, %v2530_v50, %v2532_v55  ;;  %v3287_v5 = vld [vmem:[%s5946_s6 + $0x170] sm:$0xff] }
 0x33b   : > { %2954 = vmatpush1.msra.mxu1 %v5163_v41  ;;  %v2534_v15 = vpop.permute.xlu1 %2533  ;;  %2884 = vmatprep.subr.mxu0 %v2544_v37  ;;  %v2545_v17 = vmul.f32 %v3291_v57, %v2536_v26  ;;  %v3285_v41 = vld [vmem:[%s5946_s6 + $0x160] sm:$0xff] }
 0x33c   : > { %v2535_v7 = vsel %vm1734_vm4, %v2532_v55, %v2534_v15  ;;  %v2538_v29 = vsel %vm1734_vm4, %v2534_v15, %v2528_v47  ;;  %2872 = vperm.xlu0 %3468, %v2869_v33   ;;  %vm5989_vm4 = vmmov %vm5986_vm1 }
 0x33d   : > { %v2543_v49 = vmul.f32 %v3289_v60, %v2538_v29  ;;  %v2546_v58 = vmul.f32 %v3292_v54, %v2535_v7  ;;  %v2504_v18 = vpop.permute.xlu0 %2503  ;;  %v3274_v60 = vld [vmem:[%s5946_s6 + $0x108] sm:$0xff]  ;;  %v3273_v7 = vld [vmem:[%s5946_s6 + $0x100] sm:$0xff]  ;;  %v3276_v29 = vld [vmem:[%s5946_s6 + $0x118] sm:$0xff] }
 0x33f   : > { %v2506_v52 = vpop.permute.xlu1 %2505  ;;  %2885 = vmatpush1.msra.mxu0 %v2543_v49  ;;  %2955 = vmatprep.subr.mxu1 %v2546_v58  ;;  %v3275_v49 = vld [vmem:[%s5946_s6 + $0x110] sm:$0xff] }
 0x340   : > { %v2513_v4 = vsel %vm1708_vm5, %v2504_v18, %v2506_v52  ;;  %2956 = vmatpush1.msra.mxu1 %v2545_v17 }
 0x341   : > { %v2520_v24 = vmul.f32 %v3286_v1, %v2513_v4  ;;  %v2508_v44 = vpop.permute.xlu0 %2507 }
 0x342   : > { %v2512_v10 = vsel %vm1708_vm5, %v2506_v52, %v2508_v44 }
 0x343   : > { %v2510_v8 = vpop.permute.xlu1 %2509  ;;  %2886 = vmatprep.subr.mxu0 %v2520_v24  ;;  %v2521_v3 = vmul.f32 %v3287_v5, %v2512_v10 }
 0x344   : > { %v2511_v16 = vsel %vm1708_vm5, %v2508_v44, %v2510_v8  ;;  %v2514_v14 = vsel %vm1708_vm5, %v2510_v8, %v2504_v18  ;;  %vm5990_vm5 = vcmp.lt.s32.totalorder %v4478_v56, 73 }
 0x345   : > { %v2519_v19 = vmul.f32 %v3285_v41, %v2514_v14  ;;  %v2522_v20 = vmul.f32 %v3288_v48, %v2511_v16  ;;  %v2480_v22 = vpop.permute.xlu0 %2479  ;;  %v3270_v41 = vld [vmem:[%s5946_s6 + $0xe8] sm:$0xff]  ;;  %v3269_v16 = vld [vmem:[%s5946_s6 + $0xe0] sm:$0xff]  ;;  %v3272_v14 = vld [vmem:[%s5946_s6 + $0xf8] sm:$0xff] }
 0x347   : > { %v2482_v25 = vpop.permute.xlu1 %2481  ;;  %2887 = vmatpush1.msra.mxu0 %v2519_v19  ;;  %2957 = vmatprep.subr.mxu1 %v2522_v20  ;;  %v3271_v19 = vld [vmem:[%s5946_s6 + $0xf0] sm:$0xff] }
 0x348   : > { %v2489_v63 = vsel %vm1682_vm6, %v2480_v22, %v2482_v25  ;;  %2958 = vmatpush1.msra.mxu1 %v2521_v3 }
 0x349   : > { %v2496_v62 = vmul.f32 %v3282_v30, %v2489_v63  ;;  %v2484_v6 = vpop.permute.xlu0 %2483 }
 0x34a   : > { %v2488_v40 = vsel %vm1682_vm6, %v2482_v25, %v2484_v6 }
 0x34b   : > { %v2486_v39 = vpop.permute.xlu1 %2485  ;;  %2888 = vmatprep.subr.mxu0 %v2496_v62  ;;  %v2497_v23 = vmul.f32 %v3283_v27, %v2488_v40 }
 0x34c   : > { %v2487_v31 = vsel %vm1682_vm6, %v2484_v6, %v2486_v39  ;;  %v2490_v21 = vsel %vm1682_vm6, %v2486_v39, %v2480_v22  ;;  %vm5991_vm6 = vmmov %vm5990_vm5 }
 0x34d   : > { %v2495_v35 = vmul.f32 %v3281_v28, %v2490_v21  ;;  %v2498_v36 = vmul.f32 %v3284_v32, %v2487_v31  ;;  %v2456_v12 = vpop.permute.xlu0 %2455  ;;  %v3266_v28 = vld [vmem:[%s5946_s6 + $0xc8] sm:$0xff]  ;;  %v3265_v31 = vld [vmem:[%s5946_s6 + $0xc0] sm:$0xff]  ;;  %v3268_v21 = vld [vmem:[%s5946_s6 + $0xd8] sm:$0xff] }
 0x34f   : > { %v2458_v38 = vpop.permute.xlu1 %2457  ;;  %2889 = vmatpush1.msra.mxu0 %v2495_v35  ;;  %2959 = vmatprep.subr.mxu1 %v2498_v36  ;;  %v3267_v35 = vld [vmem:[%s5946_s6 + $0xd0] sm:$0xff] }
 0x350   : > { %v2465_v45 = vsel %vm1656_vm7, %v2456_v12, %v2458_v38  ;;  %2960 = vmatpush1.msra.mxu1 %v2497_v23 }
 0x351   : > { %v2472_v46 = vmul.f32 %v3278_v9, %v2465_v45  ;;  %v2460_v13 = vpop.permute.xlu0 %2459 }
 0x352   : > { %v2464_v47 = vsel %vm1656_vm7, %v2458_v38, %v2460_v13 }
 0x353   : > { %v2462_v11 = vpop.permute.xlu1 %2461  ;;  %2890 = vmatprep.subr.mxu0 %v2472_v46  ;;  %v2473_v33 = vmul.f32 %v3279_v51, %v2464_v47 }
 0x354   : > { %v2463_v61 = vsel %vm1656_vm7, %v2460_v13, %v2462_v11  ;;  %v2466_v50 = vsel %vm1656_vm7, %v2462_v11, %v2456_v12  ;;  %vm5992_vm7 = vmmov %vm5990_vm5 }
 0x355   : > { %v2471_v42 = vmul.f32 %v3277_v34, %v2466_v50  ;;  %v2474_v37 = vmul.f32 %v3280_v43, %v2463_v61  ;;  %v2432_v55 = vpop.permute.xlu0 %2431  ;;  %v3262_v34 = vld [vmem:[%s5946_s6 + $0xa8] sm:$0xff]  ;;  %v3261_v61 = vld [vmem:[%s5946_s6 + $0xa0] sm:$0xff]  ;;  %v3264_v50 = vld [vmem:[%s5946_s6 + $0xb8] sm:$0xff] }
 0x357   : > { %v2434_v54 = vpop.permute.xlu1 %2433  ;;  %2891 = vmatpush1.msra.mxu0 %v2471_v42  ;;  %2961 = vmatprep.subr.mxu1 %v2474_v37  ;;  %v3263_v42 = vld [vmem:[%s5946_s6 + $0xb0] sm:$0xff] }
 0x358   : > { %v5438_v57 = vsel %vm1630_vm8, %v2432_v55, %v2434_v54  ;;  %2962 = vmatpush1.msra.mxu1 %v2473_v33 }
 0x359   : > { %v2448_v26 = vmul.f32 %v3274_v60, %v5438_v57  ;;  %v2436_v15 = vpop.permute.xlu0 %2435 }
 0x35a   : > { %v5452_v58 = vsel %vm1630_vm8, %v2434_v54, %v2436_v15 }
 0x35b   : > { %v2438_v18 = vpop.permute.xlu1 %2437  ;;  %2892 = vmatprep.subr.mxu0 %v2448_v26  ;;  %v2449_v44 = vmul.f32 %v3275_v49, %v5452_v58 }
 0x35c   : > { %v5456_v17 = vsel %vm1630_vm8, %v2436_v15, %v2438_v18  ;;  %v5460_v1 = vsel %vm1630_vm8, %v2438_v18, %v2432_v55  ;;  %vm5993_vm8 = vmmov %vm5990_vm5 }
 0x35d   : > { %v2447_v52 = vmul.f32 %v3273_v7, %v5460_v1  ;;  %v2450_v4 = vmul.f32 %v3276_v29, %v5456_v17  ;;  %v2408_v24 = vpop.permute.xlu0 %2407  ;;  %v3258_v29 = vld [vmem:[%s5946_s6 + $0x88] sm:$0xff] }
 0x35f   : > { %v2410_v48 = vpop.permute.xlu1 %2409  ;;  %2893 = vmatpush1.msra.mxu0 %v2447_v52  ;;  %2963 = vmatprep.subr.mxu1 %v2450_v4 }
 0x360   : > { %v5470_v5 = vsel %vm1604_vm9, %v2408_v24, %v2410_v48  ;;  %2964 = vmatpush1.msra.mxu1 %v2449_v44  ;;  %v3260_v44 = vld [vmem:[%s5946_s6 + $0x98] sm:$0xff] }
 0x361   : > { %v2424_v10 = vmul.f32 %v3270_v41, %v5470_v5  ;;  %v2412_v8 = vpop.permute.xlu0 %2411  ;;  %v3259_v41 = vld [vmem:[%s5946_s6 + $0x90] sm:$0xff] }
 0x362   : > { %v5484_v20 = vsel %vm1604_vm9, %v2410_v48, %v2412_v8 }
 0x363   : > { %v2414_v22 = vpop.permute.xlu1 %2413  ;;  %2894 = vmatprep.subr.mxu0 %v2424_v10  ;;  %v2425_v6 = vmul.f32 %v3271_v19, %v5484_v20 }
 0x364   : > { %v5488_v3 = vsel %vm1604_vm9, %v2412_v8, %v2414_v22  ;;  %v5492_v30 = vsel %vm1604_vm9, %v2414_v22, %v2408_v24  ;;  %v3257_v24 = vld [vmem:[%s5946_s6 + $0x80] sm:$0xff] }
 0x365   : > { %v2423_v25 = vmul.f32 %v3269_v16, %v5492_v30  ;;  %v2426_v63 = vmul.f32 %v3272_v14, %v5488_v3  ;;  %v2384_v62 = vpop.permute.xlu0 %2383 }
 0x367   : > { %v2386_v32 = vpop.permute.xlu1 %2385  ;;  %2895 = vmatpush1.msra.mxu0 %v2423_v25  ;;  %2965 = vmatprep.subr.mxu1 %v2426_v63  ;;  %v3254_v63 = vld [vmem:[%s5946_s6 + $0x68] sm:$0xff] }
 0x368   : > { %v5502_v27 = vsel %vm1578_vm10, %v2384_v62, %v2386_v32  ;;  %2966 = vmatpush1.msra.mxu1 %v2425_v6 }
 0x369   : > { %v2400_v40 = vmul.f32 %v3266_v28, %v5502_v27  ;;  %v2388_v39 = vpop.permute.xlu0 %2387 }
 0x36a   : > { %v5516_v36 = vsel %vm1578_vm10, %v2386_v32, %v2388_v39 }
 0x36b   : > { %v2390_v12 = vpop.permute.xlu1 %2389  ;;  %2896 = vmatprep.subr.mxu0 %v2400_v40  ;;  %v2401_v13 = vmul.f32 %v3267_v35, %v5516_v36  ;;  %v3253_v40 = vld [vmem:[%s5946_s6 + $0x60] sm:$0xff] }
 0x36c   : > { %v5520_v23 = vsel %vm1578_vm10, %v2388_v39, %v2390_v12  ;;  %v5524_v9 = vsel %vm1578_vm10, %v2390_v12, %v2384_v62  ;;  %v3256_v39 = vld [vmem:[%s5946_s6 + $0x78] sm:$0xff] }
 0x36d   : > { %v2399_v38 = vmul.f32 %v3265_v31, %v5524_v9  ;;  %v2402_v45 = vmul.f32 %v3268_v21, %v5520_v23  ;;  %v2360_v46 = vpop.permute.xlu0 %2359  ;;  %v3255_v31 = vld [vmem:[%s5946_s6 + $0x70] sm:$0xff] }
 0x36f   : > { %v2362_v43 = vpop.permute.xlu1 %2361  ;;  %2897 = vmatpush1.msra.mxu0 %v2399_v38  ;;  %2967 = vmatprep.subr.mxu1 %v2402_v45 }
 0x370   : > { %v5534_v51 = vsel %vm1552_vm11, %v2360_v46, %v2362_v43  ;;  %2968 = vmatpush1.msra.mxu1 %v2401_v13 }
 0x371   : > { %v2376_v47 = vmul.f32 %v3262_v34, %v5534_v51  ;;  %v2364_v11 = vpop.permute.xlu0 %2363 }
 0x372   : > { %v5548_v37 = vsel %vm1552_vm11, %v2362_v43, %v2364_v11  ;;  %v3250_v43 = vld [vmem:[%s5946_s6 + $0x48] sm:$0xff] }
 0x373   : > { %v2366_v55 = vpop.permute.xlu1 %2365  ;;  %2898 = vmatprep.subr.mxu0 %v2376_v47  ;;  %v2377_v7 = vmul.f32 %v3263_v42, %v5548_v37  ;;  %v3249_v42 = vld [vmem:[%s5946_s6 + $0x40] sm:$0xff] }
 0x374   : > { %v5552_v33 = vsel %vm1552_vm11, %v2364_v11, %v2366_v55  ;;  %v5556_v60 = vsel %vm1552_vm11, %v2366_v55, %v2360_v46  ;;  %v3252_v55 = vld [vmem:[%s5946_s6 + $0x58] sm:$0xff] }
 0x375   : > { %v2375_v54 = vmul.f32 %v3261_v61, %v5556_v60  ;;  %v2378_v26 = vmul.f32 %v3264_v50, %v5552_v33  ;;  %v2336_v15 = vpop.permute.xlu0 %2335 }
 0x377   : > { %v2338_v49 = vpop.permute.xlu1 %2337  ;;  %2899 = vmatpush1.msra.mxu0 %v2375_v54  ;;  %2969 = vmatprep.subr.mxu1 %v2378_v26  ;;  %v3251_v54 = vld [vmem:[%s5946_s6 + $0x50] sm:$0xff] }
 0x378   : > { %v5566_v18 = vsel %vm1526_vm12, %v2336_v15, %v2338_v49  ;;  %2970 = vmatpush1.msra.mxu1 %v2377_v7 }
 0x379   : > { %v2352_v52 = vmul.f32 %v3258_v29, %v5566_v18  ;;  %v2340_v4 = vpop.permute.xlu0 %2339 }
 0x37a   : > { %v5580_v48 = vsel %vm1526_vm12, %v2338_v49, %v2340_v4 }
 0x37b   : > { %v2342_v10 = vpop.permute.xlu1 %2341  ;;  %2900 = vmatprep.subr.mxu0 %v2352_v52  ;;  %v2353_v25 = vmul.f32 %v3259_v41, %v5580_v48 }
 0x37c   : > { %v5584_v8 = vsel %vm1526_vm12, %v2340_v4, %v2342_v10  ;;  %v5588_v16 = vsel %vm1526_vm12, %v2342_v10, %v2336_v15 }
 0x37d   : > { %v2351_v14 = vmul.f32 %v3257_v24, %v5588_v16  ;;  %v2354_v19 = vmul.f32 %v3260_v44, %v5584_v8  ;;  %v2312_v22 = vpop.permute.xlu0 %2311  ;;  %v3246_v44 = vld [vmem:[%s5946_s6 + $0x28] sm:$0xff] }
 0x37f   : > { %v2314_v62 = vpop.permute.xlu1 %2313  ;;  %2901 = vmatpush1.msra.mxu0 %v2351_v14  ;;  %2971 = vmatprep.subr.mxu1 %v2354_v19 }
 0x380   : > { %v5598_v6 = vsel %vm1500_vm13, %v2312_v22, %v2314_v62  ;;  %2972 = vmatpush1.msra.mxu1 %v2353_v25  ;;  %v3248_v25 = vld [vmem:[%s5946_s6 + $0x38] sm:$0xff] }
 0x381   : > { %v2328_v28 = vmul.f32 %v3254_v63, %v5598_v6  ;;  %v2316_v32 = vpop.permute.xlu0 %2315  ;;  %v3247_v63 = vld [vmem:[%s5946_s6 + $0x30] sm:$0xff] }
 0x382   : > { %v5612_v21 = vsel %vm1500_vm13, %v2314_v62, %v2316_v32 }
 0x383   : > { %v2318_v35 = vpop.permute.xlu1 %2317  ;;  %2902 = vmatprep.subr.mxu0 %v2328_v28  ;;  %v2329_v34 = vmul.f32 %v3255_v31, %v5612_v21 }
 0x384   : > { %v5616_v12 = vsel %vm1500_vm13, %v2316_v32, %v2318_v35  ;;  %v5620_v38 = vsel %vm1500_vm13, %v2318_v35, %v2312_v22  ;;  %v3245_v22 = vld [vmem:[%s5946_s6 + $0x20] sm:$0xff] }
 0x385   : > { %v2327_v45 = vmul.f32 %v3253_v40, %v5620_v38  ;;  %v2330_v46 = vmul.f32 %v3256_v39, %v5616_v12  ;;  %v2288_v13 = vpop.permute.xlu0 %2287 }
 0x387   : > { %v2290_v47 = vpop.permute.xlu1 %2289  ;;  %2903 = vmatpush1.msra.mxu0 %v2327_v45  ;;  %2973 = vmatprep.subr.mxu1 %v2330_v46  ;;  %v2252_v46 = vld [vmem:[%s5946_s6 + $0x8] sm:$0xff] }
 0x388   : > { %v5630_v11 = vsel %vm1474_vm14, %v2288_v13, %v2290_v47  ;;  %2974 = vmatpush1.msra.mxu1 %v2329_v34 }
 0x389   : > { %v2304_v61 = vmul.f32 %v3250_v43, %v5630_v11  ;;  %v2292_v50 = vpop.permute.xlu0 %2291 }
 0x38a   : > { %v5644_v26 = vsel %vm1474_vm14, %v2290_v47, %v2292_v50 }
 0x38b   : > { %v2294_v15 = vpop.permute.xlu1 %2293  ;;  %2904 = vmatprep.subr.mxu0 %v2304_v61  ;;  %v2305_v24 = vmul.f32 %v3251_v54, %v5644_v26  ;;  %v2251_v61 = vld [vmem:[%s5946_s6] sm:$0xff] }
 0x38c   : > { %v5648_v7 = vsel %vm1474_vm14, %v2292_v50, %v2294_v15  ;;  %v5652_v29 = vsel %vm1474_vm14, %v2294_v15, %v2288_v13  ;;  %v2254_v50 = vld [vmem:[%s5946_s6 + $0x18] sm:$0xff]  ;;  %v3341_v15 = vld [vmem:[%s5946_s6 + $0x340] sm:$0xff] }
 0x38d   : > { %v2303_v49 = vmul.f32 %v3249_v42, %v5652_v29  ;;  %v2306_v52 = vmul.f32 %v3252_v55, %v5648_v7  ;;  %v2264_v4 = vpop.permute.xlu0 %2263  ;;  %v2253_v42 = vld [vmem:[%s5946_s6 + $0x10] sm:$0xff] }
 0x38f   : > { %v2266_v41 = vpop.permute.xlu1 %2265  ;;  %2905 = vmatpush1.msra.mxu0 %v2303_v49  ;;  %2975 = vmatprep.subr.mxu1 %v2306_v52 }
 0x390   : > { %v5662_v10 = vsel %vm5986_vm1, %v2264_v4, %v2266_v41  ;;  %2976 = vmatpush1.msra.mxu1 %v2305_v24 }
 0x391   : > { %v2280_v14 = vmul.f32 %v3246_v44, %v5662_v10  ;;  %v2268_v19 = vpop.permute.xlu0 %2267 }
 0x392   : > { %v5676_v62 = vsel %vm5987_vm2, %v2266_v41, %v2268_v19 }
 0x393   : > { %v2270_v28 = vpop.permute.xlu1 %2269  ;;  %2906 = vmatprep.subr.mxu0 %v2280_v14  ;;  %v2281_v45 = vmul.f32 %v3247_v63, %v5676_v62  ;;  %v3501_v14 = vld [vmem:[%s5946_s6 + $0x348] sm:$0xff]  ;;  %v2751_v63 = vmul.f32 %v3341_v15, %v5438_v57 }
 0x394   : > { %v5680_v32 = vsel %vm5988_vm3, %v2268_v19, %v2270_v28  ;;  %v5684_v40 = vsel %vm5989_vm4, %v2270_v28, %v2264_v4  ;;  %v3343_v4 = vld [vmem:[%s5946_s6 + $0x350] sm:$0xff]  ;;  %v2752_v19 = vmul.f32 %v3501_v14, %v5452_v58  ;;  %v3502_v28 = vld [vmem:[%s5946_s6 + $0x358] sm:$0xff]  ;;  %v3503_v57 = vld [vmem:[%s5946_s6 + $0x328] sm:$0xff] }
 0x395   : > { %v2279_v39 = vmul.f32 %v3245_v22, %v5684_v40  ;;  %v2282_v31 = vmul.f32 %v3248_v25, %v5680_v32  ;;  %v2240_v35 = vpop.permute.xlu0 %2239  ;;  %v3337_v22 = vld [vmem:[%s5946_s6 + $0x320] sm:$0xff]  ;;  %v2753_v58 = vmul.f32 %v3343_v4, %v5456_v17  ;;  %v3507_v4 = vld [vmem:[%s5946_s6 + $0x2e8] sm:$0xff] }
 0x397   : > { %v2242_v13 = vpop.permute.xlu1 %2241  ;;  %2907 = vmatpush1.msra.mxu0 %v2279_v39  ;;  %2977 = vmatprep.subr.mxu1 %v2282_v31  ;;  %v2754_v39 = vmul.f32 %v3502_v28, %v5460_v1  ;;  %v3339_v31 = vld [vmem:[%s5946_s6 + $0x330] sm:$0xff]  ;;  %v3333_v1 = vld [vmem:[%s5946_s6 + $0x300] sm:$0xff] }
 0x398   : > { %v5694_v34 = vsel %vm5990_vm5, %v2240_v35, %v2242_v13  ;;  %2978 = vmatpush1.msra.mxu1 %v2281_v45  ;;  %v2740_v45 = vmul.f32 %v3503_v57, %v5484_v20 }
 0x399   : > { %v2256_v43 = vmul.f32 %v2252_v46, %v5694_v34  ;;  %v2244_v47 = vpop.permute.xlu0 %2243  ;;  %v2739_v46 = vmul.f32 %v3337_v22, %v5470_v5  ;;  %v3505_v5 = vld [vmem:[%s5946_s6 + $0x308] sm:$0xff] }
 0x39a   : > { %v5708_v55 = vsel %vm5991_vm6, %v2242_v13, %v2244_v47  ;;  %v3504_v13 = vld [vmem:[%s5946_s6 + $0x338] sm:$0xff]  ;;  %v3322_v22 = vld [vmem:[%s5946_s6 + $0x2a8] sm:$0xff] }
 0x39b   : > { %v2246_v54 = vpop.permute.xlu1 %2245  ;;  %2908 = vmatprep.subr.mxu0 %v2256_v43  ;;  %v2257_v25 = vmul.f32 %v2253_v42, %v5708_v55  ;;  %v2742_v17 = vmul.f32 %v3504_v13, %v5492_v30  ;;  %v3335_v43 = vld [vmem:[%s5946_s6 + $0x310] sm:$0xff]  ;;  %v3329_v30 = vld [vmem:[%s5946_s6 + $0x2e0] sm:$0xff]  ;;  %v3506_v42 = vld [vmem:[%s5946_s6 + $0x318] sm:$0xff] }
 0x39c   : > { %v5715_v49 = vsel %vm5992_vm7, %v2244_v47, %v2246_v54  ;;  %v5719_v52 = vsel %vm5993_vm8, %v2246_v54, %v2240_v35  ;;  %v2741_v47 = vmul.f32 %v3339_v31, %v5488_v3  ;;  %v2730_v3 = vmul.f32 %v3506_v42, %v5524_v9  ;;  %v3331_v54 = vld [vmem:[%s5946_s6 + $0x2f0] sm:$0xff] }
 0x39d   : > { %v2255_v24 = vmul.f32 %v2251_v61, %v5719_v52  ;;  %v2258_v44 = vmul.f32 %v2254_v50, %v5715_v49  ;;  %v5726_v41 = vpop.permute.xlu0 %2627  ;;  %v2728_v61 = vmul.f32 %v3505_v5, %v5516_v36  ;;  %v2727_v50 = vmul.f32 %v3333_v1, %v5502_v27  ;;  %v3326_v36 = vld [vmem:[%s5946_s6 + $0x2c8] sm:$0xff]  ;;  %v3320_v1 = vld [vmem:[%s5946_s6 + $0x298] sm:$0xff]  ;;  %v3309_v5 = vld [vmem:[%s5946_s6 + $0x240] sm:$0xff] }
 0x39e   : > { %v2729_v27 = vmul.f32 %v3335_v43, %v5520_v23  ;;  %v2716_v9 = vmul.f32 %v3507_v4, %v5548_v37  ;;  %v2715_v14 = vmul.f32 %v3329_v30, %v5534_v51  ;;  %v3508_v23 = vld [vmem:[%s5946_s6 + $0x2f8] sm:$0xff]  ;;  %v3327_v37 = vld [vmem:[%s5946_s6 + $0x2d0] sm:$0xff]  ;;  %v2704_v51 = vmul.f32 %v3326_v36, %v5580_v48  ;;  %v3317_v48 = vld [vmem:[%s5946_s6 + $0x280] sm:$0xff] }
 0x39f   : > { %v5744_v35 = vpop.permute.xlu1 %2629  ;;  %2909 = vmatpush1.msra.mxu0 %v2255_v24  ;;  %2979 = vmatprep.subr.mxu1 %v2258_v44  ;;  %v3325_v24 = vld [vmem:[%s5946_s6 + $0x2c0] sm:$0xff]  ;;  %v3328_v44 = vld [vmem:[%s5946_s6 + $0x2d8] sm:$0xff]  ;;  %v3306_v36 = vld [vmem:[%s5946_s6 + $0x228] sm:$0xff] }
 0x3a0   : > { %2920 = vmatprep.subr.mxu0 %v2752_v19  ;;  %2980 = vmatpush1.msra.mxu1 %v2257_v25  ;;  %v2718_v19 = vmul.f32 %v3508_v23, %v5556_v60  ;;  %v2717_v25 = vmul.f32 %v3331_v54, %v5552_v33  ;;  %v3324_v60 = vld [vmem:[%s5946_s6 + $0x2b8] sm:$0xff]  ;;  %v2706_v31 = vmul.f32 %v3328_v44, %v5588_v16  ;;  %v3323_v33 = vld [vmem:[%s5946_s6 + $0x2b0] sm:$0xff] }
 0x3a1   : > { %2921 = vmatpush2.msra.mxu0 %v2751_v63  ;;  %2991 = vmatprep.subr.mxu1 %v2754_v39  ;;  %v5762_v20 = vpop.permute.xlu0 %2631  ;;  %v3321_v63 = vld [vmem:[%s5946_s6 + $0x2a0] sm:$0xff]  ;;  %v2703_v39 = vmul.f32 %v3325_v24, %v5566_v18  ;;  %v2692_v18 = vmul.f32 %v3322_v22, %v5612_v21  ;;  %v3319_v16 = vld [vmem:[%s5946_s6 + $0x290] sm:$0xff]  ;;  %v3314_v21 = vld [vmem:[%s5946_s6 + $0x268] sm:$0xff] }
 0x3a2   : > { %2922 = vmatprep.subr.mxu0 %v2740_v45  ;;  %2992 = vmatpush2.msra.mxu1 %v2753_v58  ;;  %v3318_v58 = vld [vmem:[%s5946_s6 + $0x288] sm:$0xff]  ;;  %v2705_v45 = vmul.f32 %v3327_v37, %v5584_v8  ;;  %v2691_v13 = vmul.f32 %v3321_v63, %v5598_v6  ;;  %v2694_v8 = vmul.f32 %v3324_v60, %v5620_v38  ;;  %v3316_v43 = vld [vmem:[%s5946_s6 + $0x278] sm:$0xff]  ;;  %v3303_v37 = vld [vmem:[%s5946_s6 + $0x210] sm:$0xff] }
 0x3a3   : > { %v5783_v15 = vpop.permute.xlu1 %2633  ;;  %2923 = vmatpush2.msra.mxu0 %v2739_v46  ;;  %2993 = vmatprep.subr.mxu1 %v2742_v17  ;;  %v3313_v46 = vld [vmem:[%s5946_s6 + $0x260] sm:$0xff]  ;;  %v3315_v17 = vld [vmem:[%s5946_s6 + $0x270] sm:$0xff]  ;;  %v2679_v6 = vmul.f32 %v3317_v48, %v5630_v11  ;;  %v2680_v38 = vmul.f32 %v3318_v58, %v5644_v26  ;;  %v2681_v30 = vmul.f32 %v3319_v16, %v5648_v7  ;;  %v3312_v7 = vld [vmem:[%s5946_s6 + $0x258] sm:$0xff] }
 0x3a4   : > { %2924 = vmatprep.subr.mxu0 %v2728_v61  ;;  %2994 = vmatpush2.msra.mxu1 %v2741_v47  ;;  %v2693_v47 = vmul.f32 %v3323_v33, %v5616_v12  ;;  %v3310_v61 = vld [vmem:[%s5946_s6 + $0x248] sm:$0xff]  ;;  %v2667_v12 = vmul.f32 %v3313_v46, %v5662_v10  ;;  %v3311_v11 = vld [vmem:[%s5946_s6 + $0x250] sm:$0xff]  ;;  %v2668_v26 = vmul.f32 %v3314_v21, %v5676_v62 }
 0x3a5   : > { %2925 = vmatpush2.msra.mxu0 %v2727_v50  ;;  %2995 = vmatprep.subr.mxu1 %v2730_v3  ;;  %v5815_v28 = vpop.permute.xlu0 %2603  ;;  %v2682_v50 = vmul.f32 %v3320_v1, %v5652_v29  ;;  %v2669_v42 = vmul.f32 %v3315_v17, %v5680_v32  ;;  %v2670_v3 = vmul.f32 %v3316_v43, %v5684_v40  ;;  %v3302_v24 = vld [vmem:[%s5946_s6 + $0x208] sm:$0xff] }
 0x3a6   : > { %2926 = vmatprep.subr.mxu0 %v2716_v9  ;;  %2996 = vmatpush2.msra.mxu1 %v2729_v27  ;;  %v2655_v29 = vmul.f32 %v3309_v5, %v5694_v34  ;;  %v2656_v10 = vmul.f32 %v3310_v61, %v5708_v55  ;;  %v2636_v62 = vsel %vm1842_vm0, %v5744_v35, %v5762_v20  ;;  %v3305_v34 = vld [vmem:[%s5946_s6 + $0x220] sm:$0xff]  ;;  %v3308_v27 = vld [vmem:[%s5946_s6 + $0x238] sm:$0xff]  ;;  %v3307_v9 = vld [vmem:[%s5946_s6 + $0x230] sm:$0xff] }
 0x3a7   : > { %v2606_v57 = vpop.permute.xlu1 %2605  ;;  %2927 = vmatpush2.msra.mxu0 %v2715_v14  ;;  %2997 = vmatprep.subr.mxu1 %v2718_v19  ;;  %v2657_v40 = vmul.f32 %v3311_v11, %v5715_v49  ;;  %v2637_v55 = vsel %vm1842_vm0, %v5726_v41, %v5744_v35  ;;  %v2638_v4 = vsel %vm1842_vm0, %v5783_v15, %v5726_v41 }
 0x3a8   : > { %2928 = vmatprep.subr.mxu0 %v2704_v51  ;;  %2998 = vmatpush2.msra.mxu1 %v2717_v25  ;;  %v2658_v49 = vmul.f32 %v3312_v7, %v5719_v52  ;;  %v2635_v35 = vsel %vm1842_vm0, %v5762_v20, %v5783_v15  ;;  %v2644_v44 = vmul.f32 %v3306_v36, %v2636_v62  ;;  %v3301_v52 = vld [vmem:[%s5946_s6 + $0x200] sm:$0xff]  ;;  %v3304_v20 = vld [vmem:[%s5946_s6 + $0x218] sm:$0xff] }
 0x3a9   : > { %2929 = vmatpush2.msra.mxu0 %v2703_v39  ;;  %2999 = vmatprep.subr.mxu1 %v2706_v31  ;;  %v2608_v54 = vpop.permute.xlu0 %2607  ;;  %v2613_v14 = vsel %vm1816_vm15, %v5815_v28, %v2606_v57  ;;  %v2643_v23 = vmul.f32 %v3305_v34, %v2637_v55  ;;  %v2646_v19 = vmul.f32 %v3308_v27, %v2638_v4 }
 0x3aa   : > { %2930 = vmatprep.subr.mxu0 %v2692_v18  ;;  %3000 = vmatpush2.msra.mxu1 %v2705_v45  ;;  %v2612_v41 = vsel %vm1816_vm15, %v2606_v57, %v2608_v54  ;;  %v2645_v25 = vmul.f32 %v3307_v9, %v2635_v35  ;;  %v2619_v63 = vmul.f32 %v3301_v52, %v2613_v14 }
 0x3ab   : > { %2931 = vmatpush2.msra.mxu0 %v2691_v13  ;;  %3001 = vmatprep.subr.mxu1 %v2694_v8  ;;  %v2610_v32 = vpop.permute.xlu1 %2609  ;;  %v2620_v51 = vmul.f32 %v3302_v24, %v2612_v41 }
 0x3ac   : > { %2932 = vmatprep.subr.mxu0 %v2680_v38  ;;  %3002 = vmatpush2.msra.mxu1 %v2693_v47  ;;  %v2614_v15 = vsel %vm1816_vm15, %v2610_v32, %v5815_v28  ;;  %v2611_v22 = vsel %vm1816_vm15, %v2608_v54, %v2610_v32  ;;  %v2759_v28 = vld [vmem:[%s5949_s9] sm:$0xff] }
 0x3ad   : > { %2933 = vmatpush2.msra.mxu0 %v2679_v6  ;;  %3003 = vmatprep.subr.mxu1 %v2682_v50  ;;  %v2622_v60 = vmul.f32 %v3304_v20, %v2614_v15  ;;  %v2621_v39 = vmul.f32 %v3303_v37, %v2611_v22 }
 0x3ae   : > { %2934 = vmatprep.subr.mxu0 %v2668_v26  ;;  %3004 = vmatpush2.msra.mxu1 %v2681_v30 }
 0x3af   : > { %2935 = vmatpush2.msra.mxu0 %v2667_v12  ;;  %3005 = vmatprep.subr.mxu1 %v2670_v3 }
 0x3b0   : > { %2936 = vmatprep.subr.mxu0 %v2656_v10  ;;  %3006 = vmatpush2.msra.mxu1 %v2669_v42 }
 0x3b1   : > { %2937 = vmatpush2.msra.mxu0 %v2655_v29  ;;  %3007 = vmatprep.subr.mxu1 %v2658_v49 }
 0x3b2   : > { %2938 = vmatprep.subr.mxu0 %v2644_v44  ;;  %3008 = vmatpush2.msra.mxu1 %v2657_v40 }
 0x3b3   : > { %2939 = vmatpush2.msra.mxu0 %v2643_v23  ;;  %3009 = vmatprep.subr.mxu1 %v2646_v19 }
 0x3b4   : > { %2940 = vmatprep.subr.mxu0 %v2620_v51  ;;  %3010 = vmatpush2.msra.mxu1 %v2645_v25 }
 0x3b5   : > { %2941 = vmatpush2.msra.mxu0 %v2619_v63  ;;  %3011 = vmatprep.subr.mxu1 %v2622_v60 }
 0x3b6   : > { %2943 = vmatmul.mubr.f32.vlgmr.msra.gmra.mxu0 %v2759_v28  ;;  %3012 = vmatpush2.msra.mxu1 %v2621_v39 }
 0x3b7   : > { %3014 = vmatmul.mubr.f32.vlgmr.msra.gmra.mxu1 %v2759_v28  ;;  %v2873_v56 = vpop.permute.xlu0 %2872 }
 0x476   : > { %v2944_v31 = vpop.f32.mrf.mxu0 }
 0x477   : > { %v3015_v33 = vpop.f32.mrf.mxu1  ;;  %v2945_v48 = vadd.f32 %v2944_v31, %v2873_v56 }
 0x478   : > { %v3016_v58 = vadd.f32 %v3015_v33, %v2873_v56  ;;  %v2946_v57 = vpop.f32.mrf.mxu0 }
 0x479   : > { %3020 = vst [vmem:[#allocation4] ss:$16 sps:$4 sm:$0x11] %v2945_v48   ;;  %3024 = vst [vmem:[#allocation4 + $0x3] ss:$16 sps:$4 sm:$0x22] %v2945_v48   ;;  %v2947_v45 = vadd.f32 %v2946_v57, %v2873_v56  ;;  %v3017_v18 = vpop.f32.mrf.mxu1 }
 0x47a   : > { %3028 = vst [vmem:[#allocation4 + $0x6] ss:$16 sps:$4 sm:$0x44] %v2945_v48   ;;  %3032 = vst [vmem:[#allocation4 + $0x9] ss:$16 sps:$4 sm:$0x88] %v2945_v48   ;;  %v3018_v16 = vadd.f32 %v3017_v18, %v2873_v56 }
 0x47b   : > { %3022 = vst [vmem:[#allocation4 + $0x2] ss:$16 sps:$4 sm:$0x11] %v3016_v58   ;;  %3026 = vst [vmem:[#allocation4 + $0x5] ss:$16 sps:$4 sm:$0x22] %v3016_v58  }
 0x47c   : > { %3030 = vst [vmem:[#allocation4 + $0x8] ss:$16 sps:$4 sm:$0x44] %v3016_v58   ;;  %3034 = vst [vmem:[#allocation4 + $0xb] ss:$16 sps:$4 sm:$0x88] %v3016_v58  }
 0x47d   : > { %3021 = vst [vmem:[#allocation4 + $0x1] ss:$16 sps:$4 sm:$0x11] %v2947_v45   ;;  %3025 = vst [vmem:[#allocation4 + $0x4] ss:$16 sps:$4 sm:$0x22] %v2947_v45  }
 0x47e   : > { %3029 = vst [vmem:[#allocation4 + $0x7] ss:$16 sps:$4 sm:$0x44] %v2947_v45   ;;  %3033 = vst [vmem:[#allocation4 + $0xa] ss:$16 sps:$4 sm:$0x88] %v2947_v45  }
 0x47f   : > { %3023 = vst [vmem:[#allocation4 + $0x3] ss:$16 sps:$4 sm:$0x11] %v3018_v16   ;;  %3027 = vst [vmem:[#allocation4 + $0x6] ss:$16 sps:$4 sm:$0x22] %v3018_v16  }
 0x480   : > { %3031 = vst [vmem:[#allocation4 + $0x9] ss:$16 sps:$4 sm:$0x44] %v3018_v16   ;;  %3035 = vst [vmem:[#allocation4 + $0xc] ss:$16 sps:$4 sm:$0x88] %v3018_v16  }
 0x486   : > { %v3052_v1 = vld [vmem:[#allocation4] sm:$0xff]  ;;  %v3054_v13 = vld [vmem:[#allocation4 + $0x10] sm:$0xff] }
 0x487   : > { %v3053_v46 = vld [vmem:[#allocation4 + $0x8] sm:$0xff]  ;;  %v3055_v8 = vld [vmem:[#allocation4 + $0x18] sm:$0xff]  ;;  %v3056_v21 = vadd.f32 %v3052_v1, %v5149_v53  ;;  %v3058_v43 = vadd.f32 %v3054_v13, %v5153_v59 }
 0x488   : > { %v3057_v17 = vadd.f32 %v3053_v46, %v5151_v2  ;;  %v3059_v47 = vadd.f32 %v3055_v8, %v5155_v0 }
 0x489   : > { %3060 = vst [vmem:[%s406_s29] sm:$0xff] %v3056_v21  ;;  %3062 = vst [vmem:[%s406_s29 + $0x10] sm:$0xff] %v3058_v43 }
 0x48a   : > { %3061 = vst [vmem:[%s406_s29 + $0x8] sm:$0xff] %v3057_v17  ;;  %3063 = vst [vmem:[%s406_s29 + $0x18] sm:$0xff] %v3059_v47 }
 0x48b PF: > { %s21_s17 = sadd.s32 1, %s3515_s17  }
 0x48c   : > { %p18_p4 = scmp.ge.s32.totalorder %s21_s17, 4  }
 0x48e   :  { %20 = sbr.rel (!%p18_p4) target bundleno = 1 (0x1), region = 122 }

</bundles_post_ra>
